<compile_context>
chip_gen: v7x
topology: tpu7x:2x2x1
jax: 0.10.0
libtpu: 0.0.40
codegen_flags: <defaults>
</compile_context>

<pallas_src>
import jax
import jax.numpy as jnp
from jax.experimental import pallas as pl
from jax.experimental.pallas import tpu as pltpu


def gated_attn_kernel(wup_ref, upg_ref, wuq_ref, uq_ref, vq_ref,
                      wv_all_ref, wgcc_ref, wih_ref, bih_ref, bhh4_ref,
                      v0_ref, vs_ref, v_state):
    """One grid step = T consecutive timesteps for one batch block.

    wup_ref : (T, B, H2)   Up @ Wp slab for this time chunk (precomputed)
    upg_ref : (T, B, D)    Up @ Wg[:D, D:] slab (gate half, precomputed)
    wuq_ref : (B, m, H2)   Uq @ Wq (time-invariant)
    uq_ref  : (B, m, D)    Uq_ (time-invariant)
    vq_ref  : (B, 1, H2)   V, pre-broadcast-shaped (time-invariant)
    wv_all_ref : (H2, 4H2) [Wv | Whh_r | Whh_z | Whh_n]   (fused v-side weights)
    wgcc_ref: (D, D)       Wg[D:, D:]   (only live half of the gate matmul)
    wih_ref : (D, 3H2)     GRU W_ih (all three gates, one matmul)
    bih_ref : (1, 3H2)     GRU b_ih
    bhh4_ref: (1, 4H2)     [0 | b_hh]   (aligned with wv_all lanes)
    v0_ref  : (B, H2)      initial hidden state
    vs_ref  : (T, B, H2)   output slab
    v_state : (B, H2)      VMEM scratch carrying v across time chunks
    """
    # reset the carried hidden state at the start of each batch block's sweep
    @pl.when(pl.program_id(1) == 0)
    def _():
        v_state[...] = v0_ref[...]

    T = wup_ref.shape[0]
    H2 = v0_ref.shape[-1]

    # hoisted loop-invariant loads (not re-read inside the timestep loop)
    wuq = wuq_ref[...]          # (B, m, H2)
    uq = uq_ref[...]            # (B, m, D)
    vq = vq_ref[...]            # (B, 1, H2)
    wv_all = wv_all_ref[...]    # (H2, 4*H2)
    wgcc = wgcc_ref[...]        # (D, D)
    wih = wih_ref[...]          # (D, 3*H2)
    b_i = bih_ref[...]          # (1, 3*H2)
    b_h4 = bhh4_ref[...]        # (1, 4*H2)

    def step(t, v):
        # ---- single fused MXU push for every v-dependent projection --------
        vw = jnp.dot(v, wv_all, preferred_element_type=jnp.float32) + b_h4
        wvv = vw[:, :H2]                    # Wv @ v
        h_r = vw[:, H2:2 * H2]              # Whh_r @ v + b_hr
        h_z = vw[:, 2 * H2:3 * H2]          # Whh_z @ v + b_hz
        h_n = vw[:, 3 * H2:]                # Whh_n @ v + b_hn

        # ---- attention: both reductions routed through the MXU -------------
        x = jnp.tanh(wup_ref[t][:, None, :] + wuq + wvv[:, None, :])   # (B,m,H2)
        s = jnp.einsum('bqh,bkh->bqk', vq, x,
                       preferred_element_type=jnp.float32)             # (B,1,m)
        s_max = jnp.max(s, axis=-1, keepdims=True)
        e = jnp.exp(s - s_max)
        inv = pl.reciprocal(jnp.sum(e, axis=-1, keepdims=True), approx=True)
        a = e * inv                                                     # (B,1,m)
        c = jnp.einsum('bqk,bkd->bqd', a, uq,
                       preferred_element_type=jnp.float32)[:, 0, :]     # (B,D)

        # ---- gate: only the live c-half of the original (2D,2D) matmul -----
        g_c = jax.nn.sigmoid(
            upg_ref[t] + jnp.dot(c, wgcc, preferred_element_type=jnp.float32))
        c_ = g_c * c                                                    # (B, D)

        # ---- GRUCell (PyTorch gate order r, z, n) ---------------------------
        gi = jnp.dot(c_, wih, preferred_element_type=jnp.float32) + b_i  # (B,3H2)
        rg = jax.nn.sigmoid(gi[:, :H2] + h_r)
        zg = jax.nn.sigmoid(gi[:, H2:2 * H2] + h_z)
        ng = jnp.tanh(gi[:, 2 * H2:] + rg * h_n)
        v_new = (1.0 - zg) * ng + zg * v                                # (B, H2)

        vs_ref[t] = v_new
        return v_new

    # hidden state lives in the fori_loop carry; the VMEM scratch is touched
    # only once per grid step (to persist v across time chunks).
    v_final = jax.lax.fori_loop(0, T, step, v_state[...], unroll=True)
    v_state[...] = v_final


def gated_attn(up, uq, params, v0, Vvec, t_block=8, b_block=8):
    """up: (B, n, D), uq: (B, m, D) with D = 2*input_size.

    Returns (n, B, 2*h_size)  (time-major, like the PyTorch module)."""
    B, n, D = up.shape
    m = uq.shape[1]
    H2 = params['wp'].shape[1]
    wg = params['wg']

    # ---- pad batch to a multiple of 8 sublanes, time to a multiple of T ----
    B_blk = b_block
    B_pad = -(-B // B_blk) * B_blk
    T = max(1, t_block)
    n_pad = -(-n // T) * T

    def pad_to(x, axis, size):
        d = size - x.shape[axis]
        if d <= 0:
            return x
        widths = [(0, 0)] * x.ndim
        widths[axis] = (0, d)
        return jnp.pad(x, widths)

    up_p = pad_to(up, 0, B_pad)
    uq_p = pad_to(uq, 0, B_pad)
    v0_p = pad_to(v0, 0, B_pad)
    vv_p = pad_to(Vvec, 0, B_pad)

    # ---- loop-invariant precompute (one big MXU-friendly matmul each) ------
    up_t = jnp.transpose(up_p, (1, 0, 2))                       # (n, Bp, D)
    wup_all = pad_to(jnp.einsum('nbd,dh->nbh', up_t, params['wp']), 0, n_pad)
    upg_all = pad_to(jnp.einsum('nbd,de->nbe', up_t, wg[:D, D:]), 0, n_pad)
    wuq_all = jnp.einsum('bmd,dh->bmh', uq_p, params['wq'])     # (Bp, m, H2)

    wg_cc = wg[D:, D:]                                           # (D, D)
    # fused v-side weights: one (H2, 4*H2) push per step covers Wv plus all
    # three GRU hidden-side gates; bias vector aligned to the same lanes.
    wv_all = jnp.concatenate([params['wv'], params['whh']], axis=1)     # (H2,4H2)
    bhh4 = jnp.concatenate(
        [jnp.zeros((1, H2), params['bhh'].dtype), params['bhh']], axis=1)
    vq3 = vv_p[:, None, :]                                       # (Bp, 1, H2)

    grid = (B_pad // B_blk, n_pad // T)

    # TODO(synk): production m — add pipeline_mode=pl.Buffered(1) on the
    # time-invariant specs below and m-tile wuq/uq (online softmax) for v7x.
    in_specs = [
        pl.BlockSpec((T, B_blk, H2), lambda b, i: (i, b, 0)),    # Up @ Wp slab
        pl.BlockSpec((T, B_blk, D), lambda b, i: (i, b, 0)),     # Up @ Wg[:D,D:]
        pl.BlockSpec((B_blk, m, H2), lambda b, i: (b, 0, 0)),    # Uq @ Wq
        pl.BlockSpec((B_blk, m, D), lambda b, i: (b, 0, 0)),     # Uq_
        pl.BlockSpec((B_blk, 1, H2), lambda b, i: (b, 0, 0)),    # V (B,1,H2)
        pl.BlockSpec((H2, 4 * H2), lambda b, i: (0, 0)),         # [Wv | Whh]
        pl.BlockSpec((D, D), lambda b, i: (0, 0)),               # Wg[D:, D:]
        pl.BlockSpec((D, 3 * H2), lambda b, i: (0, 0)),          # W_ih
        pl.BlockSpec((1, 3 * H2), lambda b, i: (0, 0)),          # b_ih
        pl.BlockSpec((1, 4 * H2), lambda b, i: (0, 0)),          # [0 | b_hh]
        pl.BlockSpec((B_blk, H2), lambda b, i: (b, 0)),          # v0
    ]
    out_spec = pl.BlockSpec((T, B_blk, H2), lambda b, i: (i, b, 0))

    inputs = (wup_all, upg_all, wuq_all, uq_p, vq3, wv_all, wg_cc,
              params['wih'], params['bih'], bhh4, v0_p)

    # explicit VMEM budget: double-buffered blocks + headroom, capped at the
    # smallest physical VMEM across generations (v7x: 64 MiB)
    def nbytes(*shape):
        sz = 4
        for s in shape:
            sz *= s
        return sz

    block_bytes = (
        2 * nbytes(T, B_blk, H2) + nbytes(T, B_blk, D)
        + nbytes(B_blk, m, H2) + nbytes(B_blk, m, D) + nbytes(B_blk, 1, H2)
        + nbytes(H2, 4 * H2) + nbytes(D, D) + nbytes(D, 3 * H2)
        + nbytes(1, 3 * H2) + nbytes(1, 4 * H2) + 2 * nbytes(B_blk, H2))
    vmem_limit = min(64 << 20, 2 * block_bytes + (4 << 20))

    # advisory cost estimate so XLA can overlap the precompute matmuls with us
    macs = B_pad * n_pad * (4 * H2 * H2 + m * H2 + m * D + D * D + 3 * D * H2)
    flops = 2 * macs + 4 * n_pad * B_pad * m * H2
    transcendentals = n_pad * B_pad * (m * H2 + m + D + 3 * H2)
    bytes_accessed = 4 * (sum(int(x.size) for x in inputs) + n_pad * B_pad * H2)

    out = pl.pallas_call(
        gated_attn_kernel,
        out_shape=jax.ShapeDtypeStruct((n_pad, B_pad, H2), jnp.float32),
        grid_spec=pltpu.PrefetchScalarGridSpec(
            num_scalar_prefetch=0,
            grid=grid,
            in_specs=in_specs,
            out_specs=out_spec,
            scratch_shapes=[pltpu.VMEM((B_blk, H2), jnp.float32)],
        ),
        compiler_params=pltpu.CompilerParams(
            dimension_semantics=("parallel", "arbitrary"),
            vmem_limit_bytes=vmem_limit),
        cost_estimate=pl.CostEstimate(
            flops=flops, transcendentals=transcendentals,
            bytes_accessed=bytes_accessed),
    )(*inputs)
    return out[:n, :B, :]


def gated_attn_ref(up, uq, params, v0, Vvec):
    """Pure-JAX reference mirroring the PyTorch forward (time-major output)."""
    up_t = jnp.transpose(up, (1, 0, 2))
    D = up_t.shape[-1]

    def step(v, up_i):
        wup = up_i @ params['wp']
        wuq = jnp.einsum('bmd,dh->bmh', uq, params['wq'])
        wvv = v @ params['wv']
        x = jnp.tanh(wup[:, None, :] + wuq + wvv[:, None, :])
        s = jnp.sum(x * Vvec[:, None, :], axis=-1)          # (B, m)
        a = jax.nn.softmax(s, axis=1)
        c = jnp.einsum('bm,bmd->bd', a, uq)
        r = jnp.concatenate([up_i, c], axis=1)
        g = jax.nn.sigmoid(r @ params['wg'])
        r_ = g * r
        c_ = r_[:, D:]
        gi = c_ @ params['wih'] + params['bih']
        gh = v @ params['whh'] + params['bhh']
        i_r, i_z, i_n = jnp.split(gi, 3, axis=1)
        h_r, h_z, h_n = jnp.split(gh, 3, axis=1)
        rg = jax.nn.sigmoid(i_r + h_r)
        zg = jax.nn.sigmoid(i_z + h_z)
        ng = jnp.tanh(i_n + rg * h_n)
        v_new = (1.0 - zg) * ng + zg * v
        return v_new, v_new

    _, vs = jax.lax.scan(step, v0, up_t)
    return vs


if __name__ == "__main__":
    key = jax.random.PRNGKey(0)
    B, n, m = 2, 8, 8
    input_size, h_size = 4, 4
    D = 2 * input_size           # 8
    H2 = 2 * h_size              # 8

    ks = jax.random.split(key, 12)
    up_in = jax.random.normal(ks[0], (B, n, D), jnp.float32)
    uq_in = jax.random.normal(ks[1], (B, m, D), jnp.float32)

    sc = 0.2
    params = dict(
        wp=jax.random.normal(ks[2], (D, H2), jnp.float32) * sc,
        wq=jax.random.normal(ks[3], (D, H2), jnp.float32) * sc,
        wv=jax.random.normal(ks[4], (H2, H2), jnp.float32) * sc,
        wg=jax.random.normal(ks[5], (2 * D, 2 * D), jnp.float32) * sc,
        wih=jax.random.normal(ks[6], (D, 3 * H2), jnp.float32) * sc,
        whh=jax.random.normal(ks[7], (H2, 3 * H2), jnp.float32) * sc,
        bih=jax.random.normal(ks[8], (1, 3 * H2), jnp.float32) * sc,
        bhh=jax.random.normal(ks[9], (1, 3 * H2), jnp.float32) * sc,
    )
    # deterministic stand-ins for the module's torch.randn v / V
    v0 = jax.random.normal(ks[10], (B, H2), jnp.float32)
    Vvec = jax.random.normal(ks[11], (B, H2), jnp.float32)

    out = gated_attn(up_in, uq_in, params, v0, Vvec, t_block=8)
    out = jax.block_until_ready(out)

    ref = jax.block_until_ready(gated_attn_ref(up_in, uq_in, params, v0, Vvec))
    assert out.shape == (n, B, H2), out.shape
    assert jnp.allclose(out, ref, atol=2e-3, rtol=2e-3), \
        f"max abs diff {jnp.max(jnp.abs(out - ref))}"

    print("KERNEL_OK")
</pallas_src>

<mosaic_0001>
module attributes {stable_mosaic.version = 11 : i64} {
  func.func @gated_attn_kernel(%arg0: i32, %arg1: i32, %arg2: memref<8x8x8xf32, #tpu.memory_space<vmem>>, %arg3: memref<8x8x8xf32, #tpu.memory_space<vmem>>, %arg4: memref<8x8x8xf32, #tpu.memory_space<vmem>>, %arg5: memref<8x8x8xf32, #tpu.memory_space<vmem>>, %arg6: memref<8x1x8xf32, #tpu.memory_space<vmem>>, %arg7: memref<8x32xf32, #tpu.memory_space<vmem>>, %arg8: memref<8x8xf32, #tpu.memory_space<vmem>>, %arg9: memref<8x24xf32, #tpu.memory_space<vmem>>, %arg10: memref<1x24xf32, #tpu.memory_space<vmem>>, %arg11: memref<1x32xf32, #tpu.memory_space<vmem>>, %arg12: memref<8x8xf32, #tpu.memory_space<vmem>>, %arg13: memref<8x8x8xf32, #tpu.memory_space<vmem>>, %arg14: memref<8x8xf32, #tpu.memory_space<vmem>>) attributes {dimension_semantics = [#tpu.dimension_semantics<parallel>, #tpu.dimension_semantics<arbitrary>], iteration_bounds = array<i64: 1, 1>, scalar_prefetch = 0 : i64, scratch_operands = 1 : i64, tpu.core_type = #tpu.core_type<tc>, window_params = [{transform_indices = @transform_0, window_bounds = array<i64: 8, 8, 8>}, {transform_indices = @transform_1, window_bounds = array<i64: 8, 8, 8>}, {transform_indices = @transform_2, window_bounds = array<i64: 8, 8, 8>}, {transform_indices = @transform_3, window_bounds = array<i64: 8, 8, 8>}, {transform_indices = @transform_4, window_bounds = array<i64: 8, 1, 8>}, {pipeline_mode = #tpu.pipeline_mode<synchronous>, transform_indices = @transform_5, window_bounds = array<i64: 8, 32>}, {pipeline_mode = #tpu.pipeline_mode<synchronous>, transform_indices = @transform_6, window_bounds = array<i64: 8, 8>}, {pipeline_mode = #tpu.pipeline_mode<synchronous>, transform_indices = @transform_7, window_bounds = array<i64: 8, 24>}, {pipeline_mode = #tpu.pipeline_mode<synchronous>, transform_indices = @transform_8, window_bounds = array<i64: 1, 24>}, {pipeline_mode = #tpu.pipeline_mode<synchronous>, transform_indices = @transform_9, window_bounds = array<i64: 1, 32>}, {transform_indices = @transform_10, window_bounds = array<i64: 8, 8>}, {transform_indices = @transform_11, window_bounds = array<i64: 8, 8, 8>}]} {
    %c0_i32 = arith.constant 0 : i32
    %0 = arith.cmpi eq, %arg1, %c0_i32 : i32
    %1 = arith.extui %0 : i1 to i32
    %c0_i32_0 = arith.constant 0 : i32
    %2 = arith.cmpi ne, %1, %c0_i32_0 : i32
    scf.if %2 {
      %c0_159 = arith.constant 0 : index
      %c0_160 = arith.constant 0 : index
      %581 = vector.load %arg12[%c0_159, %c0_160] : memref<8x8xf32, #tpu.memory_space<vmem>>, vector<8x8xf32>
      %c0_161 = arith.constant 0 : index
      %c0_162 = arith.constant 0 : index
      %582 = vector.load %arg14[%c0_161, %c0_162] : memref<8x8xf32, #tpu.memory_space<vmem>>, vector<8x8xf32>
      tpu.vector_store %arg14[%c0_161, %c0_162], %581 {strides = array<i32>} : memref<8x8xf32, #tpu.memory_space<vmem>>, vector<8x8xf32>,
    } else {
    }
    %c0 = arith.constant 0 : index
    %c0_1 = arith.constant 0 : index
    %c0_2 = arith.constant 0 : index
    %3 = vector.load %arg4[%c0, %c0_1, %c0_2] : memref<8x8x8xf32, #tpu.memory_space<vmem>>, vector<8x8x8xf32>
    %c0_3 = arith.constant 0 : index
    %c0_4 = arith.constant 0 : index
    %c0_5 = arith.constant 0 : index
    %4 = vector.load %arg5[%c0_3, %c0_4, %c0_5] : memref<8x8x8xf32, #tpu.memory_space<vmem>>, vector<8x8x8xf32>
    %c0_6 = arith.constant 0 : index
    %c0_7 = arith.constant 0 : index
    %c0_8 = arith.constant 0 : index
    %5 = vector.load %arg6[%c0_6, %c0_7, %c0_8] : memref<8x1x8xf32, #tpu.memory_space<vmem>>, vector<8x1x8xf32>
    %c0_9 = arith.constant 0 : index
    %c0_10 = arith.constant 0 : index
    %6 = vector.load %arg7[%c0_9, %c0_10] : memref<8x32xf32, #tpu.memory_space<vmem>>, vector<8x32xf32>
    %c0_11 = arith.constant 0 : index
    %c0_12 = arith.constant 0 : index
    %7 = vector.load %arg8[%c0_11, %c0_12] : memref<8x8xf32, #tpu.memory_space<vmem>>, vector<8x8xf32>
    %c0_13 = arith.constant 0 : index
    %c0_14 = arith.constant 0 : index
    %8 = vector.load %arg9[%c0_13, %c0_14] : memref<8x24xf32, #tpu.memory_space<vmem>>, vector<8x24xf32>
    %c0_15 = arith.constant 0 : index
    %c0_16 = arith.constant 0 : index
    %9 = vector.load %arg10[%c0_15, %c0_16] : memref<1x24xf32, #tpu.memory_space<vmem>>, vector<1x24xf32>
    %c0_17 = arith.constant 0 : index
    %c0_18 = arith.constant 0 : index
    %10 = vector.load %arg11[%c0_17, %c0_18] : memref<1x32xf32, #tpu.memory_space<vmem>>, vector<1x32xf32>
    %c0_19 = arith.constant 0 : index
    %c0_20 = arith.constant 0 : index
    %11 = vector.load %arg14[%c0_19, %c0_20] : memref<8x8xf32, #tpu.memory_space<vmem>>, vector<8x8xf32>
    %c0_i32_21 = arith.constant 0 : i32
    %cst = arith.constant dense<0.000000e+00> : vector<8x32xf32>
    %12 = tpu.matmul %11, %6, %cst {dimension_numbers = #tpu.dot_dimension_numbers<[1], [0], [0], [1], [0, 0, 1, 1], [], []>} : vector<8x8xf32>, vector<8x32xf32>, vector<8x32xf32> -> vector<8x32xf32>
    %13 = vector.broadcast %10 : vector<1x32xf32> to vector<8x32xf32>
    %14 = arith.addf %12, %13 : vector<8x32xf32>
    %15 = vector.extract_strided_slice %14 {offsets = [0, 0], sizes = [8, 8], strides = [1, 1]} : vector<8x32xf32> to vector<8x8xf32>
    %16 = vector.extract_strided_slice %14 {offsets = [0, 8], sizes = [8, 8], strides = [1, 1]} : vector<8x32xf32> to vector<8x8xf32>
    %17 = vector.extract_strided_slice %14 {offsets = [0, 16], sizes = [8, 8], strides = [1, 1]} : vector<8x32xf32> to vector<8x8xf32>
    %18 = vector.extract_strided_slice %14 {offsets = [0, 24], sizes = [8, 8], strides = [1, 1]} : vector<8x32xf32> to vector<8x8xf32>
    %19 = arith.index_cast %c0_i32_21 : i32 to index
    %c0_22 = arith.constant 0 : index
    %c0_23 = arith.constant 0 : index
    %20 = vector.load %arg2[%19, %c0_22, %c0_23] : memref<8x8x8xf32, #tpu.memory_space<vmem>>, vector<1x8x8xf32>
    %21 = vector.shape_cast %20 : vector<1x8x8xf32> to vector<8x8xf32>
    %22 = vector.shape_cast %21 : vector<8x8xf32> to vector<8x1x8xf32>
    %23 = vector.broadcast %22 : vector<8x1x8xf32> to vector<8x8x8xf32>
    %24 = arith.addf %23, %3 : vector<8x8x8xf32>
    %25 = vector.shape_cast %15 : vector<8x8xf32> to vector<8x1x8xf32>
    %26 = vector.broadcast %25 : vector<8x1x8xf32> to vector<8x8x8xf32>
    %27 = arith.addf %24, %26 : vector<8x8x8xf32>
    %28 = math.tanh %27 : vector<8x8x8xf32>
    "tpu.trace_start"() <{level = 10 : i32, message = "bqh,bkh->bqk"}> : () -> ()
    %cst_24 = arith.constant dense<0.000000e+00> : vector<8x1x8xf32>
    %29 = tpu.matmul %5, %28, %cst_24 {dimension_numbers = #tpu.dot_dimension_numbers<[2], [2], [1], [1], [0, 0, 0, 1, 1, 1], [0], [0]>} : vector<8x1x8xf32>, vector<8x8x8xf32>, vector<8x1x8xf32> -> vector<8x1x8xf32>
    "tpu.trace_stop"() : () -> ()
    %cst_25 = arith.constant dense<0xFF800000> : vector<8x1xf32>
    %30 = vector.multi_reduction <maximumf>, %29, %cst_25 [2] : vector<8x1x8xf32> to vector<8x1xf32>
    %31 = vector.shape_cast %30 : vector<8x1xf32> to vector<8x1x1xf32>
    %32 = vector.broadcast %31 : vector<8x1x1xf32> to vector<8x1x8xf32>
    %33 = arith.subf %29, %32 : vector<8x1x8xf32>
    %34 = math.exp %33 : vector<8x1x8xf32>
    %cst_26 = arith.constant dense<0.000000e+00> : vector<8x1xf32>
    %35 = vector.multi_reduction <add>, %34, %cst_26 [2] : vector<8x1x8xf32> to vector<8x1xf32>
    %36 = vector.shape_cast %35 : vector<8x1xf32> to vector<8x1x1xf32>
    %37 = tpu.reciprocal %36 {approx = true} : vector<8x1x1xf32> -> vector<8x1x1xf32>
    %38 = vector.broadcast %37 : vector<8x1x1xf32> to vector<8x1x8xf32>
    %39 = arith.mulf %34, %38 : vector<8x1x8xf32>
    "tpu.trace_start"() <{level = 10 : i32, message = "bqk,bkd->bqd"}> : () -> ()
    %cst_27 = arith.constant dense<0.000000e+00> : vector<8x1x8xf32>
    %40 = tpu.matmul %39, %4, %cst_27 {dimension_numbers = #tpu.dot_dimension_numbers<[2], [1], [1], [2], [0, 0, 0, 1, 1, 2], [0], [0]>} : vector<8x1x8xf32>, vector<8x8x8xf32>, vector<8x1x8xf32> -> vector<8x1x8xf32>
    "tpu.trace_stop"() : () -> ()
    %41 = vector.shape_cast %40 : vector<8x1x8xf32> to vector<8x8xf32>
    %42 = arith.index_cast %c0_i32_21 : i32 to index
    %c0_28 = arith.constant 0 : index
    %c0_29 = arith.constant 0 : index
    %43 = vector.load %arg3[%42, %c0_28, %c0_29] : memref<8x8x8xf32, #tpu.memory_space<vmem>>, vector<1x8x8xf32>
    %44 = vector.shape_cast %43 : vector<1x8x8xf32> to vector<8x8xf32>
    %cst_30 = arith.constant dense<0.000000e+00> : vector<8x8xf32>
    %45 = tpu.matmul %41, %7, %cst_30 {dimension_numbers = #tpu.dot_dimension_numbers<[1], [0], [0], [1], [0, 0, 1, 1], [], []>} : vector<8x8xf32>, vector<8x8xf32>, vector<8x8xf32> -> vector<8x8xf32>
    %46 = arith.addf %44, %45 : vector<8x8xf32>
    %47 = arith.negf %46 : vector<8x8xf32>
    %48 = math.exp %47 : vector<8x8xf32>
    %cst_31 = arith.constant 1.000000e+00 : f32
    %49 = vector.broadcast %cst_31 : f32 to vector<8x8xf32>
    %50 = arith.addf %49, %48 : vector<8x8xf32>
    %51 = arith.divf %49, %50 : vector<8x8xf32>
    %52 = arith.mulf %51, %41 : vector<8x8xf32>
    %cst_32 = arith.constant dense<0.000000e+00> : vector<8x24xf32>
    %53 = tpu.matmul %52, %8, %cst_32 {dimension_numbers = #tpu.dot_dimension_numbers<[1], [0], [0], [1], [0, 0, 1, 1], [], []>} : vector<8x8xf32>, vector<8x24xf32>, vector<8x24xf32> -> vector<8x24xf32>
    %54 = vector.broadcast %9 : vector<1x24xf32> to vector<8x24xf32>
    %55 = arith.addf %53, %54 : vector<8x24xf32>
    %56 = vector.extract_strided_slice %55 {offsets = [0, 0], sizes = [8, 8], strides = [1, 1]} : vector<8x24xf32> to vector<8x8xf32>
    %57 = arith.addf %56, %16 : vector<8x8xf32>
    %58 = arith.negf %57 : vector<8x8xf32>
    %59 = math.exp %58 : vector<8x8xf32>
    %cst_33 = arith.constant 1.000000e+00 : f32
    %60 = vector.broadcast %cst_33 : f32 to vector<8x8xf32>
    %61 = arith.addf %60, %59 : vector<8x8xf32>
    %62 = arith.divf %60, %61 : vector<8x8xf32>
    %63 = vector.extract_strided_slice %55 {offsets = [0, 8], sizes = [8, 8], strides = [1, 1]} : vector<8x24xf32> to vector<8x8xf32>
    %64 = arith.addf %63, %17 : vector<8x8xf32>
    %65 = arith.negf %64 : vector<8x8xf32>
    %66 = math.exp %65 : vector<8x8xf32>
    %cst_34 = arith.constant 1.000000e+00 : f32
    %67 = vector.broadcast %cst_34 : f32 to vector<8x8xf32>
    %68 = arith.addf %67, %66 : vector<8x8xf32>
    %69 = arith.divf %67, %68 : vector<8x8xf32>
    %70 = vector.extract_strided_slice %55 {offsets = [0, 16], sizes = [8, 8], strides = [1, 1]} : vector<8x24xf32> to vector<8x8xf32>
    %71 = arith.mulf %62, %18 : vector<8x8xf32>
    %72 = arith.addf %70, %71 : vector<8x8xf32>
    %73 = math.tanh %72 : vector<8x8xf32>
    %cst_35 = arith.constant 1.000000e+00 : f32
    %74 = vector.broadcast %cst_35 : f32 to vector<8x8xf32>
    %75 = arith.subf %74, %69 : vector<8x8xf32>
    %76 = arith.mulf %75, %73 : vector<8x8xf32>
    %77 = arith.mulf %69, %11 : vector<8x8xf32>
    %78 = arith.addf %76, %77 : vector<8x8xf32>
    %79 = arith.index_cast %c0_i32_21 : i32 to index
    %c0_36 = arith.constant 0 : index
    %c0_37 = arith.constant 0 : index
    %80 = vector.load %arg13[%79, %c0_36, %c0_37] : memref<8x8x8xf32, #tpu.memory_space<vmem>>, vector<1x8x8xf32>
    %81 = vector.shape_cast %80 : vector<1x8x8xf32> to vector<8x8xf32>
    %82 = vector.shape_cast %78 : vector<8x8xf32> to vector<1x8x8xf32>
    tpu.vector_store %arg13[%79, %c0_36, %c0_37], %82 {strides = array<i32>} : memref<8x8x8xf32, #tpu.memory_space<vmem>>, vector<1x8x8xf32>,
    %c1_i32 = arith.constant 1 : i32
    %cst_38 = arith.constant dense<0.000000e+00> : vector<8x32xf32>
    %83 = tpu.matmul %78, %6, %cst_38 {dimension_numbers = #tpu.dot_dimension_numbers<[1], [0], [0], [1], [0, 0, 1, 1], [], []>} : vector<8x8xf32>, vector<8x32xf32>, vector<8x32xf32> -> vector<8x32xf32>
    %84 = vector.broadcast %10 : vector<1x32xf32> to vector<8x32xf32>
    %85 = arith.addf %83, %84 : vector<8x32xf32>
    %86 = vector.extract_strided_slice %85 {offsets = [0, 0], sizes = [8, 8], strides = [1, 1]} : vector<8x32xf32> to vector<8x8xf32>
    %87 = vector.extract_strided_slice %85 {offsets = [0, 8], sizes = [8, 8], strides = [1, 1]} : vector<8x32xf32> to vector<8x8xf32>
    %88 = vector.extract_strided_slice %85 {offsets = [0, 16], sizes = [8, 8], strides = [1, 1]} : vector<8x32xf32> to vector<8x8xf32>
    %89 = vector.extract_strided_slice %85 {offsets = [0, 24], sizes = [8, 8], strides = [1, 1]} : vector<8x32xf32> to vector<8x8xf32>
    %90 = arith.index_cast %c1_i32 : i32 to index
    %c0_39 = arith.constant 0 : index
    %c0_40 = arith.constant 0 : index
    %91 = vector.load %arg2[%90, %c0_39, %c0_40] : memref<8x8x8xf32, #tpu.memory_space<vmem>>, vector<1x8x8xf32>
    %92 = vector.shape_cast %91 : vector<1x8x8xf32> to vector<8x8xf32>
    %93 = vector.shape_cast %92 : vector<8x8xf32> to vector<8x1x8xf32>
    %94 = vector.broadcast %93 : vector<8x1x8xf32> to vector<8x8x8xf32>
    %95 = arith.addf %94, %3 : vector<8x8x8xf32>
    %96 = vector.shape_cast %86 : vector<8x8xf32> to vector<8x1x8xf32>
    %97 = vector.broadcast %96 : vector<8x1x8xf32> to vector<8x8x8xf32>
    %98 = arith.addf %95, %97 : vector<8x8x8xf32>
    %99 = math.tanh %98 : vector<8x8x8xf32>
    "tpu.trace_start"() <{level = 10 : i32, message = "bqh,bkh->bqk"}> : () -> ()
    %cst_41 = arith.constant dense<0.000000e+00> : vector<8x1x8xf32>
    %100 = tpu.matmul %5, %99, %cst_41 {dimension_numbers = #tpu.dot_dimension_numbers<[2], [2], [1], [1], [0, 0, 0, 1, 1, 1], [0], [0]>} : vector<8x1x8xf32>, vector<8x8x8xf32>, vector<8x1x8xf32> -> vector<8x1x8xf32>
    "tpu.trace_stop"() : () -> ()
    %cst_42 = arith.constant dense<0xFF800000> : vector<8x1xf32>
    %101 = vector.multi_reduction <maximumf>, %100, %cst_42 [2] : vector<8x1x8xf32> to vector<8x1xf32>
    %102 = vector.shape_cast %101 : vector<8x1xf32> to vector<8x1x1xf32>
    %103 = vector.broadcast %102 : vector<8x1x1xf32> to vector<8x1x8xf32>
    %104 = arith.subf %100, %103 : vector<8x1x8xf32>
    %105 = math.exp %104 : vector<8x1x8xf32>
    %cst_43 = arith.constant dense<0.000000e+00> : vector<8x1xf32>
    %106 = vector.multi_reduction <add>, %105, %cst_43 [2] : vector<8x1x8xf32> to vector<8x1xf32>
    %107 = vector.shape_cast %106 : vector<8x1xf32> to vector<8x1x1xf32>
    %108 = tpu.reciprocal %107 {approx = true} : vector<8x1x1xf32> -> vector<8x1x1xf32>
    %109 = vector.broadcast %108 : vector<8x1x1xf32> to vector<8x1x8xf32>
    %110 = arith.mulf %105, %109 : vector<8x1x8xf32>
    "tpu.trace_start"() <{level = 10 : i32, message = "bqk,bkd->bqd"}> : () -> ()
    %cst_44 = arith.constant dense<0.000000e+00> : vector<8x1x8xf32>
    %111 = tpu.matmul %110, %4, %cst_44 {dimension_numbers = #tpu.dot_dimension_numbers<[2], [1], [1], [2], [0, 0, 0, 1, 1, 2], [0], [0]>} : vector<8x1x8xf32>, vector<8x8x8xf32>, vector<8x1x8xf32> -> vector<8x1x8xf32>
    "tpu.trace_stop"() : () -> ()
    %112 = vector.shape_cast %111 : vector<8x1x8xf32> to vector<8x8xf32>
    %113 = arith.index_cast %c1_i32 : i32 to index
    %c0_45 = arith.constant 0 : index
    %c0_46 = arith.constant 0 : index
    %114 = vector.load %arg3[%113, %c0_45, %c0_46] : memref<8x8x8xf32, #tpu.memory_space<vmem>>, vector<1x8x8xf32>
    %115 = vector.shape_cast %114 : vector<1x8x8xf32> to vector<8x8xf32>
    %cst_47 = arith.constant dense<0.000000e+00> : vector<8x8xf32>
    %116 = tpu.matmul %112, %7, %cst_47 {dimension_numbers = #tpu.dot_dimension_numbers<[1], [0], [0], [1], [0, 0, 1, 1], [], []>} : vector<8x8xf32>, vector<8x8xf32>, vector<8x8xf32> -> vector<8x8xf32>
    %117 = arith.addf %115, %116 : vector<8x8xf32>
    %118 = arith.negf %117 : vector<8x8xf32>
    %119 = math.exp %118 : vector<8x8xf32>
    %cst_48 = arith.constant 1.000000e+00 : f32
    %120 = vector.broadcast %cst_48 : f32 to vector<8x8xf32>
    %121 = arith.addf %120, %119 : vector<8x8xf32>
    %122 = arith.divf %120, %121 : vector<8x8xf32>
    %123 = arith.mulf %122, %112 : vector<8x8xf32>
    %cst_49 = arith.constant dense<0.000000e+00> : vector<8x24xf32>
    %124 = tpu.matmul %123, %8, %cst_49 {dimension_numbers = #tpu.dot_dimension_numbers<[1], [0], [0], [1], [0, 0, 1, 1], [], []>} : vector<8x8xf32>, vector<8x24xf32>, vector<8x24xf32> -> vector<8x24xf32>
    %125 = vector.broadcast %9 : vector<1x24xf32> to vector<8x24xf32>
    %126 = arith.addf %124, %125 : vector<8x24xf32>
    %127 = vector.extract_strided_slice %126 {offsets = [0, 0], sizes = [8, 8], strides = [1, 1]} : vector<8x24xf32> to vector<8x8xf32>
    %128 = arith.addf %127, %87 : vector<8x8xf32>
    %129 = arith.negf %128 : vector<8x8xf32>
    %130 = math.exp %129 : vector<8x8xf32>
    %cst_50 = arith.constant 1.000000e+00 : f32
    %131 = vector.broadcast %cst_50 : f32 to vector<8x8xf32>
    %132 = arith.addf %131, %130 : vector<8x8xf32>
    %133 = arith.divf %131, %132 : vector<8x8xf32>
    %134 = vector.extract_strided_slice %126 {offsets = [0, 8], sizes = [8, 8], strides = [1, 1]} : vector<8x24xf32> to vector<8x8xf32>
    %135 = arith.addf %134, %88 : vector<8x8xf32>
    %136 = arith.negf %135 : vector<8x8xf32>
    %137 = math.exp %136 : vector<8x8xf32>
    %cst_51 = arith.constant 1.000000e+00 : f32
    %138 = vector.broadcast %cst_51 : f32 to vector<8x8xf32>
    %139 = arith.addf %138, %137 : vector<8x8xf32>
    %140 = arith.divf %138, %139 : vector<8x8xf32>
    %141 = vector.extract_strided_slice %126 {offsets = [0, 16], sizes = [8, 8], strides = [1, 1]} : vector<8x24xf32> to vector<8x8xf32>
    %142 = arith.mulf %133, %89 : vector<8x8xf32>
    %143 = arith.addf %141, %142 : vector<8x8xf32>
    %144 = math.tanh %143 : vector<8x8xf32>
    %cst_52 = arith.constant 1.000000e+00 : f32
    %145 = vector.broadcast %cst_52 : f32 to vector<8x8xf32>
    %146 = arith.subf %145, %140 : vector<8x8xf32>
    %147 = arith.mulf %146, %144 : vector<8x8xf32>
    %148 = arith.mulf %140, %78 : vector<8x8xf32>
    %149 = arith.addf %147, %148 : vector<8x8xf32>
    %150 = arith.index_cast %c1_i32 : i32 to index
    %c0_53 = arith.constant 0 : index
    %c0_54 = arith.constant 0 : index
    %151 = vector.load %arg13[%150, %c0_53, %c0_54] : memref<8x8x8xf32, #tpu.memory_space<vmem>>, vector<1x8x8xf32>
    %152 = vector.shape_cast %151 : vector<1x8x8xf32> to vector<8x8xf32>
    %153 = vector.shape_cast %149 : vector<8x8xf32> to vector<1x8x8xf32>
    tpu.vector_store %arg13[%150, %c0_53, %c0_54], %153 {strides = array<i32>} : memref<8x8x8xf32, #tpu.memory_space<vmem>>, vector<1x8x8xf32>,
    %c2_i32 = arith.constant 2 : i32
    %cst_55 = arith.constant dense<0.000000e+00> : vector<8x32xf32>
    %154 = tpu.matmul %149, %6, %cst_55 {dimension_numbers = #tpu.dot_dimension_numbers<[1], [0], [0], [1], [0, 0, 1, 1], [], []>} : vector<8x8xf32>, vector<8x32xf32>, vector<8x32xf32> -> vector<8x32xf32>
    %155 = vector.broadcast %10 : vector<1x32xf32> to vector<8x32xf32>
    %156 = arith.addf %154, %155 : vector<8x32xf32>
    %157 = vector.extract_strided_slice %156 {offsets = [0, 0], sizes = [8, 8], strides = [1, 1]} : vector<8x32xf32> to vector<8x8xf32>
    %158 = vector.extract_strided_slice %156 {offsets = [0, 8], sizes = [8, 8], strides = [1, 1]} : vector<8x32xf32> to vector<8x8xf32>
    %159 = vector.extract_strided_slice %156 {offsets = [0, 16], sizes = [8, 8], strides = [1, 1]} : vector<8x32xf32> to vector<8x8xf32>
    %160 = vector.extract_strided_slice %156 {offsets = [0, 24], sizes = [8, 8], strides = [1, 1]} : vector<8x32xf32> to vector<8x8xf32>
    %161 = arith.index_cast %c2_i32 : i32 to index
    %c0_56 = arith.constant 0 : index
    %c0_57 = arith.constant 0 : index
    %162 = vector.load %arg2[%161, %c0_56, %c0_57] : memref<8x8x8xf32, #tpu.memory_space<vmem>>, vector<1x8x8xf32>
    %163 = vector.shape_cast %162 : vector<1x8x8xf32> to vector<8x8xf32>
    %164 = vector.shape_cast %163 : vector<8x8xf32> to vector<8x1x8xf32>
    %165 = vector.broadcast %164 : vector<8x1x8xf32> to vector<8x8x8xf32>
    %166 = arith.addf %165, %3 : vector<8x8x8xf32>
    %167 = vector.shape_cast %157 : vector<8x8xf32> to vector<8x1x8xf32>
    %168 = vector.broadcast %167 : vector<8x1x8xf32> to vector<8x8x8xf32>
    %169 = arith.addf %166, %168 : vector<8x8x8xf32>
    %170 = math.tanh %169 : vector<8x8x8xf32>
    "tpu.trace_start"() <{level = 10 : i32, message = "bqh,bkh->bqk"}> : () -> ()
    %cst_58 = arith.constant dense<0.000000e+00> : vector<8x1x8xf32>
    %171 = tpu.matmul %5, %170, %cst_58 {dimension_numbers = #tpu.dot_dimension_numbers<[2], [2], [1], [1], [0, 0, 0, 1, 1, 1], [0], [0]>} : vector<8x1x8xf32>, vector<8x8x8xf32>, vector<8x1x8xf32> -> vector<8x1x8xf32>
    "tpu.trace_stop"() : () -> ()
    %cst_59 = arith.constant dense<0xFF800000> : vector<8x1xf32>
    %172 = vector.multi_reduction <maximumf>, %171, %cst_59 [2] : vector<8x1x8xf32> to vector<8x1xf32>
    %173 = vector.shape_cast %172 : vector<8x1xf32> to vector<8x1x1xf32>
    %174 = vector.broadcast %173 : vector<8x1x1xf32> to vector<8x1x8xf32>
    %175 = arith.subf %171, %174 : vector<8x1x8xf32>
    %176 = math.exp %175 : vector<8x1x8xf32>
    %cst_60 = arith.constant dense<0.000000e+00> : vector<8x1xf32>
    %177 = vector.multi_reduction <add>, %176, %cst_60 [2] : vector<8x1x8xf32> to vector<8x1xf32>
    %178 = vector.shape_cast %177 : vector<8x1xf32> to vector<8x1x1xf32>
    %179 = tpu.reciprocal %178 {approx = true} : vector<8x1x1xf32> -> vector<8x1x1xf32>
    %180 = vector.broadcast %179 : vector<8x1x1xf32> to vector<8x1x8xf32>
    %181 = arith.mulf %176, %180 : vector<8x1x8xf32>
    "tpu.trace_start"() <{level = 10 : i32, message = "bqk,bkd->bqd"}> : () -> ()
    %cst_61 = arith.constant dense<0.000000e+00> : vector<8x1x8xf32>
    %182 = tpu.matmul %181, %4, %cst_61 {dimension_numbers = #tpu.dot_dimension_numbers<[2], [1], [1], [2], [0, 0, 0, 1, 1, 2], [0], [0]>} : vector<8x1x8xf32>, vector<8x8x8xf32>, vector<8x1x8xf32> -> vector<8x1x8xf32>
    "tpu.trace_stop"() : () -> ()
    %183 = vector.shape_cast %182 : vector<8x1x8xf32> to vector<8x8xf32>
    %184 = arith.index_cast %c2_i32 : i32 to index
    %c0_62 = arith.constant 0 : index
    %c0_63 = arith.constant 0 : index
    %185 = vector.load %arg3[%184, %c0_62, %c0_63] : memref<8x8x8xf32, #tpu.memory_space<vmem>>, vector<1x8x8xf32>
    %186 = vector.shape_cast %185 : vector<1x8x8xf32> to vector<8x8xf32>
    %cst_64 = arith.constant dense<0.000000e+00> : vector<8x8xf32>
    %187 = tpu.matmul %183, %7, %cst_64 {dimension_numbers = #tpu.dot_dimension_numbers<[1], [0], [0], [1], [0, 0, 1, 1], [], []>} : vector<8x8xf32>, vector<8x8xf32>, vector<8x8xf32> -> vector<8x8xf32>
    %188 = arith.addf %186, %187 : vector<8x8xf32>
    %189 = arith.negf %188 : vector<8x8xf32>
    %190 = math.exp %189 : vector<8x8xf32>
    %cst_65 = arith.constant 1.000000e+00 : f32
    %191 = vector.broadcast %cst_65 : f32 to vector<8x8xf32>
    %192 = arith.addf %191, %190 : vector<8x8xf32>
    %193 = arith.divf %191, %192 : vector<8x8xf32>
    %194 = arith.mulf %193, %183 : vector<8x8xf32>
    %cst_66 = arith.constant dense<0.000000e+00> : vector<8x24xf32>
    %195 = tpu.matmul %194, %8, %cst_66 {dimension_numbers = #tpu.dot_dimension_numbers<[1], [0], [0], [1], [0, 0, 1, 1], [], []>} : vector<8x8xf32>, vector<8x24xf32>, vector<8x24xf32> -> vector<8x24xf32>
    %196 = vector.broadcast %9 : vector<1x24xf32> to vector<8x24xf32>
    %197 = arith.addf %195, %196 : vector<8x24xf32>
    %198 = vector.extract_strided_slice %197 {offsets = [0, 0], sizes = [8, 8], strides = [1, 1]} : vector<8x24xf32> to vector<8x8xf32>
    %199 = arith.addf %198, %158 : vector<8x8xf32>
    %200 = arith.negf %199 : vector<8x8xf32>
    %201 = math.exp %200 : vector<8x8xf32>
    %cst_67 = arith.constant 1.000000e+00 : f32
    %202 = vector.broadcast %cst_67 : f32 to vector<8x8xf32>
    %203 = arith.addf %202, %201 : vector<8x8xf32>
    %204 = arith.divf %202, %203 : vector<8x8xf32>
    %205 = vector.extract_strided_slice %197 {offsets = [0, 8], sizes = [8, 8], strides = [1, 1]} : vector<8x24xf32> to vector<8x8xf32>
    %206 = arith.addf %205, %159 : vector<8x8xf32>
    %207 = arith.negf %206 : vector<8x8xf32>
    %208 = math.exp %207 : vector<8x8xf32>
    %cst_68 = arith.constant 1.000000e+00 : f32
    %209 = vector.broadcast %cst_68 : f32 to vector<8x8xf32>
    %210 = arith.addf %209, %208 : vector<8x8xf32>
    %211 = arith.divf %209, %210 : vector<8x8xf32>
    %212 = vector.extract_strided_slice %197 {offsets = [0, 16], sizes = [8, 8], strides = [1, 1]} : vector<8x24xf32> to vector<8x8xf32>
    %213 = arith.mulf %204, %160 : vector<8x8xf32>
    %214 = arith.addf %212, %213 : vector<8x8xf32>
    %215 = math.tanh %214 : vector<8x8xf32>
    %cst_69 = arith.constant 1.000000e+00 : f32
    %216 = vector.broadcast %cst_69 : f32 to vector<8x8xf32>
    %217 = arith.subf %216, %211 : vector<8x8xf32>
    %218 = arith.mulf %217, %215 : vector<8x8xf32>
    %219 = arith.mulf %211, %149 : vector<8x8xf32>
    %220 = arith.addf %218, %219 : vector<8x8xf32>
    %221 = arith.index_cast %c2_i32 : i32 to index
    %c0_70 = arith.constant 0 : index
    %c0_71 = arith.constant 0 : index
    %222 = vector.load %arg13[%221, %c0_70, %c0_71] : memref<8x8x8xf32, #tpu.memory_space<vmem>>, vector<1x8x8xf32>
    %223 = vector.shape_cast %222 : vector<1x8x8xf32> to vector<8x8xf32>
    %224 = vector.shape_cast %220 : vector<8x8xf32> to vector<1x8x8xf32>
    tpu.vector_store %arg13[%221, %c0_70, %c0_71], %224 {strides = array<i32>} : memref<8x8x8xf32, #tpu.memory_space<vmem>>, vector<1x8x8xf32>,
    %c3_i32 = arith.constant 3 : i32
    %cst_72 = arith.constant dense<0.000000e+00> : vector<8x32xf32>
    %225 = tpu.matmul %220, %6, %cst_72 {dimension_numbers = #tpu.dot_dimension_numbers<[1], [0], [0], [1], [0, 0, 1, 1], [], []>} : vector<8x8xf32>, vector<8x32xf32>, vector<8x32xf32> -> vector<8x32xf32>
    %226 = vector.broadcast %10 : vector<1x32xf32> to vector<8x32xf32>
    %227 = arith.addf %225, %226 : vector<8x32xf32>
    %228 = vector.extract_strided_slice %227 {offsets = [0, 0], sizes = [8, 8], strides = [1, 1]} : vector<8x32xf32> to vector<8x8xf32>
    %229 = vector.extract_strided_slice %227 {offsets = [0, 8], sizes = [8, 8], strides = [1, 1]} : vector<8x32xf32> to vector<8x8xf32>
    %230 = vector.extract_strided_slice %227 {offsets = [0, 16], sizes = [8, 8], strides = [1, 1]} : vector<8x32xf32> to vector<8x8xf32>
    %231 = vector.extract_strided_slice %227 {offsets = [0, 24], sizes = [8, 8], strides = [1, 1]} : vector<8x32xf32> to vector<8x8xf32>
    %232 = arith.index_cast %c3_i32 : i32 to index
    %c0_73 = arith.constant 0 : index
    %c0_74 = arith.constant 0 : index
    %233 = vector.load %arg2[%232, %c0_73, %c0_74] : memref<8x8x8xf32, #tpu.memory_space<vmem>>, vector<1x8x8xf32>
    %234 = vector.shape_cast %233 : vector<1x8x8xf32> to vector<8x8xf32>
    %235 = vector.shape_cast %234 : vector<8x8xf32> to vector<8x1x8xf32>
    %236 = vector.broadcast %235 : vector<8x1x8xf32> to vector<8x8x8xf32>
    %237 = arith.addf %236, %3 : vector<8x8x8xf32>
    %238 = vector.shape_cast %228 : vector<8x8xf32> to vector<8x1x8xf32>
    %239 = vector.broadcast %238 : vector<8x1x8xf32> to vector<8x8x8xf32>
    %240 = arith.addf %237, %239 : vector<8x8x8xf32>
    %241 = math.tanh %240 : vector<8x8x8xf32>
    "tpu.trace_start"() <{level = 10 : i32, message = "bqh,bkh->bqk"}> : () -> ()
    %cst_75 = arith.constant dense<0.000000e+00> : vector<8x1x8xf32>
    %242 = tpu.matmul %5, %241, %cst_75 {dimension_numbers = #tpu.dot_dimension_numbers<[2], [2], [1], [1], [0, 0, 0, 1, 1, 1], [0], [0]>} : vector<8x1x8xf32>, vector<8x8x8xf32>, vector<8x1x8xf32> -> vector<8x1x8xf32>
    "tpu.trace_stop"() : () -> ()
    %cst_76 = arith.constant dense<0xFF800000> : vector<8x1xf32>
    %243 = vector.multi_reduction <maximumf>, %242, %cst_76 [2] : vector<8x1x8xf32> to vector<8x1xf32>
    %244 = vector.shape_cast %243 : vector<8x1xf32> to vector<8x1x1xf32>
    %245 = vector.broadcast %244 : vector<8x1x1xf32> to vector<8x1x8xf32>
    %246 = arith.subf %242, %245 : vector<8x1x8xf32>
    %247 = math.exp %246 : vector<8x1x8xf32>
    %cst_77 = arith.constant dense<0.000000e+00> : vector<8x1xf32>
    %248 = vector.multi_reduction <add>, %247, %cst_77 [2] : vector<8x1x8xf32> to vector<8x1xf32>
    %249 = vector.shape_cast %248 : vector<8x1xf32> to vector<8x1x1xf32>
    %250 = tpu.reciprocal %249 {approx = true} : vector<8x1x1xf32> -> vector<8x1x1xf32>
    %251 = vector.broadcast %250 : vector<8x1x1xf32> to vector<8x1x8xf32>
    %252 = arith.mulf %247, %251 : vector<8x1x8xf32>
    "tpu.trace_start"() <{level = 10 : i32, message = "bqk,bkd->bqd"}> : () -> ()
    %cst_78 = arith.constant dense<0.000000e+00> : vector<8x1x8xf32>
    %253 = tpu.matmul %252, %4, %cst_78 {dimension_numbers = #tpu.dot_dimension_numbers<[2], [1], [1], [2], [0, 0, 0, 1, 1, 2], [0], [0]>} : vector<8x1x8xf32>, vector<8x8x8xf32>, vector<8x1x8xf32> -> vector<8x1x8xf32>
    "tpu.trace_stop"() : () -> ()
    %254 = vector.shape_cast %253 : vector<8x1x8xf32> to vector<8x8xf32>
    %255 = arith.index_cast %c3_i32 : i32 to index
    %c0_79 = arith.constant 0 : index
    %c0_80 = arith.constant 0 : index
    %256 = vector.load %arg3[%255, %c0_79, %c0_80] : memref<8x8x8xf32, #tpu.memory_space<vmem>>, vector<1x8x8xf32>
    %257 = vector.shape_cast %256 : vector<1x8x8xf32> to vector<8x8xf32>
    %cst_81 = arith.constant dense<0.000000e+00> : vector<8x8xf32>
    %258 = tpu.matmul %254, %7, %cst_81 {dimension_numbers = #tpu.dot_dimension_numbers<[1], [0], [0], [1], [0, 0, 1, 1], [], []>} : vector<8x8xf32>, vector<8x8xf32>, vector<8x8xf32> -> vector<8x8xf32>
    %259 = arith.addf %257, %258 : vector<8x8xf32>
    %260 = arith.negf %259 : vector<8x8xf32>
    %261 = math.exp %260 : vector<8x8xf32>
    %cst_82 = arith.constant 1.000000e+00 : f32
    %262 = vector.broadcast %cst_82 : f32 to vector<8x8xf32>
    %263 = arith.addf %262, %261 : vector<8x8xf32>
    %264 = arith.divf %262, %263 : vector<8x8xf32>
    %265 = arith.mulf %264, %254 : vector<8x8xf32>
    %cst_83 = arith.constant dense<0.000000e+00> : vector<8x24xf32>
    %266 = tpu.matmul %265, %8, %cst_83 {dimension_numbers = #tpu.dot_dimension_numbers<[1], [0], [0], [1], [0, 0, 1, 1], [], []>} : vector<8x8xf32>, vector<8x24xf32>, vector<8x24xf32> -> vector<8x24xf32>
    %267 = vector.broadcast %9 : vector<1x24xf32> to vector<8x24xf32>
    %268 = arith.addf %266, %267 : vector<8x24xf32>
    %269 = vector.extract_strided_slice %268 {offsets = [0, 0], sizes = [8, 8], strides = [1, 1]} : vector<8x24xf32> to vector<8x8xf32>
    %270 = arith.addf %269, %229 : vector<8x8xf32>
    %271 = arith.negf %270 : vector<8x8xf32>
    %272 = math.exp %271 : vector<8x8xf32>
    %cst_84 = arith.constant 1.000000e+00 : f32
    %273 = vector.broadcast %cst_84 : f32 to vector<8x8xf32>
    %274 = arith.addf %273, %272 : vector<8x8xf32>
    %275 = arith.divf %273, %274 : vector<8x8xf32>
    %276 = vector.extract_strided_slice %268 {offsets = [0, 8], sizes = [8, 8], strides = [1, 1]} : vector<8x24xf32> to vector<8x8xf32>
    %277 = arith.addf %276, %230 : vector<8x8xf32>
    %278 = arith.negf %277 : vector<8x8xf32>
    %279 = math.exp %278 : vector<8x8xf32>
    %cst_85 = arith.constant 1.000000e+00 : f32
    %280 = vector.broadcast %cst_85 : f32 to vector<8x8xf32>
    %281 = arith.addf %280, %279 : vector<8x8xf32>
    %282 = arith.divf %280, %281 : vector<8x8xf32>
    %283 = vector.extract_strided_slice %268 {offsets = [0, 16], sizes = [8, 8], strides = [1, 1]} : vector<8x24xf32> to vector<8x8xf32>
    %284 = arith.mulf %275, %231 : vector<8x8xf32>
    %285 = arith.addf %283, %284 : vector<8x8xf32>
    %286 = math.tanh %285 : vector<8x8xf32>
    %cst_86 = arith.constant 1.000000e+00 : f32
    %287 = vector.broadcast %cst_86 : f32 to vector<8x8xf32>
    %288 = arith.subf %287, %282 : vector<8x8xf32>
    %289 = arith.mulf %288, %286 : vector<8x8xf32>
    %290 = arith.mulf %282, %220 : vector<8x8xf32>
    %291 = arith.addf %289, %290 : vector<8x8xf32>
    %292 = arith.index_cast %c3_i32 : i32 to index
    %c0_87 = arith.constant 0 : index
    %c0_88 = arith.constant 0 : index
    %293 = vector.load %arg13[%292, %c0_87, %c0_88] : memref<8x8x8xf32, #tpu.memory_space<vmem>>, vector<1x8x8xf32>
    %294 = vector.shape_cast %293 : vector<1x8x8xf32> to vector<8x8xf32>
    %295 = vector.shape_cast %291 : vector<8x8xf32> to vector<1x8x8xf32>
    tpu.vector_store %arg13[%292, %c0_87, %c0_88], %295 {strides = array<i32>} : memref<8x8x8xf32, #tpu.memory_space<vmem>>, vector<1x8x8xf32>,
    %c4_i32 = arith.constant 4 : i32
    %cst_89 = arith.constant dense<0.000000e+00> : vector<8x32xf32>
    %296 = tpu.matmul %291, %6, %cst_89 {dimension_numbers = #tpu.dot_dimension_numbers<[1], [0], [0], [1], [0, 0, 1, 1], [], []>} : vector<8x8xf32>, vector<8x32xf32>, vector<8x32xf32> -> vector<8x32xf32>
    %297 = vector.broadcast %10 : vector<1x32xf32> to vector<8x32xf32>
    %298 = arith.addf %296, %297 : vector<8x32xf32>
    %299 = vector.extract_strided_slice %298 {offsets = [0, 0], sizes = [8, 8], strides = [1, 1]} : vector<8x32xf32> to vector<8x8xf32>
    %300 = vector.extract_strided_slice %298 {offsets = [0, 8], sizes = [8, 8], strides = [1, 1]} : vector<8x32xf32> to vector<8x8xf32>
    %301 = vector.extract_strided_slice %298 {offsets = [0, 16], sizes = [8, 8], strides = [1, 1]} : vector<8x32xf32> to vector<8x8xf32>
    %302 = vector.extract_strided_slice %298 {offsets = [0, 24], sizes = [8, 8], strides = [1, 1]} : vector<8x32xf32> to vector<8x8xf32>
    %303 = arith.index_cast %c4_i32 : i32 to index
    %c0_90 = arith.constant 0 : index
    %c0_91 = arith.constant 0 : index
    %304 = vector.load %arg2[%303, %c0_90, %c0_91] : memref<8x8x8xf32, #tpu.memory_space<vmem>>, vector<1x8x8xf32>
    %305 = vector.shape_cast %304 : vector<1x8x8xf32> to vector<8x8xf32>
    %306 = vector.shape_cast %305 : vector<8x8xf32> to vector<8x1x8xf32>
    %307 = vector.broadcast %306 : vector<8x1x8xf32> to vector<8x8x8xf32>
    %308 = arith.addf %307, %3 : vector<8x8x8xf32>
    %309 = vector.shape_cast %299 : vector<8x8xf32> to vector<8x1x8xf32>
    %310 = vector.broadcast %309 : vector<8x1x8xf32> to vector<8x8x8xf32>
    %311 = arith.addf %308, %310 : vector<8x8x8xf32>
    %312 = math.tanh %311 : vector<8x8x8xf32>
    "tpu.trace_start"() <{level = 10 : i32, message = "bqh,bkh->bqk"}> : () -> ()
    %cst_92 = arith.constant dense<0.000000e+00> : vector<8x1x8xf32>
    %313 = tpu.matmul %5, %312, %cst_92 {dimension_numbers = #tpu.dot_dimension_numbers<[2], [2], [1], [1], [0, 0, 0, 1, 1, 1], [0], [0]>} : vector<8x1x8xf32>, vector<8x8x8xf32>, vector<8x1x8xf32> -> vector<8x1x8xf32>
    "tpu.trace_stop"() : () -> ()
    %cst_93 = arith.constant dense<0xFF800000> : vector<8x1xf32>
    %314 = vector.multi_reduction <maximumf>, %313, %cst_93 [2] : vector<8x1x8xf32> to vector<8x1xf32>
    %315 = vector.shape_cast %314 : vector<8x1xf32> to vector<8x1x1xf32>
    %316 = vector.broadcast %315 : vector<8x1x1xf32> to vector<8x1x8xf32>
    %317 = arith.subf %313, %316 : vector<8x1x8xf32>
    %318 = math.exp %317 : vector<8x1x8xf32>
    %cst_94 = arith.constant dense<0.000000e+00> : vector<8x1xf32>
    %319 = vector.multi_reduction <add>, %318, %cst_94 [2] : vector<8x1x8xf32> to vector<8x1xf32>
    %320 = vector.shape_cast %319 : vector<8x1xf32> to vector<8x1x1xf32>
    %321 = tpu.reciprocal %320 {approx = true} : vector<8x1x1xf32> -> vector<8x1x1xf32>
    %322 = vector.broadcast %321 : vector<8x1x1xf32> to vector<8x1x8xf32>
    %323 = arith.mulf %318, %322 : vector<8x1x8xf32>
    "tpu.trace_start"() <{level = 10 : i32, message = "bqk,bkd->bqd"}> : () -> ()
    %cst_95 = arith.constant dense<0.000000e+00> : vector<8x1x8xf32>
    %324 = tpu.matmul %323, %4, %cst_95 {dimension_numbers = #tpu.dot_dimension_numbers<[2], [1], [1], [2], [0, 0, 0, 1, 1, 2], [0], [0]>} : vector<8x1x8xf32>, vector<8x8x8xf32>, vector<8x1x8xf32> -> vector<8x1x8xf32>
    "tpu.trace_stop"() : () -> ()
    %325 = vector.shape_cast %324 : vector<8x1x8xf32> to vector<8x8xf32>
    %326 = arith.index_cast %c4_i32 : i32 to index
    %c0_96 = arith.constant 0 : index
    %c0_97 = arith.constant 0 : index
    %327 = vector.load %arg3[%326, %c0_96, %c0_97] : memref<8x8x8xf32, #tpu.memory_space<vmem>>, vector<1x8x8xf32>
    %328 = vector.shape_cast %327 : vector<1x8x8xf32> to vector<8x8xf32>
    %cst_98 = arith.constant dense<0.000000e+00> : vector<8x8xf32>
    %329 = tpu.matmul %325, %7, %cst_98 {dimension_numbers = #tpu.dot_dimension_numbers<[1], [0], [0], [1], [0, 0, 1, 1], [], []>} : vector<8x8xf32>, vector<8x8xf32>, vector<8x8xf32> -> vector<8x8xf32>
    %330 = arith.addf %328, %329 : vector<8x8xf32>
    %331 = arith.negf %330 : vector<8x8xf32>
    %332 = math.exp %331 : vector<8x8xf32>
    %cst_99 = arith.constant 1.000000e+00 : f32
    %333 = vector.broadcast %cst_99 : f32 to vector<8x8xf32>
    %334 = arith.addf %333, %332 : vector<8x8xf32>
    %335 = arith.divf %333, %334 : vector<8x8xf32>
    %336 = arith.mulf %335, %325 : vector<8x8xf32>
    %cst_100 = arith.constant dense<0.000000e+00> : vector<8x24xf32>
    %337 = tpu.matmul %336, %8, %cst_100 {dimension_numbers = #tpu.dot_dimension_numbers<[1], [0], [0], [1], [0, 0, 1, 1], [], []>} : vector<8x8xf32>, vector<8x24xf32>, vector<8x24xf32> -> vector<8x24xf32>
    %338 = vector.broadcast %9 : vector<1x24xf32> to vector<8x24xf32>
    %339 = arith.addf %337, %338 : vector<8x24xf32>
    %340 = vector.extract_strided_slice %339 {offsets = [0, 0], sizes = [8, 8], strides = [1, 1]} : vector<8x24xf32> to vector<8x8xf32>
    %341 = arith.addf %340, %300 : vector<8x8xf32>
    %342 = arith.negf %341 : vector<8x8xf32>
    %343 = math.exp %342 : vector<8x8xf32>
    %cst_101 = arith.constant 1.000000e+00 : f32
    %344 = vector.broadcast %cst_101 : f32 to vector<8x8xf32>
    %345 = arith.addf %344, %343 : vector<8x8xf32>
    %346 = arith.divf %344, %345 : vector<8x8xf32>
    %347 = vector.extract_strided_slice %339 {offsets = [0, 8], sizes = [8, 8], strides = [1, 1]} : vector<8x24xf32> to vector<8x8xf32>
    %348 = arith.addf %347, %301 : vector<8x8xf32>
    %349 = arith.negf %348 : vector<8x8xf32>
    %350 = math.exp %349 : vector<8x8xf32>
    %cst_102 = arith.constant 1.000000e+00 : f32
    %351 = vector.broadcast %cst_102 : f32 to vector<8x8xf32>
    %352 = arith.addf %351, %350 : vector<8x8xf32>
    %353 = arith.divf %351, %352 : vector<8x8xf32>
    %354 = vector.extract_strided_slice %339 {offsets = [0, 16], sizes = [8, 8], strides = [1, 1]} : vector<8x24xf32> to vector<8x8xf32>
    %355 = arith.mulf %346, %302 : vector<8x8xf32>
    %356 = arith.addf %354, %355 : vector<8x8xf32>
    %357 = math.tanh %356 : vector<8x8xf32>
    %cst_103 = arith.constant 1.000000e+00 : f32
    %358 = vector.broadcast %cst_103 : f32 to vector<8x8xf32>
    %359 = arith.subf %358, %353 : vector<8x8xf32>
    %360 = arith.mulf %359, %357 : vector<8x8xf32>
    %361 = arith.mulf %353, %291 : vector<8x8xf32>
    %362 = arith.addf %360, %361 : vector<8x8xf32>
    %363 = arith.index_cast %c4_i32 : i32 to index
    %c0_104 = arith.constant 0 : index
    %c0_105 = arith.constant 0 : index
    %364 = vector.load %arg13[%363, %c0_104, %c0_105] : memref<8x8x8xf32, #tpu.memory_space<vmem>>, vector<1x8x8xf32>
    %365 = vector.shape_cast %364 : vector<1x8x8xf32> to vector<8x8xf32>
    %366 = vector.shape_cast %362 : vector<8x8xf32> to vector<1x8x8xf32>
    tpu.vector_store %arg13[%363, %c0_104, %c0_105], %366 {strides = array<i32>} : memref<8x8x8xf32, #tpu.memory_space<vmem>>, vector<1x8x8xf32>,
    %c5_i32 = arith.constant 5 : i32
    %cst_106 = arith.constant dense<0.000000e+00> : vector<8x32xf32>
    %367 = tpu.matmul %362, %6, %cst_106 {dimension_numbers = #tpu.dot_dimension_numbers<[1], [0], [0], [1], [0, 0, 1, 1], [], []>} : vector<8x8xf32>, vector<8x32xf32>, vector<8x32xf32> -> vector<8x32xf32>
    %368 = vector.broadcast %10 : vector<1x32xf32> to vector<8x32xf32>
    %369 = arith.addf %367, %368 : vector<8x32xf32>
    %370 = vector.extract_strided_slice %369 {offsets = [0, 0], sizes = [8, 8], strides = [1, 1]} : vector<8x32xf32> to vector<8x8xf32>
    %371 = vector.extract_strided_slice %369 {offsets = [0, 8], sizes = [8, 8], strides = [1, 1]} : vector<8x32xf32> to vector<8x8xf32>
    %372 = vector.extract_strided_slice %369 {offsets = [0, 16], sizes = [8, 8], strides = [1, 1]} : vector<8x32xf32> to vector<8x8xf32>
    %373 = vector.extract_strided_slice %369 {offsets = [0, 24], sizes = [8, 8], strides = [1, 1]} : vector<8x32xf32> to vector<8x8xf32>
    %374 = arith.index_cast %c5_i32 : i32 to index
    %c0_107 = arith.constant 0 : index
    %c0_108 = arith.constant 0 : index
    %375 = vector.load %arg2[%374, %c0_107, %c0_108] : memref<8x8x8xf32, #tpu.memory_space<vmem>>, vector<1x8x8xf32>
    %376 = vector.shape_cast %375 : vector<1x8x8xf32> to vector<8x8xf32>
    %377 = vector.shape_cast %376 : vector<8x8xf32> to vector<8x1x8xf32>
    %378 = vector.broadcast %377 : vector<8x1x8xf32> to vector<8x8x8xf32>
    %379 = arith.addf %378, %3 : vector<8x8x8xf32>
    %380 = vector.shape_cast %370 : vector<8x8xf32> to vector<8x1x8xf32>
    %381 = vector.broadcast %380 : vector<8x1x8xf32> to vector<8x8x8xf32>
    %382 = arith.addf %379, %381 : vector<8x8x8xf32>
    %383 = math.tanh %382 : vector<8x8x8xf32>
    "tpu.trace_start"() <{level = 10 : i32, message = "bqh,bkh->bqk"}> : () -> ()
    %cst_109 = arith.constant dense<0.000000e+00> : vector<8x1x8xf32>
    %384 = tpu.matmul %5, %383, %cst_109 {dimension_numbers = #tpu.dot_dimension_numbers<[2], [2], [1], [1], [0, 0, 0, 1, 1, 1], [0], [0]>} : vector<8x1x8xf32>, vector<8x8x8xf32>, vector<8x1x8xf32> -> vector<8x1x8xf32>
    "tpu.trace_stop"() : () -> ()
    %cst_110 = arith.constant dense<0xFF800000> : vector<8x1xf32>
    %385 = vector.multi_reduction <maximumf>, %384, %cst_110 [2] : vector<8x1x8xf32> to vector<8x1xf32>
    %386 = vector.shape_cast %385 : vector<8x1xf32> to vector<8x1x1xf32>
    %387 = vector.broadcast %386 : vector<8x1x1xf32> to vector<8x1x8xf32>
    %388 = arith.subf %384, %387 : vector<8x1x8xf32>
    %389 = math.exp %388 : vector<8x1x8xf32>
    %cst_111 = arith.constant dense<0.000000e+00> : vector<8x1xf32>
    %390 = vector.multi_reduction <add>, %389, %cst_111 [2] : vector<8x1x8xf32> to vector<8x1xf32>
    %391 = vector.shape_cast %390 : vector<8x1xf32> to vector<8x1x1xf32>
    %392 = tpu.reciprocal %391 {approx = true} : vector<8x1x1xf32> -> vector<8x1x1xf32>
    %393 = vector.broadcast %392 : vector<8x1x1xf32> to vector<8x1x8xf32>
    %394 = arith.mulf %389, %393 : vector<8x1x8xf32>
    "tpu.trace_start"() <{level = 10 : i32, message = "bqk,bkd->bqd"}> : () -> ()
    %cst_112 = arith.constant dense<0.000000e+00> : vector<8x1x8xf32>
    %395 = tpu.matmul %394, %4, %cst_112 {dimension_numbers = #tpu.dot_dimension_numbers<[2], [1], [1], [2], [0, 0, 0, 1, 1, 2], [0], [0]>} : vector<8x1x8xf32>, vector<8x8x8xf32>, vector<8x1x8xf32> -> vector<8x1x8xf32>
    "tpu.trace_stop"() : () -> ()
    %396 = vector.shape_cast %395 : vector<8x1x8xf32> to vector<8x8xf32>
    %397 = arith.index_cast %c5_i32 : i32 to index
    %c0_113 = arith.constant 0 : index
    %c0_114 = arith.constant 0 : index
    %398 = vector.load %arg3[%397, %c0_113, %c0_114] : memref<8x8x8xf32, #tpu.memory_space<vmem>>, vector<1x8x8xf32>
    %399 = vector.shape_cast %398 : vector<1x8x8xf32> to vector<8x8xf32>
    %cst_115 = arith.constant dense<0.000000e+00> : vector<8x8xf32>
    %400 = tpu.matmul %396, %7, %cst_115 {dimension_numbers = #tpu.dot_dimension_numbers<[1], [0], [0], [1], [0, 0, 1, 1], [], []>} : vector<8x8xf32>, vector<8x8xf32>, vector<8x8xf32> -> vector<8x8xf32>
    %401 = arith.addf %399, %400 : vector<8x8xf32>
    %402 = arith.negf %401 : vector<8x8xf32>
    %403 = math.exp %402 : vector<8x8xf32>
    %cst_116 = arith.constant 1.000000e+00 : f32
    %404 = vector.broadcast %cst_116 : f32 to vector<8x8xf32>
    %405 = arith.addf %404, %403 : vector<8x8xf32>
    %406 = arith.divf %404, %405 : vector<8x8xf32>
    %407 = arith.mulf %406, %396 : vector<8x8xf32>
    %cst_117 = arith.constant dense<0.000000e+00> : vector<8x24xf32>
    %408 = tpu.matmul %407, %8, %cst_117 {dimension_numbers = #tpu.dot_dimension_numbers<[1], [0], [0], [1], [0, 0, 1, 1], [], []>} : vector<8x8xf32>, vector<8x24xf32>, vector<8x24xf32> -> vector<8x24xf32>
    %409 = vector.broadcast %9 : vector<1x24xf32> to vector<8x24xf32>
    %410 = arith.addf %408, %409 : vector<8x24xf32>
    %411 = vector.extract_strided_slice %410 {offsets = [0, 0], sizes = [8, 8], strides = [1, 1]} : vector<8x24xf32> to vector<8x8xf32>
    %412 = arith.addf %411, %371 : vector<8x8xf32>
    %413 = arith.negf %412 : vector<8x8xf32>
    %414 = math.exp %413 : vector<8x8xf32>
    %cst_118 = arith.constant 1.000000e+00 : f32
    %415 = vector.broadcast %cst_118 : f32 to vector<8x8xf32>
    %416 = arith.addf %415, %414 : vector<8x8xf32>
    %417 = arith.divf %415, %416 : vector<8x8xf32>
    %418 = vector.extract_strided_slice %410 {offsets = [0, 8], sizes = [8, 8], strides = [1, 1]} : vector<8x24xf32> to vector<8x8xf32>
    %419 = arith.addf %418, %372 : vector<8x8xf32>
    %420 = arith.negf %419 : vector<8x8xf32>
    %421 = math.exp %420 : vector<8x8xf32>
    %cst_119 = arith.constant 1.000000e+00 : f32
    %422 = vector.broadcast %cst_119 : f32 to vector<8x8xf32>
    %423 = arith.addf %422, %421 : vector<8x8xf32>
    %424 = arith.divf %422, %423 : vector<8x8xf32>
    %425 = vector.extract_strided_slice %410 {offsets = [0, 16], sizes = [8, 8], strides = [1, 1]} : vector<8x24xf32> to vector<8x8xf32>
    %426 = arith.mulf %417, %373 : vector<8x8xf32>
    %427 = arith.addf %425, %426 : vector<8x8xf32>
    %428 = math.tanh %427 : vector<8x8xf32>
    %cst_120 = arith.constant 1.000000e+00 : f32
    %429 = vector.broadcast %cst_120 : f32 to vector<8x8xf32>
    %430 = arith.subf %429, %424 : vector<8x8xf32>
    %431 = arith.mulf %430, %428 : vector<8x8xf32>
    %432 = arith.mulf %424, %362 : vector<8x8xf32>
    %433 = arith.addf %431, %432 : vector<8x8xf32>
    %434 = arith.index_cast %c5_i32 : i32 to index
    %c0_121 = arith.constant 0 : index
    %c0_122 = arith.constant 0 : index
    %435 = vector.load %arg13[%434, %c0_121, %c0_122] : memref<8x8x8xf32, #tpu.memory_space<vmem>>, vector<1x8x8xf32>
    %436 = vector.shape_cast %435 : vector<1x8x8xf32> to vector<8x8xf32>
    %437 = vector.shape_cast %433 : vector<8x8xf32> to vector<1x8x8xf32>
    tpu.vector_store %arg13[%434, %c0_121, %c0_122], %437 {strides = array<i32>} : memref<8x8x8xf32, #tpu.memory_space<vmem>>, vector<1x8x8xf32>,
    %c6_i32 = arith.constant 6 : i32
    %cst_123 = arith.constant dense<0.000000e+00> : vector<8x32xf32>
    %438 = tpu.matmul %433, %6, %cst_123 {dimension_numbers = #tpu.dot_dimension_numbers<[1], [0], [0], [1], [0, 0, 1, 1], [], []>} : vector<8x8xf32>, vector<8x32xf32>, vector<8x32xf32> -> vector<8x32xf32>
    %439 = vector.broadcast %10 : vector<1x32xf32> to vector<8x32xf32>
    %440 = arith.addf %438, %439 : vector<8x32xf32>
    %441 = vector.extract_strided_slice %440 {offsets = [0, 0], sizes = [8, 8], strides = [1, 1]} : vector<8x32xf32> to vector<8x8xf32>
    %442 = vector.extract_strided_slice %440 {offsets = [0, 8], sizes = [8, 8], strides = [1, 1]} : vector<8x32xf32> to vector<8x8xf32>
    %443 = vector.extract_strided_slice %440 {offsets = [0, 16], sizes = [8, 8], strides = [1, 1]} : vector<8x32xf32> to vector<8x8xf32>
    %444 = vector.extract_strided_slice %440 {offsets = [0, 24], sizes = [8, 8], strides = [1, 1]} : vector<8x32xf32> to vector<8x8xf32>
    %445 = arith.index_cast %c6_i32 : i32 to index
    %c0_124 = arith.constant 0 : index
    %c0_125 = arith.constant 0 : index
    %446 = vector.load %arg2[%445, %c0_124, %c0_125] : memref<8x8x8xf32, #tpu.memory_space<vmem>>, vector<1x8x8xf32>
    %447 = vector.shape_cast %446 : vector<1x8x8xf32> to vector<8x8xf32>
    %448 = vector.shape_cast %447 : vector<8x8xf32> to vector<8x1x8xf32>
    %449 = vector.broadcast %448 : vector<8x1x8xf32> to vector<8x8x8xf32>
    %450 = arith.addf %449, %3 : vector<8x8x8xf32>
    %451 = vector.shape_cast %441 : vector<8x8xf32> to vector<8x1x8xf32>
    %452 = vector.broadcast %451 : vector<8x1x8xf32> to vector<8x8x8xf32>
    %453 = arith.addf %450, %452 : vector<8x8x8xf32>
    %454 = math.tanh %453 : vector<8x8x8xf32>
    "tpu.trace_start"() <{level = 10 : i32, message = "bqh,bkh->bqk"}> : () -> ()
    %cst_126 = arith.constant dense<0.000000e+00> : vector<8x1x8xf32>
    %455 = tpu.matmul %5, %454, %cst_126 {dimension_numbers = #tpu.dot_dimension_numbers<[2], [2], [1], [1], [0, 0, 0, 1, 1, 1], [0], [0]>} : vector<8x1x8xf32>, vector<8x8x8xf32>, vector<8x1x8xf32> -> vector<8x1x8xf32>
    "tpu.trace_stop"() : () -> ()
    %cst_127 = arith.constant dense<0xFF800000> : vector<8x1xf32>
    %456 = vector.multi_reduction <maximumf>, %455, %cst_127 [2] : vector<8x1x8xf32> to vector<8x1xf32>
    %457 = vector.shape_cast %456 : vector<8x1xf32> to vector<8x1x1xf32>
    %458 = vector.broadcast %457 : vector<8x1x1xf32> to vector<8x1x8xf32>
    %459 = arith.subf %455, %458 : vector<8x1x8xf32>
    %460 = math.exp %459 : vector<8x1x8xf32>
    %cst_128 = arith.constant dense<0.000000e+00> : vector<8x1xf32>
    %461 = vector.multi_reduction <add>, %460, %cst_128 [2] : vector<8x1x8xf32> to vector<8x1xf32>
    %462 = vector.shape_cast %461 : vector<8x1xf32> to vector<8x1x1xf32>
    %463 = tpu.reciprocal %462 {approx = true} : vector<8x1x1xf32> -> vector<8x1x1xf32>
    %464 = vector.broadcast %463 : vector<8x1x1xf32> to vector<8x1x8xf32>
    %465 = arith.mulf %460, %464 : vector<8x1x8xf32>
    "tpu.trace_start"() <{level = 10 : i32, message = "bqk,bkd->bqd"}> : () -> ()
    %cst_129 = arith.constant dense<0.000000e+00> : vector<8x1x8xf32>
    %466 = tpu.matmul %465, %4, %cst_129 {dimension_numbers = #tpu.dot_dimension_numbers<[2], [1], [1], [2], [0, 0, 0, 1, 1, 2], [0], [0]>} : vector<8x1x8xf32>, vector<8x8x8xf32>, vector<8x1x8xf32> -> vector<8x1x8xf32>
    "tpu.trace_stop"() : () -> ()
    %467 = vector.shape_cast %466 : vector<8x1x8xf32> to vector<8x8xf32>
    %468 = arith.index_cast %c6_i32 : i32 to index
    %c0_130 = arith.constant 0 : index
    %c0_131 = arith.constant 0 : index
    %469 = vector.load %arg3[%468, %c0_130, %c0_131] : memref<8x8x8xf32, #tpu.memory_space<vmem>>, vector<1x8x8xf32>
    %470 = vector.shape_cast %469 : vector<1x8x8xf32> to vector<8x8xf32>
    %cst_132 = arith.constant dense<0.000000e+00> : vector<8x8xf32>
    %471 = tpu.matmul %467, %7, %cst_132 {dimension_numbers = #tpu.dot_dimension_numbers<[1], [0], [0], [1], [0, 0, 1, 1], [], []>} : vector<8x8xf32>, vector<8x8xf32>, vector<8x8xf32> -> vector<8x8xf32>
    %472 = arith.addf %470, %471 : vector<8x8xf32>
    %473 = arith.negf %472 : vector<8x8xf32>
    %474 = math.exp %473 : vector<8x8xf32>
    %cst_133 = arith.constant 1.000000e+00 : f32
    %475 = vector.broadcast %cst_133 : f32 to vector<8x8xf32>
    %476 = arith.addf %475, %474 : vector<8x8xf32>
    %477 = arith.divf %475, %476 : vector<8x8xf32>
    %478 = arith.mulf %477, %467 : vector<8x8xf32>
    %cst_134 = arith.constant dense<0.000000e+00> : vector<8x24xf32>
    %479 = tpu.matmul %478, %8, %cst_134 {dimension_numbers = #tpu.dot_dimension_numbers<[1], [0], [0], [1], [0, 0, 1, 1], [], []>} : vector<8x8xf32>, vector<8x24xf32>, vector<8x24xf32> -> vector<8x24xf32>
    %480 = vector.broadcast %9 : vector<1x24xf32> to vector<8x24xf32>
    %481 = arith.addf %479, %480 : vector<8x24xf32>
    %482 = vector.extract_strided_slice %481 {offsets = [0, 0], sizes = [8, 8], strides = [1, 1]} : vector<8x24xf32> to vector<8x8xf32>
    %483 = arith.addf %482, %442 : vector<8x8xf32>
    %484 = arith.negf %483 : vector<8x8xf32>
    %485 = math.exp %484 : vector<8x8xf32>
    %cst_135 = arith.constant 1.000000e+00 : f32
    %486 = vector.broadcast %cst_135 : f32 to vector<8x8xf32>
    %487 = arith.addf %486, %485 : vector<8x8xf32>
    %488 = arith.divf %486, %487 : vector<8x8xf32>
    %489 = vector.extract_strided_slice %481 {offsets = [0, 8], sizes = [8, 8], strides = [1, 1]} : vector<8x24xf32> to vector<8x8xf32>
    %490 = arith.addf %489, %443 : vector<8x8xf32>
    %491 = arith.negf %490 : vector<8x8xf32>
    %492 = math.exp %491 : vector<8x8xf32>
    %cst_136 = arith.constant 1.000000e+00 : f32
    %493 = vector.broadcast %cst_136 : f32 to vector<8x8xf32>
    %494 = arith.addf %493, %492 : vector<8x8xf32>
    %495 = arith.divf %493, %494 : vector<8x8xf32>
    %496 = vector.extract_strided_slice %481 {offsets = [0, 16], sizes = [8, 8], strides = [1, 1]} : vector<8x24xf32> to vector<8x8xf32>
    %497 = arith.mulf %488, %444 : vector<8x8xf32>
    %498 = arith.addf %496, %497 : vector<8x8xf32>
    %499 = math.tanh %498 : vector<8x8xf32>
    %cst_137 = arith.constant 1.000000e+00 : f32
    %500 = vector.broadcast %cst_137 : f32 to vector<8x8xf32>
    %501 = arith.subf %500, %495 : vector<8x8xf32>
    %502 = arith.mulf %501, %499 : vector<8x8xf32>
    %503 = arith.mulf %495, %433 : vector<8x8xf32>
    %504 = arith.addf %502, %503 : vector<8x8xf32>
    %505 = arith.index_cast %c6_i32 : i32 to index
    %c0_138 = arith.constant 0 : index
    %c0_139 = arith.constant 0 : index
    %506 = vector.load %arg13[%505, %c0_138, %c0_139] : memref<8x8x8xf32, #tpu.memory_space<vmem>>, vector<1x8x8xf32>
    %507 = vector.shape_cast %506 : vector<1x8x8xf32> to vector<8x8xf32>
    %508 = vector.shape_cast %504 : vector<8x8xf32> to vector<1x8x8xf32>
    tpu.vector_store %arg13[%505, %c0_138, %c0_139], %508 {strides = array<i32>} : memref<8x8x8xf32, #tpu.memory_space<vmem>>, vector<1x8x8xf32>,
    %c7_i32 = arith.constant 7 : i32
    %cst_140 = arith.constant dense<0.000000e+00> : vector<8x32xf32>
    %509 = tpu.matmul %504, %6, %cst_140 {dimension_numbers = #tpu.dot_dimension_numbers<[1], [0], [0], [1], [0, 0, 1, 1], [], []>} : vector<8x8xf32>, vector<8x32xf32>, vector<8x32xf32> -> vector<8x32xf32>
    %510 = vector.broadcast %10 : vector<1x32xf32> to vector<8x32xf32>
    %511 = arith.addf %509, %510 : vector<8x32xf32>
    %512 = vector.extract_strided_slice %511 {offsets = [0, 0], sizes = [8, 8], strides = [1, 1]} : vector<8x32xf32> to vector<8x8xf32>
    %513 = vector.extract_strided_slice %511 {offsets = [0, 8], sizes = [8, 8], strides = [1, 1]} : vector<8x32xf32> to vector<8x8xf32>
    %514 = vector.extract_strided_slice %511 {offsets = [0, 16], sizes = [8, 8], strides = [1, 1]} : vector<8x32xf32> to vector<8x8xf32>
    %515 = vector.extract_strided_slice %511 {offsets = [0, 24], sizes = [8, 8], strides = [1, 1]} : vector<8x32xf32> to vector<8x8xf32>
    %516 = arith.index_cast %c7_i32 : i32 to index
    %c0_141 = arith.constant 0 : index
    %c0_142 = arith.constant 0 : index
    %517 = vector.load %arg2[%516, %c0_141, %c0_142] : memref<8x8x8xf32, #tpu.memory_space<vmem>>, vector<1x8x8xf32>
    %518 = vector.shape_cast %517 : vector<1x8x8xf32> to vector<8x8xf32>
    %519 = vector.shape_cast %518 : vector<8x8xf32> to vector<8x1x8xf32>
    %520 = vector.broadcast %519 : vector<8x1x8xf32> to vector<8x8x8xf32>
    %521 = arith.addf %520, %3 : vector<8x8x8xf32>
    %522 = vector.shape_cast %512 : vector<8x8xf32> to vector<8x1x8xf32>
    %523 = vector.broadcast %522 : vector<8x1x8xf32> to vector<8x8x8xf32>
    %524 = arith.addf %521, %523 : vector<8x8x8xf32>
    %525 = math.tanh %524 : vector<8x8x8xf32>
    "tpu.trace_start"() <{level = 10 : i32, message = "bqh,bkh->bqk"}> : () -> ()
    %cst_143 = arith.constant dense<0.000000e+00> : vector<8x1x8xf32>
    %526 = tpu.matmul %5, %525, %cst_143 {dimension_numbers = #tpu.dot_dimension_numbers<[2], [2], [1], [1], [0, 0, 0, 1, 1, 1], [0], [0]>} : vector<8x1x8xf32>, vector<8x8x8xf32>, vector<8x1x8xf32> -> vector<8x1x8xf32>
    "tpu.trace_stop"() : () -> ()
    %cst_144 = arith.constant dense<0xFF800000> : vector<8x1xf32>
    %527 = vector.multi_reduction <maximumf>, %526, %cst_144 [2] : vector<8x1x8xf32> to vector<8x1xf32>
    %528 = vector.shape_cast %527 : vector<8x1xf32> to vector<8x1x1xf32>
    %529 = vector.broadcast %528 : vector<8x1x1xf32> to vector<8x1x8xf32>
    %530 = arith.subf %526, %529 : vector<8x1x8xf32>
    %531 = math.exp %530 : vector<8x1x8xf32>
    %cst_145 = arith.constant dense<0.000000e+00> : vector<8x1xf32>
    %532 = vector.multi_reduction <add>, %531, %cst_145 [2] : vector<8x1x8xf32> to vector<8x1xf32>
    %533 = vector.shape_cast %532 : vector<8x1xf32> to vector<8x1x1xf32>
    %534 = tpu.reciprocal %533 {approx = true} : vector<8x1x1xf32> -> vector<8x1x1xf32>
    %535 = vector.broadcast %534 : vector<8x1x1xf32> to vector<8x1x8xf32>
    %536 = arith.mulf %531, %535 : vector<8x1x8xf32>
    "tpu.trace_start"() <{level = 10 : i32, message = "bqk,bkd->bqd"}> : () -> ()
    %cst_146 = arith.constant dense<0.000000e+00> : vector<8x1x8xf32>
    %537 = tpu.matmul %536, %4, %cst_146 {dimension_numbers = #tpu.dot_dimension_numbers<[2], [1], [1], [2], [0, 0, 0, 1, 1, 2], [0], [0]>} : vector<8x1x8xf32>, vector<8x8x8xf32>, vector<8x1x8xf32> -> vector<8x1x8xf32>
    "tpu.trace_stop"() : () -> ()
    %538 = vector.shape_cast %537 : vector<8x1x8xf32> to vector<8x8xf32>
    %539 = arith.index_cast %c7_i32 : i32 to index
    %c0_147 = arith.constant 0 : index
    %c0_148 = arith.constant 0 : index
    %540 = vector.load %arg3[%539, %c0_147, %c0_148] : memref<8x8x8xf32, #tpu.memory_space<vmem>>, vector<1x8x8xf32>
    %541 = vector.shape_cast %540 : vector<1x8x8xf32> to vector<8x8xf32>
    %cst_149 = arith.constant dense<0.000000e+00> : vector<8x8xf32>
    %542 = tpu.matmul %538, %7, %cst_149 {dimension_numbers = #tpu.dot_dimension_numbers<[1], [0], [0], [1], [0, 0, 1, 1], [], []>} : vector<8x8xf32>, vector<8x8xf32>, vector<8x8xf32> -> vector<8x8xf32>
    %543 = arith.addf %541, %542 : vector<8x8xf32>
    %544 = arith.negf %543 : vector<8x8xf32>
    %545 = math.exp %544 : vector<8x8xf32>
    %cst_150 = arith.constant 1.000000e+00 : f32
    %546 = vector.broadcast %cst_150 : f32 to vector<8x8xf32>
    %547 = arith.addf %546, %545 : vector<8x8xf32>
    %548 = arith.divf %546, %547 : vector<8x8xf32>
    %549 = arith.mulf %548, %538 : vector<8x8xf32>
    %cst_151 = arith.constant dense<0.000000e+00> : vector<8x24xf32>
    %550 = tpu.matmul %549, %8, %cst_151 {dimension_numbers = #tpu.dot_dimension_numbers<[1], [0], [0], [1], [0, 0, 1, 1], [], []>} : vector<8x8xf32>, vector<8x24xf32>, vector<8x24xf32> -> vector<8x24xf32>
    %551 = vector.broadcast %9 : vector<1x24xf32> to vector<8x24xf32>
    %552 = arith.addf %550, %551 : vector<8x24xf32>
    %553 = vector.extract_strided_slice %552 {offsets = [0, 0], sizes = [8, 8], strides = [1, 1]} : vector<8x24xf32> to vector<8x8xf32>
    %554 = arith.addf %553, %513 : vector<8x8xf32>
    %555 = arith.negf %554 : vector<8x8xf32>
    %556 = math.exp %555 : vector<8x8xf32>
    %cst_152 = arith.constant 1.000000e+00 : f32
    %557 = vector.broadcast %cst_152 : f32 to vector<8x8xf32>
    %558 = arith.addf %557, %556 : vector<8x8xf32>
    %559 = arith.divf %557, %558 : vector<8x8xf32>
    %560 = vector.extract_strided_slice %552 {offsets = [0, 8], sizes = [8, 8], strides = [1, 1]} : vector<8x24xf32> to vector<8x8xf32>
    %561 = arith.addf %560, %514 : vector<8x8xf32>
    %562 = arith.negf %561 : vector<8x8xf32>
    %563 = math.exp %562 : vector<8x8xf32>
    %cst_153 = arith.constant 1.000000e+00 : f32
    %564 = vector.broadcast %cst_153 : f32 to vector<8x8xf32>
    %565 = arith.addf %564, %563 : vector<8x8xf32>
    %566 = arith.divf %564, %565 : vector<8x8xf32>
    %567 = vector.extract_strided_slice %552 {offsets = [0, 16], sizes = [8, 8], strides = [1, 1]} : vector<8x24xf32> to vector<8x8xf32>
    %568 = arith.mulf %559, %515 : vector<8x8xf32>
    %569 = arith.addf %567, %568 : vector<8x8xf32>
    %570 = math.tanh %569 : vector<8x8xf32>
    %cst_154 = arith.constant 1.000000e+00 : f32
    %571 = vector.broadcast %cst_154 : f32 to vector<8x8xf32>
    %572 = arith.subf %571, %566 : vector<8x8xf32>
    %573 = arith.mulf %572, %570 : vector<8x8xf32>
    %574 = arith.mulf %566, %504 : vector<8x8xf32>
    %575 = arith.addf %573, %574 : vector<8x8xf32>
    %576 = arith.index_cast %c7_i32 : i32 to index
    %c0_155 = arith.constant 0 : index
    %c0_156 = arith.constant 0 : index
    %577 = vector.load %arg13[%576, %c0_155, %c0_156] : memref<8x8x8xf32, #tpu.memory_space<vmem>>, vector<1x8x8xf32>
    %578 = vector.shape_cast %577 : vector<1x8x8xf32> to vector<8x8xf32>
    %579 = vector.shape_cast %575 : vector<8x8xf32> to vector<1x8x8xf32>
    tpu.vector_store %arg13[%576, %c0_155, %c0_156], %579 {strides = array<i32>} : memref<8x8x8xf32, #tpu.memory_space<vmem>>, vector<1x8x8xf32>,
    %c8_i32 = arith.constant 8 : i32
    %c0_157 = arith.constant 0 : index
    %c0_158 = arith.constant 0 : index
    %580 = vector.load %arg14[%c0_157, %c0_158] : memref<8x8xf32, #tpu.memory_space<vmem>>, vector<8x8xf32>
    tpu.vector_store %arg14[%c0_157, %c0_158], %575 {strides = array<i32>} : memref<8x8xf32, #tpu.memory_space<vmem>>, vector<8x8xf32>,
    return
  }
  func.func @transform_0(%arg0: i32, %arg1: i32) -> (i32, i32, i32) {
    %c0_i32 = arith.constant 0 : i32
    %c0_i32_0 = arith.constant 0 : i32
    return %arg1, %arg0, %c0_i32 : i32, i32, i32
  }
  func.func @transform_1(%arg0: i32, %arg1: i32) -> (i32, i32, i32) {
    %c0_i32 = arith.constant 0 : i32
    %c0_i32_0 = arith.constant 0 : i32
    return %arg1, %arg0, %c0_i32 : i32, i32, i32
  }
  func.func @transform_2(%arg0: i32, %arg1: i32) -> (i32, i32, i32) {
    %c0_i32 = arith.constant 0 : i32
    %c0_i32_0 = arith.constant 0 : i32
    %c0_i32_1 = arith.constant 0 : i32
    return %arg0, %c0_i32, %c0_i32_0 : i32, i32, i32
  }
  func.func @transform_3(%arg0: i32, %arg1: i32) -> (i32, i32, i32) {
    %c0_i32 = arith.constant 0 : i32
    %c0_i32_0 = arith.constant 0 : i32
    %c0_i32_1 = arith.constant 0 : i32
    return %arg0, %c0_i32, %c0_i32_0 : i32, i32, i32
  }
  func.func @transform_4(%arg0: i32, %arg1: i32) -> (i32, i32, i32) {
    %c0_i32 = arith.constant 0 : i32
    %c0_i32_0 = arith.constant 0 : i32
    %c0_i32_1 = arith.constant 0 : i32
    return %arg0, %c0_i32, %c0_i32_0 : i32, i32, i32
  }
  func.func @transform_5(%arg0: i32, %arg1: i32) -> (i32, i32) {
    %c0_i32 = arith.constant 0 : i32
    %c0_i32_0 = arith.constant 0 : i32
    %c0_i32_1 = arith.constant 0 : i32
    return %c0_i32, %c0_i32_0 : i32, i32
  }
  func.func @transform_6(%arg0: i32, %arg1: i32) -> (i32, i32) {
    %c0_i32 = arith.constant 0 : i32
    %c0_i32_0 = arith.constant 0 : i32
    %c0_i32_1 = arith.constant 0 : i32
    return %c0_i32, %c0_i32_0 : i32, i32
  }
  func.func @transform_7(%arg0: i32, %arg1: i32) -> (i32, i32) {
    %c0_i32 = arith.constant 0 : i32
    %c0_i32_0 = arith.constant 0 : i32
    %c0_i32_1 = arith.constant 0 : i32
    return %c0_i32, %c0_i32_0 : i32, i32
  }
  func.func @transform_8(%arg0: i32, %arg1: i32) -> (i32, i32) {
    %c0_i32 = arith.constant 0 : i32
    %c0_i32_0 = arith.constant 0 : i32
    %c0_i32_1 = arith.constant 0 : i32
    return %c0_i32, %c0_i32_0 : i32, i32
  }
  func.func @transform_9(%arg0: i32, %arg1: i32) -> (i32, i32) {
    %c0_i32 = arith.constant 0 : i32
    %c0_i32_0 = arith.constant 0 : i32
    %c0_i32_1 = arith.constant 0 : i32
    return %c0_i32, %c0_i32_0 : i32, i32
  }
  func.func @transform_10(%arg0: i32, %arg1: i32) -> (i32, i32) {
    %c0_i32 = arith.constant 0 : i32
    %c0_i32_0 = arith.constant 0 : i32
    return %arg0, %c0_i32 : i32, i32
  }
  func.func @transform_11(%arg0: i32, %arg1: i32) -> (i32, i32, i32) {
    %c0_i32 = arith.constant 0 : i32
    %c0_i32_0 = arith.constant 0 : i32
    return %arg1, %arg0, %c0_i32 : i32, i32, i32
  }
}

</mosaic_0001>

<bundles_post_ra>
// kernel: tpu_custom_call.1
= control target key start
LH: loop header
LB: loop body
LE: loop exit
PB: predicated region body
PF: predicated region fallthrough
CT: control target
= control target key end

     0   :  { %16 = vsyncpa [#allocation4], 0  ;;  %s18228_s0 = inlined_call_operand.hbm [shape: f32[8,8,8], index: 0, kind: input, shape index: {}]   ;;  %s18229_s1 = inlined_call_operand.hbm [shape: f32[8,8,8], index: 1, kind: input, shape index: {}]   ;;  %s18230_s2 = inlined_call_operand.hbm [shape: f32[8,8,8], index: 2, kind: input, shape index: {}]   ;;  %s18231_s3 = inlined_call_operand.hbm [shape: f32[8,8,8], index: 3, kind: input, shape index: {}]   ;;  %s18232_s4 = inlined_call_operand.vmem [shape: f32[8,1,8], index: 4, kind: input, shape index: {}]   ;;  %s18233_s5 = inlined_call_operand.vmem [shape: f32[8,32], index: 5, kind: input, shape index: {}]   ;;  %s18234_s6 = inlined_call_operand.hbm [shape: f32[8,8], index: 6, kind: input, shape index: {}]   ;;  %s18235_s7 = inlined_call_operand.vmem [shape: f32[8,24], index: 7, kind: input, shape index: {}]   ;;  %s18236_s8 = inlined_call_operand.vmem [shape: f32[1,24], index: 8, kind: input, shape index: {}]   ;;  %s18237_s9 = inlined_call_operand.vmem [shape: f32[1,32], index: 9, kind: input, shape index: {}]   ;;  %s18238_s10 = inlined_call_operand.vmem [shape: f32[8,8], index: 10, kind: input, shape index: {}]   ;;  %s18239_s11 = inlined_call_operand.hbm [shape: f32[8,8,8], index: 11, kind: output, shape index: {}]  }
   0x1   :  { %17 = vsyncpa [#allocation7], 0 }
   0x2   :  { %18 = vsyncpa [#allocation10], 0 }
   0x3   :  { %19 = vsyncpa [#allocation5], 0  ;;  %s16187_s17 = smov [#allocation6]   ;;  %s16188_s19 = smov [#allocation9]  }
   0x4   :  { %s37_s18 = sshll.u32 %s16187_s17, 4  ;;  %s61_s20 = sshll.u32 %s16188_s19, 4  ;;  %s38_s18 = int_to_ptr.vmem [resolvable:$true] %s37_s18  ;;  %s16261_s20 = int_to_ptr.vmem [resolvable:$true] %s61_s20 }
   0x5   :  { %s16047_s23 = scalar_lea.hbm %s18229_s1, 1024 }
   0x6   :  { %p16048_p0 = scmp.ne.s32.totalorder %s18229_s1, %s16047_s23  ;;  %p16051_p1 = scmp.lt.u32.totalorder %s16047_s23, %s18229_s1 }
   0x8   :  { %p16053_p2 = pnand %p16051_p1, %p16048_p0 }
   0xa   :  { %16056 = shalt.err (!%p16053_p2)
}
   0xb   :  { %s16057_s28 = scalar_lea.vmem %s38_s18, 1024  ;;  %p16062_p4 = scmp.lt.s32.totalorder %s38_s18, %s38_s18 }
   0xc   :  { %p16058_p3 = scmp.ne.s32.totalorder %s38_s18, %s16057_s28  ;;  %p16063_p5 = scmp.lt.s32.totalorder %s16057_s28, %s16057_s28 }
   0xe   :  { %p16064_p6 = por %p16063_p5, %p16062_p4 }
  0x10   :  { %p16065_p7 = pnand %p16064_p6, %p16058_p3 }
  0x12   :  { %16068 = shalt.err (!%p16065_p7)
}
  0x13   :  { %s16189_s29 = smov 128   ;;  %s16190_s30 = smov 8  }
  0x14   :  { %43 = dma.hbm_to_vmem [thread:$0]  %s18229_s1, 1024, %s38_s18, [#allocation7], %s16189_s29, %s16189_s29, %s16190_s30  }
  0x15   :  { %s16069_s16 = scalar_lea.hbm %s18231_s3, 1024 }
  0x16   :  { %p16070_p8 = scmp.ne.s32.totalorder %s18231_s3, %s16069_s16  ;;  %p16073_p9 = scmp.lt.u32.totalorder %s16069_s16, %s18231_s3 }
  0x18   :  { %p16075_p10 = pnand %p16073_p9, %p16070_p8 }
  0x1a   :  { %16078 = shalt.err (!%p16075_p10)
}
  0x1b   :  { %s16079_s23 = scalar_lea.vmem %s16261_s20, 1024  ;;  %p16084_p12 = scmp.lt.s32.totalorder %s16261_s20, %s16261_s20 }
  0x1c   :  { %p16080_p11 = scmp.ne.s32.totalorder %s16261_s20, %s16079_s23  ;;  %p16085_p13 = scmp.lt.s32.totalorder %s16079_s23, %s16079_s23 }
  0x1e   :  { %p16086_p0 = por %p16085_p13, %p16084_p12 }
  0x20   :  { %p16087_p1 = pnand %p16086_p0, %p16080_p11 }
  0x22   :  { %16090 = shalt.err (!%p16087_p1)
}
  0x23   :  { %67 = dma.hbm_to_vmem [thread:$0]  %s18231_s3, 1024, %s16261_s20, [#allocation10], %s16189_s29, %s16189_s29, %s16190_s30  }
  0x24   :  { %s16191_s24 = smov [#allocation3]   ;;  %s16192_s26 = smov [#allocation8]  }
  0x25   :  { %s25_s25 = sshll.u32 %s16191_s24, 4  ;;  %s49_s27 = sshll.u32 %s16192_s26, 4  ;;  %s26_s25 = int_to_ptr.vmem [resolvable:$true] %s25_s25  ;;  %s16298_s27 = int_to_ptr.vmem [resolvable:$true] %s49_s27 }
  0x26   :  { %s16091_s13 = scalar_lea.hbm %s18228_s0, 1024 }
  0x27   :  { %p16092_p2 = scmp.ne.s32.totalorder %s18228_s0, %s16091_s13  ;;  %p16095_p3 = scmp.lt.u32.totalorder %s16091_s13, %s18228_s0 }
  0x29   :  { %p16097_p4 = pnand %p16095_p3, %p16092_p2 }
  0x2b   :  { %16100 = shalt.err (!%p16097_p4)
}
  0x2c   :  { %s16101_s3 = scalar_lea.vmem %s26_s25, 1024  ;;  %p16106_p6 = scmp.lt.s32.totalorder %s26_s25, %s26_s25 }
  0x2d   :  { %p16102_p5 = scmp.ne.s32.totalorder %s26_s25, %s16101_s3  ;;  %p16107_p7 = scmp.lt.s32.totalorder %s16101_s3, %s16101_s3 }
  0x2f   :  { %p16108_p8 = por %p16107_p7, %p16106_p6 }
  0x31   :  { %p16109_p9 = pnand %p16108_p8, %p16102_p5 }
  0x33   :  { %16112 = shalt.err (!%p16109_p9)
}
  0x34   :  { %31 = dma.hbm_to_vmem [thread:$0]  %s18228_s0, 1024, %s26_s25, [#allocation4], %s16189_s29, %s16189_s29, %s16190_s30  }
  0x35   :  { %s16113_s23 = scalar_lea.hbm %s18230_s2, 1024 }
  0x36   :  { %p16114_p10 = scmp.ne.s32.totalorder %s18230_s2, %s16113_s23  ;;  %p16117_p11 = scmp.lt.u32.totalorder %s16113_s23, %s18230_s2 }
  0x38   :  { %p16119_p12 = pnand %p16117_p11, %p16114_p10 }
  0x3a   :  { %16122 = shalt.err (!%p16119_p12)
}
  0x3b   :  { %s16123_s28 = scalar_lea.vmem %s16298_s27, 1024  ;;  %p16128_p0 = scmp.lt.s32.totalorder %s16298_s27, %s16298_s27 }
  0x3c   :  { %p16124_p13 = scmp.ne.s32.totalorder %s16298_s27, %s16123_s28  ;;  %p16129_p1 = scmp.lt.s32.totalorder %s16123_s28, %s16123_s28 }
  0x3e   :  { %p16130_p2 = por %p16129_p1, %p16128_p0 }
  0x40   :  { %p16131_p3 = pnand %p16130_p2, %p16124_p13 }
  0x42   :  { %16134 = shalt.err (!%p16131_p3)
}
  0x43   :  { %55 = dma.hbm_to_vmem [thread:$0]  %s18230_s2, 1024, %s16298_s27, [#allocation7], %s16189_s29, %s16189_s29, %s16190_s30  }
  0x44   :  { %s16193_s12 = smov [#allocation11]   ;;  %s16135_s16 = scalar_lea.hbm %s18234_s6, 128 }
  0x45   :  { %s78_s13 = sshll.u32 %s16193_s12, 4  ;;  %p16136_p4 = scmp.ne.s32.totalorder %s18234_s6, %s16135_s16  ;;  %s79_s13 = int_to_ptr.vmem [resolvable:$true] %s78_s13 }
  0x46   :  { %p16139_p5 = scmp.lt.u32.totalorder %s16135_s16, %s18234_s6 }
  0x48   :  { %p16141_p6 = pnand %p16139_p5, %p16136_p4 }
  0x4a   :  { %16144 = shalt.err (!%p16141_p6)
}
  0x4b   :  { %s16145_s21 = scalar_lea.vmem %s79_s13, 128  ;;  %p16150_p8 = scmp.lt.s32.totalorder %s79_s13, %s79_s13 }
  0x4c   :  { %p16146_p7 = scmp.ne.s32.totalorder %s79_s13, %s16145_s21  ;;  %p16151_p9 = scmp.lt.s32.totalorder %s16145_s21, %s16145_s21 }
  0x4e   :  { %p16152_p10 = por %p16151_p9, %p16150_p8 }
  0x50   :  { %p16153_p11 = pnand %p16152_p10, %p16146_p7 }
  0x52   :  { %16156 = shalt.err (!%p16153_p11)
}
  0x53   :  { %81 = dma.hbm_to_vmem [thread:$0]  %s18234_s6, 128, %s79_s13, [#allocation10]  }
  0x54   :  { %16179 = dma.done.wait [#allocation4], 1024  }
  0x55   :  { %16180 = vsyncadd [#allocation4], 4294966272 }
  0x56   :  { %16181 = dma.done.wait [#allocation7], 2048  }
  0x57   :  { %16182 = vsyncadd [#allocation7], 4294965248 }
  0x58   :  { %16183 = dma.done.wait [#allocation10], 1152  }
  0x59   :  { %16184 = vsyncadd [#allocation10], 4294966144  ;;  %v16194_v0 = vmov 0.0   ;;  %vm16195_vm0 = vmmov 0   ;;  %vm110_vm1 = vcmask 64512   ;;  %v16356_v1 = vld [vmem:[%s18233_s5] sm:$0xff]  ;;  %v228_v6 = vlaneseq }
  0x5a   :  { %14714 = vmatprep.subr.mxu0 %v16194_v0  ;;  %14716 = vmatprep.mubr.msk.f32.mxu0 %vm16195_vm0, %v16194_v0  ;;  %v109_v2 = vld [vmem:[%s18238_s10] sm:$0xff]  ;;  %v16196_v4 = vmov 1966171168   ;;  %v222_v10 = vld [vmem:[#allocation3] sm:$0xff]  ;;  %v16396_v32 = vld [vmem:[#allocation8 + $0x8] sm:$0xff]  ;;  %vm1035_vm2 = vcmask 57344  }
  0x5b   :  { %14719 = vmatprep.subr.mxu1 %v16194_v0  ;;  %14721 = vmatprep.mubr.msk.f32.mxu1 %vm16195_vm0, %v16194_v0  ;;  %111 = vst.msk [vmem:[#allocation2] sm:$0xff] %vm110_vm1, %v109_v2  ;;  %v226_v5 = vunpack.c.l.s4 %v16196_v4  ;;  %v229_v8 = vshrl.u32 %v228_v6, 7  ;;  %v224_v12 = vcombine.high %v222_v10, %v222_v10  ;;  %v16378_v16 = vld [vmem:[%s18237_s9] ss:$0 sm:$0xff]  ;;  %v16388_v27 = vld [vmem:[#allocation8] sm:$0xff]  ;;  %v16398_v33 = vld [vmem:[#allocation8 + $0x10] sm:$0xff] }
  0x5c   :  { %14715 = vmatpush3.msra.mxu0 %v16356_v1  ;;  %v16406_v42 = vld [vmem:[#allocation8 + $0x18] sm:$0xff]  ;;  %v16410_v47 = vld [vmem:[#allocation8 + $0x20] sm:$0xff]  ;;  %v16417_v55 = vld [vmem:[#allocation8 + $0x28] sm:$0xff]  ;;  %s16197_s27 = smov 104   ;;  %s16198_s6 = smov 120   ;;  %vm1718_vm3 = vcmask 1041409  }
  0x5d   :  { %14724 = vmatprep.subr.mxu0 %v16194_v0  ;;  %v227_v7 = vunpack.c.0.s8 %v226_v5  ;;  %v16381_v18 = vsub.s32 0, %v229_v8  ;;  %v16426_v6 = vld [vmem:[#allocation8 + $0x30] sm:$0xff]  ;;  %vm1721_vm4 = vcmask 1042434   ;;  %vm1724_vm5 = vcmask 1043459   ;;  %s16199_s18 = smov 16  }
  0x5e   :  { %vm1727_vm6 = vcmask 1044484   ;;  %vm1730_vm7 = vcmask 1045509   ;;  %vm1733_vm8 = vcmask 1046534   ;;  %vm1736_vm9 = vcmask 1047559  }
  0x5f   :  { %v16370_v9 = vsub.s32 %v227_v7, %v229_v8 }
  0x61   :  { %v231_v11 = vrot.slane %v222_v10, %v16370_v9  ;;  %v238_v15 = vrot.slane %v224_v12, %v16370_v9 }
  0x62   :  { %v16364_v3 = vld [vmem:[#allocation2] sm:$0xff] }
  0x63   :  { %14717 = vmatmul.mubr.msk.f32.vlgmr.msra.gmra.mrb[0].mxu0 %vm110_vm1, %v16364_v3  ;;  %v239_v13 = vcombine.high %v231_v11, %v231_v11  ;;  %v247_v14 = vrot.slane %v231_v11, %v16370_v9  ;;  %v240_v22 = vcombine.high %v238_v15, %v238_v15  ;;  %v254_v24 = vrot.slane %v238_v15, %v16370_v9 }
  0x64   :  { %14726 = vmatprep.mubr.msk.f32.mxu0 %vm16195_vm0, %v16194_v0 }
  0x65   :  { %v261_v17 = vrot.slane %v239_v13, %v16370_v9  ;;  %v269_v20 = vcombine.high %v247_v14, %v247_v14  ;;  %v276_v26 = vrot.slane %v247_v14, %v16381_v18  ;;  %v268_v34 = vrot.slane %v240_v22, %v16370_v9  ;;  %v16431_v13 = vld [vmem:[#allocation8 + $0x38] sm:$0xff] }
  0x66   :  { %v270_v38 = vcombine.high %v254_v24, %v254_v24  ;;  %v292_v40 = vrot.slane %v254_v24, %v16381_v18 }
  0x67   :  { %v271_v25 = vcombine.high %v261_v17, %v261_v17  ;;  %v280_v30 = vrot.slane %v261_v17, %v16381_v18  ;;  %v284_v31 = vrot.slane %v269_v20, %v16381_v18  ;;  %v313_v41 = vadd.f32 %v276_v26, %v16388_v27  ;;  %v16441_v26 = vld [vmem:[%s18232_s4] sm:$0x1] }
  0x68   :  { %v272_v51 = vcombine.high %v268_v34, %v268_v34  ;;  %v296_v52 = vrot.slane %v268_v34, %v16381_v18  ;;  %v300_v60 = vrot.slane %v270_v38, %v16381_v18  ;;  %v317_v61 = vadd.f32 %v292_v40, %v16410_v47 }
  0x69   :  { %v288_v39 = vrot.slane %v271_v25, %v16381_v18  ;;  %v314_v48 = vadd.f32 %v280_v30, %v16396_v32  ;;  %v315_v49 = vadd.f32 %v284_v31, %v16398_v33  ;;  %v16459_v31 = vld [vmem:[%s18232_s4 + $0x2] sm:$0x1] }
  0x6a   :  { %v304_v7 = vrot.slane %v272_v51, %v16381_v18  ;;  %v318_v8 = vadd.f32 %v296_v52, %v16417_v55  ;;  %v319_v14 = vadd.f32 %v300_v60, %v16426_v6 }
  0x6b   :  { %v316_v56 = vadd.f32 %v288_v39, %v16406_v42  ;;  %v16492_v39 = vld [vmem:[%s18232_s4 + $0x5] sm:$0x1] }
 0x136   :  { %v218_v19 = vpop.f32.mrb[0].mxu0 }
 0x137   :  { %v16384_v21 = vadd.f32 %v16378_v16, %v218_v19  ;;  %v14718_v23 = vpop.f32.mrb[1].mxu0  ;;  %v320_v19 = vadd.f32 %v304_v7, %v16431_v13 }
 0x139   :  { %v322_v28 = vcombine.high %v16384_v21, %v16384_v21  ;;  %v329_v29 = vrot.slane %v16384_v21, %v16370_v9 }
 0x13b   :  { %v336_v35 = vrot.slane %v322_v28, %v16370_v9  ;;  %v337_v36 = vcombine.high %v329_v29, %v329_v29  ;;  %v345_v37 = vrot.slane %v329_v29, %v16370_v9  ;;  %v16448_v29 = vld [vmem:[%s18232_s4 + $0x1] sm:$0x1] }
 0x13d   :  { %v338_v43 = vcombine.high %v336_v35, %v336_v35  ;;  %v352_v44 = vrot.slane %v336_v35, %v16370_v9  ;;  %v359_v45 = vrot.slane %v337_v36, %v16370_v9  ;;  %v367_v46 = vcombine.high %v345_v37, %v345_v37  ;;  %v16470_v35 = vld [vmem:[%s18232_s4 + $0x3] sm:$0x1] }
 0x13e   :  { %v374_v50 = vrot.slane %v345_v37, %v16381_v18  ;;  %v16481_v37 = vld [vmem:[%s18232_s4 + $0x4] sm:$0x1] }
 0x13f   :  { %v369_v53 = vcombine.high %v359_v45, %v359_v45  ;;  %v378_v54 = vrot.slane %v359_v45, %v16381_v18  ;;  %v366_v57 = vrot.slane %v338_v43, %v16370_v9  ;;  %v382_v58 = vrot.slane %v367_v46, %v16381_v18 }
 0x140   :  { %v411_v59 = vadd.f32 %v374_v50, %v313_v41  ;;  %v368_v62 = vcombine.high %v352_v44, %v352_v44  ;;  %v390_v2 = vrot.slane %v352_v44, %v16381_v18  ;;  %v16503_v41 = vld [vmem:[%s18232_s4 + $0x6] sm:$0x1]  ;;  %v16514_v44 = vld [vmem:[%s18232_s4 + $0x7] sm:$0x1] }
 0x141   :  { %v386_v63 = vrot.slane %v369_v53, %v16381_v18  ;;  %v412_v4 = vadd.f32 %v378_v54, %v314_v48  ;;  %v413_v5 = vadd.f32 %v382_v58, %v315_v49  ;;  %v370_v10 = vcombine.high %v366_v57, %v366_v57 }
 0x142   :  { %15496 = vtanh.f32 %v411_v59  ;;  %v394_v11 = vrot.slane %v366_v57, %v16381_v18  ;;  %v398_v15 = vrot.slane %v368_v62, %v16381_v18  ;;  %v415_v17 = vadd.f32 %v390_v2, %v317_v61 }
 0x143   :  { %v414_v12 = vadd.f32 %v386_v63, %v316_v56  ;;  %15498 = vtanh.f32 %v412_v4  ;;  %v402_v20 = vrot.slane %v370_v10, %v16381_v18 }
 0x144   :  { %15500 = vtanh.f32 %v413_v5  ;;  %v416_v22 = vadd.f32 %v394_v11, %v318_v8  ;;  %v417_v23 = vadd.f32 %v398_v15, %v319_v14 }
 0x145   :  { %15502 = vtanh.f32 %v414_v12  ;;  %v418_v25 = vadd.f32 %v402_v20, %v320_v19 }
 0x146   :  { %15504 = vtanh.f32 %v415_v17 }
 0x147   :  { %15506 = vtanh.f32 %v416_v22 }
 0x148   :  { %15508 = vtanh.f32 %v417_v23 }
 0x149   :  { %15510 = vtanh.f32 %v418_v25 }
 0x14c   :  { %v15497_v24 = vpop.eup %15496 }
 0x14d   :  { %14720 = vmatpush3.xpose.msk.msra.mxu1 %vm110_vm1, %v15497_v24  ;;  %v15499_v28 = vpop.eup %15498 }
 0x14e   :  { %14729 = vmatprep.subr.mxu1 %v16194_v0  ;;  %14725 = vmatpush3.xpose.msk.msra.mxu0 %vm110_vm1, %v15499_v28  ;;  %v15501_v30 = vpop.eup %15500 }
 0x14f   :  { %14734 = vmatprep.subr.mxu0 %v16194_v0  ;;  %v15503_v34 = vpop.eup %15502 }
 0x150   :  { %14722 = vmatmul.mubr.msk.f32.vlgmr.msra.gmra.mrb[0].mxu1 %vm110_vm1, %v16441_v26  ;;  %v15505_v36 = vpop.eup %15504 }
 0x151   :  { %14730 = vmatpush3.xpose.msk.msra.mxu1 %vm110_vm1, %v15501_v30  ;;  %14731 = vmatprep.mubr.msk.f32.mxu1 %vm16195_vm0, %v16194_v0  ;;  %v15507_v38 = vpop.eup %15506 }
 0x152   :  { %14727 = vmatmul.mubr.msk.f32.vlgmr.msra.gmra.mrb[2].mxu0 %vm110_vm1, %v16448_v29  ;;  %14739 = vmatprep.subr.mxu1 %v16194_v0  ;;  %v15509_v40 = vpop.eup %15508 }
 0x153   :  { %14735 = vmatpush3.xpose.msk.msra.mxu0 %vm110_vm1, %v15503_v34  ;;  %14736 = vmatprep.mubr.msk.f32.mxu0 %vm16195_vm0, %v16194_v0  ;;  %v15511_v43 = vpop.eup %15510 }
 0x154   :  { %14732 = vmatmul.mubr.msk.f32.vlgmr.msra.gmra.mrb[2].mxu1 %vm110_vm1, %v16459_v31  ;;  %14744 = vmatprep.subr.mxu0 %v16194_v0 }
 0x155   :  { %14740 = vmatpush3.xpose.msk.msra.mxu1 %vm110_vm1, %v15505_v36  ;;  %14741 = vmatprep.mubr.msk.f32.mxu1 %vm16195_vm0, %v16194_v0 }
 0x156   :  { %14737 = vmatmul.mubr.msk.f32.vlgmr.msra.gmra.mrb[4].mxu0 %vm110_vm1, %v16470_v35  ;;  %14749 = vmatprep.subr.mxu1 %v16194_v0 }
 0x157   :  { %14745 = vmatpush3.xpose.msk.msra.mxu0 %vm110_vm1, %v15507_v38  ;;  %14746 = vmatprep.mubr.msk.f32.mxu0 %vm16195_vm0, %v16194_v0 }
 0x158   :  { %14742 = vmatmul.mubr.msk.f32.vlgmr.msra.gmra.mrb[4].mxu1 %vm110_vm1, %v16481_v37  ;;  %14754 = vmatprep.subr.mxu0 %v16194_v0 }
 0x159   :  { %14750 = vmatpush3.xpose.msk.msra.mxu1 %vm110_vm1, %v15509_v40  ;;  %14751 = vmatprep.mubr.msk.f32.mxu1 %vm16195_vm0, %v16194_v0 }
 0x15a   :  { %14747 = vmatmul.mubr.msk.f32.vlgmr.msra.gmra.mrb[6].mxu0 %vm110_vm1, %v16492_v39  ;;  %14759 = vmatprep.subr.mxu1 %v16194_v0 }
 0x15b   :  { %14755 = vmatpush3.xpose.msk.msra.mxu0 %vm110_vm1, %v15511_v43  ;;  %14756 = vmatprep.mubr.msk.f32.mxu0 %vm16195_vm0, %v16194_v0 }
 0x15c   :  { %14752 = vmatmul.mubr.msk.f32.vlgmr.msra.gmra.mrb[6].mxu1 %vm110_vm1, %v16503_v41  ;;  %14764 = vmatprep.subr.mxu0 %v16194_v0 }
 0x15d   :  { %14761 = vmatprep.mubr.msk.f32.mxu1 %vm16195_vm0, %v16194_v0 }
 0x15e   :  { %14757 = vmatmul.mubr.msk.f32.vlgmr.msra.gmra.mrb[8].mxu0 %vm110_vm1, %v16514_v44 }
 0x15f   :  { %14766 = vmatprep.mubr.msk.f32.mxu0 %vm16195_vm0, %v16194_v0 }
 0x223   :  { %v499_v45 = vpop.f32.mrb[0].mxu1 }
 0x224   :  { %v14723_v46 = vpop.f32.mrb[1].mxu1  ;;  %v1036_v48 = vsel %vm1035_vm2, %v499_v45, -inf }
 0x225   :  { %1037 = vmax.xlane.f32.xlu0 %v1036_v48  ;;  %v575_v49 = vpop.f32.mrb[2].mxu0 }
 0x226   :  { %v14728_v50 = vpop.f32.mrb[3].mxu0  ;;  %v1039_v51 = vsel %vm1035_vm2, %v575_v49, -inf }
 0x227   :  { %v651_v52 = vpop.f32.mrb[2].mxu1 }
 0x228   :  { %v14733_v53 = vpop.f32.mrb[3].mxu1  ;;  %v1042_v54 = vsel %vm1035_vm2, %v651_v52, -inf }
 0x229   :  { %1043 = vmax.xlane.f32.xlu1 %v1042_v54  ;;  %1040 = vmax.xlane.f32.xlu0 %v1039_v51  ;;  %v727_v56 = vpop.f32.mrb[4].mxu0 }
 0x22a   :  { %v14738_v57 = vpop.f32.mrb[5].mxu0  ;;  %v1045_v58 = vsel %vm1035_vm2, %v727_v56, -inf }
 0x22b   :  { %v803_v59 = vpop.f32.mrb[4].mxu1 }
 0x22c   :  { %v1048_v60 = vsel %vm1035_vm2, %v803_v59, -inf  ;;  %v14743_v61 = vpop.f32.mrb[5].mxu1 }
 0x22d   :  { %1049 = vmax.xlane.f32.xlu0 %v1048_v60  ;;  %1046 = vmax.xlane.f32.xlu1 %v1045_v58  ;;  %v879_v62 = vpop.f32.mrb[6].mxu0 }
 0x22e   :  { %v14748_v63 = vpop.f32.mrb[7].mxu0  ;;  %v1051_v2 = vsel %vm1035_vm2, %v879_v62, -inf }
 0x22f   :  { %v955_v4 = vpop.f32.mrb[6].mxu1 }
 0x230   :  { %v1054_v5 = vsel %vm1035_vm2, %v955_v4, -inf  ;;  %v14753_v7 = vpop.f32.mrb[7].mxu1 }
 0x231   :  { %1055 = vmax.xlane.f32.xlu0 %v1054_v5  ;;  %1052 = vmax.xlane.f32.xlu1 %v1051_v2  ;;  %v1031_v8 = vpop.f32.mrb[8].mxu0 }
 0x232   :  { %v14758_v10 = vpop.f32.mrb[9].mxu0  ;;  %v1057_v11 = vsel %vm1035_vm2, %v1031_v8, -inf }
 0x235   :  { %1058 = vmax.xlane.f32.xlu1 %v1057_v11  ;;  %v16553_v11 = vld [vmem:[#allocation9] sm:$0xff] }
 0x236   :  { %14760 = vmatpush3.msra.mxu1 %v16553_v11 }
 0x237   :  { %14769 = vmatprep.subr.mxu1 %v16194_v0 }
 0x2b2   :  { %v1038_v12 = vpop.xlane.xlu0 %1037 }
 0x2b3   :  { %v1060_v14 = vsub.f32 %v499_v45, %v1038_v12  ;;  %v16555_v12 = vld [vmem:[#allocation9 + $0x8] sm:$0xff] }
 0x2b4   :  { %14765 = vmatpush3.msra.mxu0 %v16555_v12 }
 0x2b5   :  { %v1068_v15 = vmul.f32 1.442695, %v1060_v14  ;;  %14774 = vmatprep.subr.mxu0 %v16194_v0 }
 0x2b6   :  { %v1044_v17 = vpop.xlane.xlu1 %1043  ;;  %v1041_v19 = vpop.xlane.xlu0 %1040 }
 0x2b7   :  { %15512 = vpow2.f32 %v1068_v15  ;;  %v1062_v20 = vsub.f32 %v651_v52, %v1044_v17  ;;  %v1061_v22 = vsub.f32 %v575_v49, %v1041_v19 }
 0x2b9   :  { %v1072_v23 = vmul.f32 1.442695, %v1062_v20  ;;  %v1070_v24 = vmul.f32 1.442695, %v1061_v22 }
 0x2ba   :  { %v1050_v25 = vpop.xlane.xlu0 %1049  ;;  %v1047_v28 = vpop.xlane.xlu1 %1046 }
 0x2bb   :  { %15514 = vpow2.f32 %v1072_v23  ;;  %v1064_v30 = vsub.f32 %v803_v59, %v1050_v25  ;;  %v1063_v34 = vsub.f32 %v727_v56, %v1047_v28  ;;  %v16567_v25 = vld [vmem:[#allocation9 + $0x10] sm:$0xff] }
 0x2bc   :  { %15516 = vpow2.f32 %v1070_v24 }
 0x2bd   :  { %v1076_v36 = vmul.f32 1.442695, %v1064_v30  ;;  %v1074_v38 = vmul.f32 1.442695, %v1063_v34  ;;  %v16574_v34 = vld [vmem:[#allocation9 + $0x20] sm:$0xff] }
 0x2be   :  { %v1056_v40 = vpop.xlane.xlu0 %1055  ;;  %v1053_v43 = vpop.xlane.xlu1 %1052 }
 0x2bf   :  { %15518 = vpow2.f32 %v1076_v36  ;;  %v1066_v45 = vsub.f32 %v955_v4, %v1056_v40  ;;  %v1065_v46 = vsub.f32 %v879_v62, %v1053_v43  ;;  %v16576_v40 = vld [vmem:[#allocation9 + $0x18] sm:$0xff] }
 0x2c0   :  { %15520 = vpow2.f32 %v1074_v38 }
 0x2c1   :  { %v15513_v48 = vpop.eup %15512  ;;  %v1080_v50 = vmul.f32 1.442695, %v1066_v45  ;;  %v1078_v51 = vmul.f32 1.442695, %v1065_v46 }
 0x2c2   :  { %v1059_v49 = vpop.xlane.xlu1 %1058  ;;  %v1084_v52 = vsel %vm1035_vm2, %v15513_v48, 0.0 }
 0x2c3   :  { %15522 = vpow2.f32 %v1080_v50  ;;  %v1067_v53 = vsub.f32 %v1031_v8, %v1059_v49  ;;  %1085 = vadd.xlane.f32.xlu0 %v1084_v52 }
 0x2c4   :  { %15524 = vpow2.f32 %v1078_v51  ;;  %v16590_v51 = vld [vmem:[#allocation9 + $0x28] sm:$0xff] }
 0x2c5   :  { %v15515_v54 = vpop.eup %15514  ;;  %v1082_v56 = vmul.f32 1.442695, %v1067_v53 }
 0x2c6   :  { %v15517_v57 = vpop.eup %15516  ;;  %v1090_v58 = vsel %vm1035_vm2, %v15515_v54, 0.0 }
 0x2c7   :  { %15526 = vpow2.f32 %v1082_v56  ;;  %1091 = vadd.xlane.f32.xlu0 %v1090_v58  ;;  %v1087_v59 = vsel %vm1035_vm2, %v15517_v57, 0.0  ;;  %v16604_v56 = vld [vmem:[#allocation9 + $0x38] sm:$0xff] }
 0x2c8   :  { %1088 = vadd.xlane.f32.xlu1 %v1087_v59  ;;  %v16619_v59 = vld [vmem:[#allocation11] sm:$0xff] }
 0x2c9   :  { %v15519_v60 = vpop.eup %15518 }
 0x2ca   :  { %v16536_v61 = vpop.eup %15520  ;;  %v1096_v62 = vsel %vm1035_vm2, %v15519_v60, 0.0 }
 0x2cb   :  { %1097 = vadd.xlane.f32.xlu0 %v1096_v62  ;;  %v1093_v63 = vsel %vm1035_vm2, %v16536_v61, 0.0 }
 0x2cc   :  { %1094 = vadd.xlane.f32.xlu1 %v1093_v63 }
 0x2cd   :  { %v16541_v2 = vpop.eup %15522 }
 0x2ce   :  { %v16543_v4 = vpop.eup %15524  ;;  %v1102_v5 = vsel %vm1035_vm2, %v16541_v2, 0.0 }
 0x2cf   :  { %1103 = vadd.xlane.f32.xlu0 %v1102_v5  ;;  %v1099_v7 = vsel %vm1035_vm2, %v16543_v4, 0.0 }
 0x2d0   :  { %1100 = vadd.xlane.f32.xlu1 %v1099_v7 }
 0x2d1   :  { %v16549_v8 = vpop.eup %15526 }
 0x2d2   :  { %v1105_v10 = vsel %vm1035_vm2, %v16549_v8, 0.0 }
 0x2d4   :  { %1106 = vadd.xlane.f32.xlu1 %v1105_v10 }
 0x2e5   :  { %1908 = vrot.lane.b32.xlu1 %v16384_v21, %s16197_s27  ;;  %1898 = vrot.lane.b32.xlu0 %v16384_v21, %s16198_s6 }
 0x2e9   :  { %1924 = vrot.lane.b32.xlu0 %v16364_v3, %s16190_s30 }
 0x350   :  { %v1086_v14 = vpop.xlane.xlu0 %1085 }
 0x351   :  { %15528 = vrcp.f32 %v1086_v14 }
 0x354   :  { %v1092_v15 = vpop.xlane.xlu0 %1091 }
 0x355   :  { %15530 = vrcp.f32 %v1092_v15  ;;  %v1089_v17 = vpop.xlane.xlu1 %1088 }
 0x356   :  { %15532 = vrcp.f32 %v1089_v17 }
 0x358   :  { %v1098_v19 = vpop.xlane.xlu0 %1097 }
 0x359   :  { %15534 = vrcp.f32 %v1098_v19  ;;  %v1095_v20 = vpop.xlane.xlu1 %1094 }
 0x35a   :  { %15536 = vrcp.f32 %v1095_v20 }
 0x35b   :  { %v15529_v22 = vpop.eup %15528 }
 0x35c   :  { %v1104_v23 = vpop.xlane.xlu0 %1103  ;;  %v1116_v24 = vmul.f32 %v15529_v22, %v15513_v48  ;;  %v16584_v48 = vld [vmem:[#allocation9 + $0x30] sm:$0xff] }
 0x35d   :  { %15538 = vrcp.f32 %v1104_v23  ;;  %v1101_v21 = vpop.xlane.xlu1 %1100 }
 0x35e   :  { %15540 = vrcp.f32 %v1101_v21  ;;  %14762 = vmatmul.mubr.msk.f32.vlgmr.msra.gmra.mrb[8].mxu1 %vm110_vm1, %v1116_v24 }
 0x35f   :  { %v15531_v3 = vpop.eup %15530  ;;  %14770 = vmatpush3.msra.mxu1 %v16567_v25  ;;  %14771 = vmatprep.mubr.msk.f32.mxu1 %vm16195_vm0, %v16194_v0 }
 0x360   :  { %v15533_v28 = vpop.eup %15532  ;;  %v1118_v30 = vmul.f32 %v15531_v3, %v15515_v54  ;;  %14779 = vmatprep.subr.mxu1 %v16194_v0 }
 0x361   :  { %v1107_v36 = vpop.xlane.xlu1 %1106  ;;  %v1117_v38 = vmul.f32 %v15533_v28, %v15517_v57 }
 0x362   :  { %15542 = vrcp.f32 %v1107_v36  ;;  %14772 = vmatmul.mubr.msk.f32.vlgmr.msra.gmra.mrb[10].mxu1 %vm110_vm1, %v1118_v30 }
 0x363   :  { %v15535_v43 = vpop.eup %15534  ;;  %14767 = vmatmul.mubr.msk.f32.vlgmr.msra.gmra.mrb[10].mxu0 %vm110_vm1, %v1117_v38  ;;  %14780 = vmatpush3.msra.mxu1 %v16574_v34 }
 0x364   :  { %v15537_v45 = vpop.eup %15536  ;;  %14775 = vmatpush3.msra.mxu0 %v16576_v40  ;;  %14776 = vmatprep.mubr.msk.f32.mxu0 %vm16195_vm0, %v16194_v0  ;;  %v1120_v46 = vmul.f32 %v15535_v43, %v15519_v60 }
 0x365   :  { %14781 = vmatprep.mubr.msk.f32.mxu1 %vm16195_vm0, %v16194_v0  ;;  %v1119_v50 = vmul.f32 %v15537_v45, %v16536_v61  ;;  %14784 = vmatprep.subr.mxu0 %v16194_v0 }
 0x366   :  { %14782 = vmatmul.mubr.msk.f32.vlgmr.msra.gmra.mrb[12].mxu1 %vm110_vm1, %v1120_v46  ;;  %14789 = vmatprep.subr.mxu1 %v16194_v0 }
 0x367   :  { %v15539_v49 = vpop.eup %15538  ;;  %14777 = vmatmul.mubr.msk.f32.vlgmr.msra.gmra.mrb[12].mxu0 %vm110_vm1, %v1119_v50  ;;  %14790 = vmatpush3.msra.mxu1 %v16584_v48 }
 0x368   :  { %v15541_v52 = vpop.eup %15540  ;;  %14785 = vmatpush3.msra.mxu0 %v16590_v51  ;;  %14786 = vmatprep.mubr.msk.f32.mxu0 %vm16195_vm0, %v16194_v0  ;;  %v1122_v53 = vmul.f32 %v15539_v49, %v16541_v2 }
 0x369   :  { %14791 = vmatprep.mubr.msk.f32.mxu1 %vm16195_vm0, %v16194_v0  ;;  %v1121_v54 = vmul.f32 %v15541_v52, %v16543_v4  ;;  %14794 = vmatprep.subr.mxu0 %v16194_v0 }
 0x36a   :  { %14792 = vmatmul.mubr.msk.f32.vlgmr.msra.gmra.mrb[14].mxu1 %vm110_vm1, %v1122_v53  ;;  %14799 = vmatprep.subr.mxu1 %v16194_v0  ;;  %v16638_v53 = vld [vmem:[%s18235_s7] sm:$0xff] }
 0x36b   :  { %14787 = vmatmul.mubr.msk.f32.vlgmr.msra.gmra.mrb[14].mxu0 %vm110_vm1, %v1121_v54  ;;  %14801 = vmatprep.mubr.msk.f32.mxu1 %vm16195_vm0, %v16194_v0  ;;  %v1708_v54 = vld [vmem:[#allocation6] sm:$0xff] }
 0x36c   :  { %v15543_v57 = vpop.eup %15542  ;;  %14795 = vmatpush3.msra.mxu0 %v16604_v56  ;;  %14796 = vmatprep.mubr.msk.f32.mxu0 %vm16195_vm0, %v16194_v0 }
 0x36d   :  { %v1123_v58 = vmul.f32 %v15543_v57, %v16549_v8  ;;  %14804 = vmatprep.subr.mxu0 %v16194_v0  ;;  %14800 = vmatpush3.msra.mxu1 %v16619_v59 }
 0x36e   :  { %14809 = vmatprep.subr.mxu1 %v16194_v0 }
 0x36f   :  { %14797 = vmatmul.mubr.msk.f32.vlgmr.msra.gmra.mrb[16].mxu0 %vm110_vm1, %v1123_v58 }
 0x370   :  { %14806 = vmatprep.mubr.msk.f32.mxu0 %vm16195_vm0, %v16194_v0  ;;  %14805 = vmatpush3.msra.mxu0 %v16638_v53 }
 0x371   :  { %14814 = vmatprep.subr.mxu0 %v16194_v0 }
 0x431   :  { %v1193_v60 = vpop.f32.mrb[8].mxu1 }
 0x432   :  { %v14763_v61 = vpop.f32.mrb[9].mxu1 }
 0x435   :  { %v1339_v62 = vpop.f32.mrb[10].mxu1 }
 0x436   :  { %v1266_v63 = vpop.f32.mrb[10].mxu0  ;;  %v1720_v2 = vrot.slane %v1339_v62, 6  ;;  %v14773_v4 = vpop.f32.mrb[11].mxu1 }
 0x437   :  { %v1717_v5 = vrot.slane %v1266_v63, 7  ;;  %v14768_v7 = vpop.f32.mrb[11].mxu0  ;;  %v16648_v4 = vld [vmem:[%s18236_s8] ss:$0 sm:$0xff] }
 0x439   :  { %v1719_v8 = vsel %vm1718_vm3, %v1717_v5, %v1193_v60  ;;  %v1485_v10 = vpop.f32.mrb[12].mxu1 }
 0x43a   :  { %v1722_v14 = vsel %vm1721_vm4, %v1720_v2, %v1719_v8  ;;  %v1412_v15 = vpop.f32.mrb[12].mxu0  ;;  %v1726_v17 = vrot.slane %v1485_v10, 4  ;;  %v14783_v19 = vpop.f32.mrb[13].mxu1 }
 0x43b   :  { %v1723_v20 = vrot.slane %v1412_v15, 5  ;;  %v14778_v22 = vpop.f32.mrb[13].mxu0  ;;  %v1899_v10 = vpop.permute.xlu0 %1898 }
 0x43c   :  { %v1909_v22 = vpop.permute.xlu1 %1908 }
 0x43d   :  { %v1725_v23 = vsel %vm1724_vm5, %v1723_v20, %v1722_v14  ;;  %v1631_v24 = vpop.f32.mrb[14].mxu1 }
 0x43e   :  { %v1728_v21 = vsel %vm1727_vm6, %v1726_v17, %v1725_v23  ;;  %v1558_v3 = vpop.f32.mrb[14].mxu0  ;;  %v1732_v28 = vrot.slane %v1631_v24, 2  ;;  %v14793_v30 = vpop.f32.mrb[15].mxu1 }
 0x43f   :  { %v1729_v36 = vrot.slane %v1558_v3, 3  ;;  %v14788_v38 = vpop.f32.mrb[15].mxu0 }
 0x441   :  { %v1731_v43 = vsel %vm1730_vm7, %v1729_v36, %v1728_v21 }
 0x442   :  { %v1734_v45 = vsel %vm1733_vm8, %v1732_v28, %v1731_v43  ;;  %v1704_v46 = vpop.f32.mrb[16].mxu0  ;;  %v1925_v28 = vpop.permute.xlu0 %1924 }
 0x443   :  { %v1735_v50 = vrot.slane %v1704_v46, 1  ;;  %v14798_v49 = vpop.f32.mrb[17].mxu0 }
 0x445   :  { %v1737_v52 = vsel %vm1736_vm9, %v1735_v50, %v1734_v45  ;;  %v2007_v50 = vld [vmem:[#allocation3 + $0x8] sm:$0xff] }
 0x446   :  { %14802 = vmatmul.mubr.msk.f32.vlgmr.msra.gmra.mrb[16].mxu1 %vm110_vm1, %v1737_v52  ;;  %v2016_v49 = vrot.slane %v2007_v50, %v16370_v9 }
 0x447   :  { %14810 = vmatpush3.msra.mxu1 %v16356_v1  ;;  %14811 = vmatprep.mubr.msk.f32.mxu1 %vm16195_vm0, %v16194_v0 }
 0x448   :  { %14819 = vmatprep.subr.mxu1 %v16194_v0 }
 0x519   :  { %v1806_v57 = vpop.f32.mrb[16].mxu1 }
 0x51a   :  { %v1810_v58 = vadd.f32 %v1806_v57, %v1708_v54  ;;  %v14803_v60 = vpop.f32.mrb[17].mxu1  ;;  %v2024_v54 = vcombine.high %v2016_v49, %v2016_v49  ;;  %v2032_v57 = vrot.slane %v2016_v49, %v16370_v9 }
 0x51c   :  { %v14203_v61 = vmul.f32 -1.442695, %v1810_v58  ;;  %v2046_v60 = vrot.slane %v2024_v54, %v16370_v9 }
 0x51e   :  { %15544 = vpow2.f32 %v14203_v61 }
 0x528   :  { %v15545_v1 = vpop.eup %15544 }
 0x529   :  { %v1814_v62 = vadd.f32 1.0, %v15545_v1  ;;  %v2054_v1 = vcombine.high %v2032_v57, %v2032_v57 }
 0x52b   :  { %15546 = vrcp.f32 %v1814_v62 }
 0x535   :  { %v15547_v63 = vpop.eup %15546 }
 0x536   :  { %v1818_v2 = vmul.f32 %v15547_v63, %v1737_v52  ;;  %v2009_v52 = vcombine.high %v2007_v50, %v2007_v50 }
 0x538   :  { %14807 = vmatmul.mubr.msk.f32.vlgmr.msra.gmra.mrb[18].mxu0 %vm110_vm1, %v1818_v2  ;;  %v2023_v58 = vrot.slane %v2009_v52, %v16370_v9 }
 0x539   :  { %14816 = vmatprep.mubr.msk.f32.mxu0 %vm16195_vm0, %v16194_v0 }
 0x53a   :  { %v2025_v63 = vcombine.high %v2023_v58, %v2023_v58 }
 0x60b   :  { %v1894_v5 = vpop.f32.mrb[18].mxu0 }
 0x60c   :  { %v1895_v7 = vadd.f32 %v16648_v4, %v1894_v5  ;;  %v14808_v8 = vpop.f32.mrb[19].mxu0  ;;  %v2039_v5 = vrot.slane %v2023_v58, %v16370_v9 }
 0x60d   :  { %v2061_v8 = vrot.slane %v2032_v57, %v16381_v18 }
 0x60e   :  { %v1901_v14 = vadd.f32 %v1899_v10, %v1895_v7 }
 0x610   :  { %v14206_v15 = vmul.f32 -1.442695, %v1901_v14 }
 0x612   :  { %15548 = vpow2.f32 %v14206_v15  ;;  %v2065_v15 = vrot.slane %v2046_v60, %v16381_v18 }
 0x61c   :  { %v15549_v17 = vpop.eup %15548 }
 0x61d   :  { %v1905_v19 = vadd.f32 1.0, %v15549_v17  ;;  %v2069_v17 = vrot.slane %v2054_v1, %v16381_v18 }
 0x61f   :  { %15550 = vrcp.f32 %v1905_v19 }
 0x629   :  { %v15551_v20 = vpop.eup %15550 }
 0x62a   :  { %v1911_v23 = vmul.f32 %v15551_v20, %v1909_v22  ;;  %v1918_v30 = vsub.f32 1.0, %v15551_v20  ;;  %v1927_v38 = vmul.f32 %v15551_v20, %v1925_v28 }
 0x62c   :  { %1913 = vrot.lane.b32.xlu1 %v1911_v23, %s16199_s18  ;;  %v2055_v23 = vcombine.high %v2039_v5, %v2039_v5 }
 0x62e   :  { %v2085_v1 = vrot.slane %v2055_v23, %v16381_v18 }
 0x69e   :  { %v1914_v24 = vpop.permute.xlu1 %1913 }
 0x69f   :  { %v1916_v21 = vadd.f32 %v1914_v24, %v1895_v7  ;;  %v2056_v7 = vcombine.high %v2046_v60, %v2046_v60 }
 0x6a1   :  { %15552 = vtanh.f32 %v1916_v21  ;;  %v2073_v24 = vrot.slane %v2056_v7, %v16381_v18  ;;  %v2077_v21 = vrot.slane %v2039_v5, %v16381_v18 }
 0x6ab   :  { %v15553_v3 = vpop.eup %15552 }
 0x6ac   :  { %1920 = vrot.lane.b32.xlu1 %v15553_v3, %s16198_s6  ;;  %v2098_v3 = vadd.f32 %v2061_v8, %v16388_v27  ;;  %v2101_v27 = vadd.f32 %v2073_v24, %v16406_v42 }
 0x71e   :  { %v1921_v36 = vpop.permute.xlu1 %1920 }
 0x71f   :  { %v1923_v43 = vmul.f32 %v1921_v36, %v1918_v30 }
 0x721   :  { %v16653_v45 = vadd.f32 %v1927_v38, %v1923_v43  ;;  %v2099_v43 = vadd.f32 %v2065_v15, %v16396_v32  ;;  %v2102_v32 = vadd.f32 %v2077_v21, %v16410_v47 }
 0x723   :  { %1930 = vrot.lane.b32.xlu1 %v16653_v45, %s16198_s6 }
 0x795   :  { %v1931_v46 = vpop.permute.xlu1 %1930 }
 0x796   :  { %1933 = vst.msk [vmem:[#allocation12] sm:$0xff] %vm110_vm1, %v1931_v46  ;;  %14812 = vmatmul.mubr.msk.f32.vlgmr.msra.gmra.mrb[18].mxu1 %vm110_vm1, %v1931_v46  ;;  %v2100_v46 = vadd.f32 %v2069_v17, %v16398_v33  ;;  %v2104_v17 = vadd.f32 %v2085_v1, %v16426_v6 }
 0x797   :  { %14821 = vmatprep.mubr.msk.f32.mxu1 %vm16195_vm0, %v16194_v0 }
 0x869   :  { %v2002_v61 = vpop.f32.mrb[18].mxu1 }
 0x86a   :  { %v16666_v62 = vadd.f32 %v16378_v16, %v2002_v61  ;;  %v14813_v2 = vpop.f32.mrb[19].mxu1  ;;  %v2053_v16 = vrot.slane %v2025_v63, %v16370_v9 }
 0x86c   :  { %v2107_v10 = vcombine.high %v16666_v62, %v16666_v62  ;;  %v2114_v14 = vrot.slane %v16666_v62, %v16370_v9  ;;  %v2057_v49 = vcombine.high %v2053_v16, %v2053_v16  ;;  %v2081_v52 = vrot.slane %v2053_v16, %v16381_v18 }
 0x86e   :  { %v2121_v19 = vrot.slane %v2107_v10, %v16370_v9  ;;  %v2122_v20 = vcombine.high %v2114_v14, %v2114_v14  ;;  %v2130_v22 = vrot.slane %v2114_v14, %v16370_v9  ;;  %v2089_v8 = vrot.slane %v2057_v49, %v16381_v18 }
 0x86f   :  { %v2103_v42 = vadd.f32 %v2081_v52, %v16417_v55 }
 0x870   :  { %v2123_v28 = vcombine.high %v2121_v19, %v2121_v19  ;;  %v2137_v30 = vrot.slane %v2121_v19, %v16370_v9  ;;  %v2144_v36 = vrot.slane %v2122_v20, %v16370_v9  ;;  %v2152_v38 = vcombine.high %v2130_v22, %v2130_v22 }
 0x871   :  { %v2159_v50 = vrot.slane %v2130_v22, %v16381_v18  ;;  %v2105_v19 = vadd.f32 %v2089_v8, %v16431_v13 }
 0x872   :  { %v2154_v54 = vcombine.high %v2144_v36, %v2144_v36  ;;  %v2163_v57 = vrot.slane %v2144_v36, %v16381_v18  ;;  %v2151_v58 = vrot.slane %v2123_v28, %v16370_v9  ;;  %v2167_v60 = vrot.slane %v2152_v38, %v16381_v18 }
 0x873   :  { %v2196_v61 = vadd.f32 %v2159_v50, %v2098_v3  ;;  %v2153_v33 = vcombine.high %v2137_v30, %v2137_v30  ;;  %v2175_v2 = vrot.slane %v2137_v30, %v16381_v18 }
 0x874   :  { %v2171_v63 = vrot.slane %v2154_v54, %v16381_v18  ;;  %v2197_v5 = vadd.f32 %v2163_v57, %v2099_v43  ;;  %v2198_v7 = vadd.f32 %v2167_v60, %v2100_v46  ;;  %v2155_v10 = vcombine.high %v2151_v58, %v2151_v58 }
 0x875   :  { %15554 = vtanh.f32 %v2196_v61  ;;  %v2179_v14 = vrot.slane %v2151_v58, %v16381_v18  ;;  %v2183_v47 = vrot.slane %v2153_v33, %v16381_v18  ;;  %v2200_v16 = vadd.f32 %v2175_v2, %v2102_v32 }
 0x876   :  { %v2199_v15 = vadd.f32 %v2171_v63, %v2101_v27  ;;  %15556 = vtanh.f32 %v2197_v5  ;;  %v2187_v20 = vrot.slane %v2155_v10, %v16381_v18 }
 0x877   :  { %15558 = vtanh.f32 %v2198_v7  ;;  %v2201_v22 = vadd.f32 %v2179_v14, %v2103_v42  ;;  %v2202_v23 = vadd.f32 %v2183_v47, %v2104_v17 }
 0x878   :  { %15560 = vtanh.f32 %v2199_v15  ;;  %v2203_v24 = vadd.f32 %v2187_v20, %v2105_v19 }
 0x879   :  { %15562 = vtanh.f32 %v2200_v16 }
 0x87a   :  { %15564 = vtanh.f32 %v2201_v22 }
 0x87b   :  { %15566 = vtanh.f32 %v2202_v23 }
 0x87c   :  { %15568 = vtanh.f32 %v2203_v24 }
 0x87f   :  { %v15555_v55 = vpop.eup %15554 }
 0x880   :  { %14815 = vmatpush3.xpose.msk.msra.mxu0 %vm110_vm1, %v15555_v55  ;;  %v15557_v21 = vpop.eup %15556 }
 0x881   :  { %14824 = vmatprep.subr.mxu0 %v16194_v0  ;;  %14820 = vmatpush3.xpose.msk.msra.mxu1 %vm110_vm1, %v15557_v21  ;;  %v15559_v6 = vpop.eup %15558 }
 0x882   :  { %14829 = vmatprep.subr.mxu1 %v16194_v0  ;;  %v15561_v13 = vpop.eup %15560 }
 0x883   :  { %14817 = vmatmul.mubr.msk.f32.vlgmr.msra.gmra.mrb[20].mxu0 %vm110_vm1, %v16441_v26  ;;  %v15563_v3 = vpop.eup %15562 }
 0x884   :  { %14825 = vmatpush3.xpose.msk.msra.mxu0 %vm110_vm1, %v15559_v6  ;;  %14826 = vmatprep.mubr.msk.f32.mxu0 %vm16195_vm0, %v16194_v0  ;;  %v15565_v26 = vpop.eup %15564 }
 0x885   :  { %14822 = vmatmul.mubr.msk.f32.vlgmr.msra.gmra.mrb[20].mxu1 %vm110_vm1, %v16448_v29  ;;  %14834 = vmatprep.subr.mxu0 %v16194_v0  ;;  %v15567_v29 = vpop.eup %15566 }
 0x886   :  { %14830 = vmatpush3.xpose.msk.msra.mxu1 %vm110_vm1, %v15561_v13  ;;  %14831 = vmatprep.mubr.msk.f32.mxu1 %vm16195_vm0, %v16194_v0 }
 0x887   :  { %14827 = vmatmul.mubr.msk.f32.vlgmr.msra.gmra.mrb[22].mxu0 %vm110_vm1, %v16459_v31  ;;  %14839 = vmatprep.subr.mxu1 %v16194_v0  ;;  %v15569_v31 = vpop.eup %15568 }
 0x888   :  { %14835 = vmatpush3.xpose.msk.msra.mxu0 %vm110_vm1, %v15563_v3  ;;  %14836 = vmatprep.mubr.msk.f32.mxu0 %vm16195_vm0, %v16194_v0 }
 0x889   :  { %14832 = vmatmul.mubr.msk.f32.vlgmr.msra.gmra.mrb[22].mxu1 %vm110_vm1, %v16470_v35  ;;  %14844 = vmatprep.subr.mxu0 %v16194_v0 }
 0x88a   :  { %14840 = vmatpush3.xpose.msk.msra.mxu1 %vm110_vm1, %v15565_v26  ;;  %14841 = vmatprep.mubr.msk.f32.mxu1 %vm16195_vm0, %v16194_v0 }
 0x88b   :  { %14837 = vmatmul.mubr.msk.f32.vlgmr.msra.gmra.mrb[24].mxu0 %vm110_vm1, %v16481_v37  ;;  %14849 = vmatprep.subr.mxu1 %v16194_v0 }
 0x88c   :  { %14845 = vmatpush3.xpose.msk.msra.mxu0 %vm110_vm1, %v15567_v29  ;;  %14846 = vmatprep.mubr.msk.f32.mxu0 %vm16195_vm0, %v16194_v0 }
 0x88d   :  { %14842 = vmatmul.mubr.msk.f32.vlgmr.msra.gmra.mrb[24].mxu1 %vm110_vm1, %v16492_v39  ;;  %14854 = vmatprep.subr.mxu0 %v16194_v0 }
 0x88e   :  { %14850 = vmatpush3.xpose.msk.msra.mxu1 %vm110_vm1, %v15569_v31  ;;  %14851 = vmatprep.mubr.msk.f32.mxu1 %vm16195_vm0, %v16194_v0 }
 0x88f   :  { %14847 = vmatmul.mubr.msk.f32.vlgmr.msra.gmra.mrb[26].mxu0 %vm110_vm1, %v16503_v41  ;;  %14859 = vmatprep.subr.mxu1 %v16194_v0 }
 0x890   :  { %14855 = vmatpush3.msra.mxu0 %v16553_v11  ;;  %14856 = vmatprep.mubr.msk.f32.mxu0 %vm16195_vm0, %v16194_v0 }
 0x891   :  { %14852 = vmatmul.mubr.msk.f32.vlgmr.msra.gmra.mrb[26].mxu1 %vm110_vm1, %v16514_v44  ;;  %14864 = vmatprep.subr.mxu0 %v16194_v0 }
 0x892   :  { %14860 = vmatpush3.msra.mxu1 %v16555_v12  ;;  %14861 = vmatprep.mubr.msk.f32.mxu1 %vm16195_vm0, %v16194_v0 }
 0x893   :  { %14869 = vmatprep.subr.mxu1 %v16194_v0 }
 0x956   :  { %v2281_v35 = vpop.f32.mrb[20].mxu0 }
 0x957   :  { %v14818_v37 = vpop.f32.mrb[21].mxu0  ;;  %v2796_v39 = vsel %vm1035_vm2, %v2281_v35, -inf }
 0x958   :  { %v2354_v41 = vpop.f32.mrb[20].mxu1  ;;  %2797 = vmax.xlane.f32.xlu0 %v2796_v39 }
 0x959   :  { %v2799_v11 = vsel %vm1035_vm2, %v2354_v41, -inf  ;;  %v14823_v28 = vpop.f32.mrb[21].mxu1 }
 0x95a   :  { %2800 = vmax.xlane.f32.xlu1 %v2799_v11  ;;  %v2427_v44 = vpop.f32.mrb[22].mxu0 }
 0x95b   :  { %v14828_v30 = vpop.f32.mrb[23].mxu0  ;;  %v2802_v36 = vsel %vm1035_vm2, %v2427_v44, -inf }
 0x95c   :  { %2803 = vmax.xlane.f32.xlu0 %v2802_v36  ;;  %v2500_v12 = vpop.f32.mrb[22].mxu1 }
 0x95d   :  { %v14833_v38 = vpop.f32.mrb[23].mxu1  ;;  %v2805_v43 = vsel %vm1035_vm2, %v2500_v12, -inf }
 0x95e   :  { %v2573_v46 = vpop.f32.mrb[24].mxu0 }
 0x95f   :  { %v14838_v50 = vpop.f32.mrb[25].mxu0  ;;  %v2808_v57 = vsel %vm1035_vm2, %v2573_v46, -inf }
 0x960   :  { %v2646_v49 = vpop.f32.mrb[24].mxu1  ;;  %2806 = vmax.xlane.f32.xlu0 %v2805_v43 }
 0x961   :  { %v2811_v52 = vsel %vm1035_vm2, %v2646_v49, -inf  ;;  %v14843_v54 = vpop.f32.mrb[25].mxu1 }
 0x962   :  { %2812 = vmax.xlane.f32.xlu1 %v2811_v52  ;;  %v2719_v27 = vpop.f32.mrb[26].mxu0 }
 0x963   :  { %v14848_v58 = vpop.f32.mrb[27].mxu0  ;;  %v2814_v32 = vsel %vm1035_vm2, %v2719_v27, -inf }
 0x964   :  { %v2792_v60 = vpop.f32.mrb[26].mxu1  ;;  %2809 = vmax.xlane.f32.xlu0 %v2808_v57 }
 0x965   :  { %v2817_v61 = vsel %vm1035_vm2, %v2792_v60, -inf  ;;  %v14853_v1 = vpop.f32.mrb[27].mxu1 }
 0x966   :  { %2818 = vmax.xlane.f32.xlu1 %v2817_v61 }
 0x968   :  { %2815 = vmax.xlane.f32.xlu0 %v2814_v32 }
 0x9e5   :  { %v2798_v33 = vpop.xlane.xlu0 %2797 }
 0x9e6   :  { %v2820_v63 = vsub.f32 %v2281_v35, %v2798_v33 }
 0x9e7   :  { %v2801_v2 = vpop.xlane.xlu1 %2800 }
 0x9e8   :  { %v2828_v5 = vmul.f32 1.442695, %v2820_v63  ;;  %v2821_v7 = vsub.f32 %v2354_v41, %v2801_v2 }
 0x9e9   :  { %v2804_v8 = vpop.xlane.xlu0 %2803 }
 0x9ea   :  { %15570 = vpow2.f32 %v2828_v5  ;;  %v2830_v42 = vmul.f32 1.442695, %v2821_v7  ;;  %v2822_v10 = vsub.f32 %v2427_v44, %v2804_v8 }
 0x9ec   :  { %15572 = vpow2.f32 %v2830_v42  ;;  %v2832_v14 = vmul.f32 1.442695, %v2822_v10 }
 0x9ed   :  { %v2807_v15 = vpop.xlane.xlu0 %2806 }
 0x9ee   :  { %15574 = vpow2.f32 %v2832_v14  ;;  %v2823_v17 = vsub.f32 %v2500_v12, %v2807_v15 }
 0x9ef   :  { %v2813_v47 = vpop.xlane.xlu1 %2812 }
 0x9f0   :  { %v2834_v16 = vmul.f32 1.442695, %v2823_v17  ;;  %v2825_v19 = vsub.f32 %v2646_v49, %v2813_v47 }
 0x9f1   :  { %v2810_v20 = vpop.xlane.xlu0 %2809 }
 0x9f2   :  { %15576 = vpow2.f32 %v2834_v16  ;;  %v2838_v22 = vmul.f32 1.442695, %v2825_v19  ;;  %v2824_v23 = vsub.f32 %v2573_v46, %v2810_v20 }
 0x9f3   :  { %v2819_v55 = vpop.xlane.xlu1 %2818 }
 0x9f4   :  { %v15571_v24 = vpop.eup %15570  ;;  %15578 = vpow2.f32 %v2838_v22  ;;  %v2836_v21 = vmul.f32 1.442695, %v2824_v23  ;;  %v2827_v6 = vsub.f32 %v2792_v60, %v2819_v55 }
 0x9f5   :  { %v2816_v13 = vpop.xlane.xlu0 %2815  ;;  %v2844_v3 = vsel %vm1035_vm2, %v15571_v24, 0.0 }
 0x9f6   :  { %v15573_v26 = vpop.eup %15572  ;;  %15580 = vpow2.f32 %v2836_v21  ;;  %v2842_v29 = vmul.f32 1.442695, %v2827_v6  ;;  %v2826_v31 = vsub.f32 %v2719_v27, %v2816_v13  ;;  %2845 = vadd.xlane.f32.xlu0 %v2844_v3 }
 0x9f7   :  { %v2847_v35 = vsel %vm1035_vm2, %v15573_v26, 0.0 }
 0x9f8   :  { %v15575_v37 = vpop.eup %15574  ;;  %15582 = vpow2.f32 %v2842_v29  ;;  %v2840_v39 = vmul.f32 1.442695, %v2826_v31  ;;  %2848 = vadd.xlane.f32.xlu1 %v2847_v35 }
 0x9f9   :  { %v2850_v41 = vsel %vm1035_vm2, %v15575_v37, 0.0 }
 0x9fa   :  { %15584 = vpow2.f32 %v2840_v39  ;;  %2851 = vadd.xlane.f32.xlu0 %v2850_v41 }
 0x9fc   :  { %v15577_v11 = vpop.eup %15576 }
 0x9fd   :  { %v2853_v28 = vsel %vm1035_vm2, %v15577_v11, 0.0 }
 0x9fe   :  { %v15579_v44 = vpop.eup %15578  ;;  %2854 = vadd.xlane.f32.xlu1 %v2853_v28 }
 0x9ff   :  { %v2859_v36 = vsel %vm1035_vm2, %v15579_v44, 0.0 }
 0xa00   :  { %v15581_v30 = vpop.eup %15580 }
 0xa01   :  { %v2856_v12 = vsel %vm1035_vm2, %v15581_v30, 0.0 }
 0xa02   :  { %v15583_v38 = vpop.eup %15582  ;;  %2860 = vadd.xlane.f32.xlu1 %v2859_v36  ;;  %2857 = vadd.xlane.f32.xlu0 %v2856_v12  ;;  %v16826_v12 = vld [vmem:[%s18233_s5] sm:$0xff] }
 0xa03   :  { %v2865_v46 = vsel %vm1035_vm2, %v15583_v38, 0.0 }
 0xa04   :  { %v15585_v43 = vpop.eup %15584 }
 0xa05   :  { %v2862_v50 = vsel %vm1035_vm2, %v15585_v43, 0.0 }
 0xa06   :  { %2866 = vadd.xlane.f32.xlu1 %v2865_v46  ;;  %2863 = vadd.xlane.f32.xlu0 %v2862_v50 }
 0xa17   :  { %3656 = vrot.lane.b32.xlu1 %v16666_v62, %s16197_s27 }
 0xa1c   :  { %3646 = vrot.lane.b32.xlu0 %v16666_v62, %s16198_s6 }
 0xa83   :  { %v2846_v49 = vpop.xlane.xlu0 %2845 }
 0xa84   :  { %15586 = vrcp.f32 %v2846_v49 }
 0xa85   :  { %v2849_v52 = vpop.xlane.xlu1 %2848 }
 0xa86   :  { %15588 = vrcp.f32 %v2849_v52 }
 0xa87   :  { %v2852_v54 = vpop.xlane.xlu0 %2851 }
 0xa88   :  { %15590 = vrcp.f32 %v2852_v54 }
 0xa8b   :  { %v2855_v57 = vpop.xlane.xlu1 %2854 }
 0xa8c   :  { %15592 = vrcp.f32 %v2855_v57 }
 0xa8e   :  { %v15587_v27 = vpop.eup %15586 }
 0xa8f   :  { %v2861_v58 = vpop.xlane.xlu1 %2860  ;;  %v2858_v60 = vpop.xlane.xlu0 %2857  ;;  %v2876_v61 = vmul.f32 %v15587_v27, %v15571_v24 }
 0xa90   :  { %v15589_v1 = vpop.eup %15588  ;;  %15594 = vrcp.f32 %v2861_v58 }
 0xa91   :  { %15596 = vrcp.f32 %v2858_v60  ;;  %14857 = vmatmul.mubr.msk.f32.vlgmr.msra.gmra.mrb[28].mxu0 %vm110_vm1, %v2876_v61  ;;  %v2877_v32 = vmul.f32 %v15589_v1, %v15573_v26 }
 0xa92   :  { %v15591_v33 = vpop.eup %15590  ;;  %14865 = vmatpush3.msra.mxu0 %v16567_v25  ;;  %14866 = vmatprep.mubr.msk.f32.mxu0 %vm16195_vm0, %v16194_v0 }
 0xa93   :  { %14862 = vmatmul.mubr.msk.f32.vlgmr.msra.gmra.mrb[28].mxu1 %vm110_vm1, %v2877_v32  ;;  %v2867_v62 = vpop.xlane.xlu1 %2866  ;;  %v2864_v63 = vpop.xlane.xlu0 %2863  ;;  %v2878_v2 = vmul.f32 %v15591_v33, %v15575_v37  ;;  %14874 = vmatprep.subr.mxu0 %v16194_v0 }
 0xa94   :  { %15598 = vrcp.f32 %v2867_v62  ;;  %14870 = vmatpush3.msra.mxu1 %v16576_v40  ;;  %14871 = vmatprep.mubr.msk.f32.mxu1 %vm16195_vm0, %v16194_v0 }
 0xa95   :  { %15600 = vrcp.f32 %v2864_v63  ;;  %14867 = vmatmul.mubr.msk.f32.vlgmr.msra.gmra.mrb[30].mxu0 %vm110_vm1, %v2878_v2  ;;  %14879 = vmatprep.subr.mxu1 %v16194_v0 }
 0xa96   :  { %v15593_v25 = vpop.eup %15592  ;;  %14875 = vmatpush3.msra.mxu0 %v16574_v34  ;;  %14876 = vmatprep.mubr.msk.f32.mxu0 %vm16195_vm0, %v16194_v0 }
 0xa97   :  { %v2879_v5 = vmul.f32 %v15593_v25, %v15577_v11  ;;  %14884 = vmatprep.subr.mxu0 %v16194_v0  ;;  %v3647_v1 = vpop.permute.xlu0 %3646  ;;  %v3657_v25 = vpop.permute.xlu1 %3656 }
 0xa99   :  { %14872 = vmatmul.mubr.msk.f32.vlgmr.msra.gmra.mrb[30].mxu1 %vm110_vm1, %v2879_v5 }
 0xa9a   :  { %v15595_v40 = vpop.eup %15594  ;;  %14880 = vmatpush3.msra.mxu1 %v16590_v51  ;;  %14881 = vmatprep.mubr.msk.f32.mxu1 %vm16195_vm0, %v16194_v0 }
 0xa9b   :  { %v15597_v7 = vpop.eup %15596  ;;  %v2881_v8 = vmul.f32 %v15595_v40, %v15579_v44  ;;  %14889 = vmatprep.subr.mxu1 %v16194_v0 }
 0xa9c   :  { %v2880_v42 = vmul.f32 %v15597_v7, %v15581_v30 }
 0xa9d   :  { %14882 = vmatmul.mubr.msk.f32.vlgmr.msra.gmra.mrb[32].mxu1 %vm110_vm1, %v2881_v8 }
 0xa9e   :  { %v15599_v34 = vpop.eup %15598  ;;  %14877 = vmatmul.mubr.msk.f32.vlgmr.msra.gmra.mrb[32].mxu0 %vm110_vm1, %v2880_v42  ;;  %14890 = vmatpush3.msra.mxu1 %v16604_v56 }
 0xa9f   :  { %v15601_v10 = vpop.eup %15600  ;;  %14885 = vmatpush3.msra.mxu0 %v16584_v48  ;;  %14886 = vmatprep.mubr.msk.f32.mxu0 %vm16195_vm0, %v16194_v0  ;;  %v2883_v51 = vmul.f32 %v15599_v34, %v15583_v38  ;;  %v3469_v38 = vld [vmem:[#allocation6 + $0x8] sm:$0xff] }
 0xaa0   :  { %14891 = vmatprep.mubr.msk.f32.mxu1 %vm16195_vm0, %v16194_v0  ;;  %v2882_v14 = vmul.f32 %v15601_v10, %v15585_v43  ;;  %14894 = vmatprep.subr.mxu0 %v16194_v0 }
 0xaa1   :  { %14892 = vmatmul.mubr.msk.f32.vlgmr.msra.gmra.mrb[34].mxu1 %vm110_vm1, %v2883_v51  ;;  %14899 = vmatprep.subr.mxu1 %v16194_v0 }
 0xaa2   :  { %14887 = vmatmul.mubr.msk.f32.vlgmr.msra.gmra.mrb[34].mxu0 %vm110_vm1, %v2882_v14  ;;  %14900 = vmatpush3.msra.mxu1 %v16638_v53 }
 0xaa3   :  { %14895 = vmatpush3.msra.mxu0 %v16619_v59  ;;  %14896 = vmatprep.mubr.msk.f32.mxu0 %vm16195_vm0, %v16194_v0 }
 0xaa4   :  { %14901 = vmatprep.mubr.msk.f32.mxu1 %vm16195_vm0, %v16194_v0  ;;  %14904 = vmatprep.subr.mxu0 %v16194_v0 }
 0xaa5   :  { %14909 = vmatprep.subr.mxu1 %v16194_v0 }
 0xb64   :  { %v2953_v48 = vpop.f32.mrb[28].mxu0 }
 0xb65   :  { %v14858_v56 = vpop.f32.mrb[29].mxu0 }
 0xb66   :  { %v3026_v15 = vpop.f32.mrb[28].mxu1 }
 0xb67   :  { %v3478_v17 = vrot.slane %v3026_v15, 7  ;;  %v14863_v47 = vpop.f32.mrb[29].mxu1 }
 0xb68   :  { %v3099_v16 = vpop.f32.mrb[30].mxu0 }
 0xb69   :  { %v3479_v53 = vsel %vm1718_vm3, %v3478_v17, %v2953_v48  ;;  %v3480_v19 = vrot.slane %v3099_v16, 6  ;;  %v14868_v59 = vpop.f32.mrb[31].mxu0  ;;  %v3753_v48 = vld [vmem:[#allocation3 + $0x10] sm:$0xff] }
 0xb6a   :  { %v3762_v56 = vrot.slane %v3753_v48, %v16370_v9  ;;  %v3755_v15 = vcombine.high %v3753_v48, %v3753_v48  ;;  %v16854_v59 = vld [vmem:[%s18237_s9] ss:$0 sm:$0xff] }
 0xb6b   :  { %v3481_v20 = vsel %vm1721_vm4, %v3480_v19, %v3479_v53 }
 0xb6c   :  { %v3172_v22 = vpop.f32.mrb[30].mxu1  ;;  %v3770_v17 = vcombine.high %v3762_v56, %v3762_v56  ;;  %v3769_v47 = vrot.slane %v3755_v15, %v16370_v9  ;;  %v16902_v15 = vld [vmem:[#allocation8 + $0x30] sm:$0xff] }
 0xb6d   :  { %v3482_v23 = vrot.slane %v3172_v22, 5  ;;  %v14873_v55 = vpop.f32.mrb[31].mxu1 }
 0xb6e   :  { %v3792_v16 = vrot.slane %v3770_v17, %v16370_v9  ;;  %v3771_v22 = vcombine.high %v3769_v47, %v3769_v47  ;;  %v3785_v55 = vrot.slane %v3769_v47, %v16370_v9 }
 0xb6f   :  { %v3483_v24 = vsel %vm1724_vm5, %v3482_v23, %v3481_v20 }
 0xb70   :  { %v3318_v21 = vpop.f32.mrb[32].mxu1 }
 0xb71   :  { %v3245_v6 = vpop.f32.mrb[32].mxu0  ;;  %v3486_v13 = vrot.slane %v3318_v21, 3  ;;  %v14883_v3 = vpop.f32.mrb[33].mxu1 }
 0xb72   :  { %v3484_v26 = vrot.slane %v3245_v6, 4  ;;  %v14878_v29 = vpop.f32.mrb[33].mxu0  ;;  %v3811_v3 = vrot.slane %v3792_v16, %v16381_v18 }
 0xb73   :  { %v3799_v29 = vrot.slane %v3771_v22, %v16370_v9 }
 0xb74   :  { %v3485_v31 = vsel %vm1727_vm6, %v3484_v26, %v3483_v24  ;;  %v3464_v35 = vpop.f32.mrb[34].mxu1  ;;  %v3802_v24 = vcombine.high %v3792_v16, %v3792_v16  ;;  %v16906_v16 = vld [vmem:[#allocation8 + $0x38] sm:$0xff] }
 0xb75   :  { %v3487_v37 = vsel %vm1730_vm7, %v3486_v13, %v3485_v31  ;;  %v3391_v39 = vpop.f32.mrb[34].mxu0  ;;  %v3490_v41 = vrot.slane %v3464_v35, 1  ;;  %v14893_v11 = vpop.f32.mrb[35].mxu1 }
 0xb76   :  { %v3488_v28 = vrot.slane %v3391_v39, 2  ;;  %v14888_v44 = vpop.f32.mrb[35].mxu0  ;;  %v3801_v39 = vcombine.high %v3785_v55, %v3785_v55  ;;  %v3823_v11 = vrot.slane %v3785_v55, %v16381_v18 }
 0xb78   :  { %v3489_v30 = vsel %vm1733_vm8, %v3488_v28, %v3487_v37  ;;  %v16872_v28 = vld [vmem:[#allocation8] sm:$0xff] }
 0xb79   :  { %v3491_v36 = vsel %vm1736_vm9, %v3490_v41, %v3489_v30  ;;  %v3819_v41 = vrot.slane %v3802_v24, %v16381_v18 }
 0xb7a   :  { %14897 = vmatmul.mubr.msk.f32.vlgmr.msra.gmra.mrb[36].mxu0 %vm110_vm1, %v3491_v36 }
 0xb7b   :  { %14905 = vmatpush3.msra.mxu0 %v16826_v12  ;;  %14906 = vmatprep.mubr.msk.f32.mxu0 %vm16195_vm0, %v16194_v0 }
 0xb7c   :  { %14914 = vmatprep.subr.mxu0 %v16194_v0 }
 0xc4d   :  { %v3560_v43 = vpop.f32.mrb[36].mxu0 }
 0xc4e   :  { %v3564_v46 = vadd.f32 %v3560_v43, %v3469_v38  ;;  %v14898_v50 = vpop.f32.mrb[37].mxu0 }
 0xc50   :  { %v14233_v49 = vmul.f32 -1.442695, %v3564_v46  ;;  %v16877_v46 = vld [vmem:[#allocation8 + $0x8] sm:$0xff] }
 0xc51   :  { %v3845_v50 = vadd.f32 %v16877_v46, %v3811_v3 }
 0xc52   :  { %15602 = vpow2.f32 %v14233_v49  ;;  %v16880_v49 = vld [vmem:[#allocation8 + $0x10] sm:$0xff] }
 0xc5c   :  { %v15603_v52 = vpop.eup %15602 }
 0xc5d   :  { %v3568_v54 = vadd.f32 1.0, %v15603_v52 }
 0xc5f   :  { %15604 = vrcp.f32 %v3568_v54 }
 0xc69   :  { %v15605_v57 = vpop.eup %15604 }
 0xc6a   :  { %v3572_v27 = vmul.f32 %v15605_v57, %v3491_v36  ;;  %v3803_v57 = vcombine.high %v3799_v29, %v3799_v29 }
 0xc6c   :  { %14902 = vmatmul.mubr.msk.f32.vlgmr.msra.gmra.mrb[36].mxu1 %vm110_vm1, %v3572_v27  ;;  %v3827_v27 = vrot.slane %v3799_v29, %v16381_v18 }
 0xc6d   :  { %14911 = vmatprep.mubr.msk.f32.mxu1 %vm16195_vm0, %v16194_v0 }
 0xd3f   :  { %v3642_v58 = vpop.f32.mrb[36].mxu1 }
 0xd40   :  { %v3643_v60 = vadd.f32 %v16648_v4, %v3642_v58  ;;  %v14903_v61 = vpop.f32.mrb[37].mxu1 }
 0xd41   :  { %v16886_v61 = vld [vmem:[#allocation8 + $0x18] sm:$0xff] }
 0xd42   :  { %v3649_v32 = vadd.f32 %v3647_v1, %v3643_v60  ;;  %v3847_v1 = vadd.f32 %v16886_v61, %v3819_v41  ;;  %v16960_v41 = vld [vmem:[%s18232_s4 + $0x4] sm:$0x1] }
 0xd44   :  { %v14235_v33 = vmul.f32 -1.442695, %v3649_v32 }
 0xd46   :  { %15606 = vpow2.f32 %v14235_v33 }
 0xd50   :  { %v15607_v62 = vpop.eup %15606 }
 0xd51   :  { %v3653_v63 = vadd.f32 1.0, %v15607_v62 }
 0xd53   :  { %15608 = vrcp.f32 %v3653_v63  ;;  %v3831_v63 = vrot.slane %v3801_v39, %v16381_v18 }
 0xd55   :  { %v3850_v17 = vadd.f32 %v16902_v15, %v3831_v63 }
 0xd5d   :  { %v15609_v2 = vpop.eup %15608 }
 0xd5e   :  { %v3659_v5 = vmul.f32 %v15609_v2, %v3657_v25  ;;  %v3666_v4 = vsub.f32 1.0, %v15609_v2  ;;  %v3672_v34 = vmul.f32 %v15609_v2, %v16653_v45  ;;  %v3778_v45 = vrot.slane %v3762_v56, %v16370_v9  ;;  %v16892_v2 = vld [vmem:[#allocation8 + $0x20] sm:$0xff] }
 0xd5f   :  { %v3848_v25 = vadd.f32 %v16892_v2, %v3823_v11 }
 0xd60   :  { %3661 = vrot.lane.b32.xlu1 %v3659_v5, %s16199_s18  ;;  %v3800_v19 = vcombine.high %v3778_v45, %v3778_v45  ;;  %v3807_v21 = vrot.slane %v3778_v45, %v16381_v18 }
 0xd62   :  { %v3815_v26 = vrot.slane %v3800_v19, %v16381_v18  ;;  %v3844_v44 = vadd.f32 %v16872_v28, %v3807_v21 }
 0xd64   :  { %v3846_v52 = vadd.f32 %v16880_v49, %v3815_v26  ;;  %v16927_v26 = vld [vmem:[%s18232_s4 + $0x1] sm:$0x1] }
 0xdd2   :  { %v3662_v40 = vpop.permute.xlu1 %3661 }
 0xdd3   :  { %v3664_v7 = vadd.f32 %v3662_v40, %v3643_v60 }
 0xdd5   :  { %15610 = vtanh.f32 %v3664_v7 }
 0xddf   :  { %v15611_v8 = vpop.eup %15610 }
 0xde0   :  { %3668 = vrot.lane.b32.xlu1 %v15611_v8, %s16198_s6 }
 0xe52   :  { %v3669_v42 = vpop.permute.xlu1 %3668 }
 0xe53   :  { %v3671_v10 = vmul.f32 %v3669_v42, %v3666_v4  ;;  %v3835_v42 = vrot.slane %v3803_v57, %v16381_v18 }
 0xe55   :  { %v16839_v51 = vadd.f32 %v3672_v34, %v3671_v10  ;;  %v16898_v34 = vld [vmem:[#allocation8 + $0x28] sm:$0xff] }
 0xe56   :  { %v3849_v10 = vadd.f32 %v16898_v34, %v3827_v27 }
 0xe57   :  { %3675 = vrot.lane.b32.xlu0 %v16839_v51, %s16198_s6 }
 0xec9   :  { %v3676_v14 = vpop.permute.xlu0 %3675 }
 0xeca   :  { %3679 = vst.msk [vmem:[#allocation12 + $0x8] sm:$0xff] %vm110_vm1, %v3676_v14  ;;  %14907 = vmatmul.mubr.msk.f32.vlgmr.msra.gmra.mrb[38].mxu0 %vm110_vm1, %v3676_v14 }
 0xecb   :  { %14916 = vmatprep.mubr.msk.f32.mxu0 %vm16195_vm0, %v16194_v0 }
 0xf9d   :  { %v3748_v53 = vpop.f32.mrb[38].mxu0 }
 0xf9e   :  { %v16857_v20 = vadd.f32 %v16854_v59, %v3748_v53  ;;  %v14908_v23 = vpop.f32.mrb[39].mxu0  ;;  %v3851_v53 = vadd.f32 %v16906_v16, %v3835_v42 }
 0xfa0   :  { %v3853_v6 = vcombine.high %v16857_v20, %v16857_v20  ;;  %v3860_v13 = vrot.slane %v16857_v20, %v16370_v9 }
 0xfa2   :  { %v3867_v31 = vrot.slane %v3853_v6, %v16370_v9  ;;  %v3868_v35 = vcombine.high %v3860_v13, %v3860_v13  ;;  %v3876_v37 = vrot.slane %v3860_v13, %v16370_v9  ;;  %v16916_v13 = vld [vmem:[%s18232_s4] sm:$0x1] }
 0xfa4   :  { %v3869_v30 = vcombine.high %v3867_v31, %v3867_v31  ;;  %v3883_v36 = vrot.slane %v3867_v31, %v16370_v9  ;;  %v3890_v38 = vrot.slane %v3868_v35, %v16370_v9  ;;  %v3898_v43 = vcombine.high %v3876_v37, %v3876_v37  ;;  %v16938_v31 = vld [vmem:[%s18232_s4 + $0x2] sm:$0x1] }
 0xfa5   :  { %v3905_v54 = vrot.slane %v3876_v37, %v16381_v18  ;;  %v16949_v37 = vld [vmem:[%s18232_s4 + $0x3] sm:$0x1] }
 0xfa6   :  { %v3900_v58 = vcombine.high %v3890_v38, %v3890_v38  ;;  %v3909_v60 = vrot.slane %v3890_v38, %v16381_v18  ;;  %v3897_v32 = vrot.slane %v3869_v30, %v16370_v9  ;;  %v3913_v33 = vrot.slane %v3898_v43, %v16381_v18  ;;  %v16982_v30 = vld [vmem:[%s18232_s4 + $0x6] sm:$0x1]  ;;  %v16995_v38 = vld [vmem:[%s18232_s4 + $0x7] sm:$0x1]  ;;  %v17000_v43 = vld [vmem:[#allocation9 + $0x8] sm:$0xff] }
 0xfa7   :  { %v3942_v62 = vadd.f32 %v3905_v54, %v3844_v44  ;;  %v3899_v5 = vcombine.high %v3883_v36, %v3883_v36  ;;  %v3921_v7 = vrot.slane %v3883_v36, %v16381_v18  ;;  %v16971_v44 = vld [vmem:[%s18232_s4 + $0x5] sm:$0x1]  ;;  %v16987_v36 = vld [vmem:[#allocation9] sm:$0xff] }
 0xfa8   :  { %v3917_v40 = vrot.slane %v3900_v58, %v16381_v18  ;;  %v3943_v8 = vadd.f32 %v3909_v60, %v3845_v50  ;;  %v3944_v4 = vadd.f32 %v3913_v33, %v3846_v52  ;;  %v3901_v14 = vcombine.high %v3897_v32, %v3897_v32 }
 0xfa9   :  { %15612 = vtanh.f32 %v3942_v62  ;;  %v3925_v48 = vrot.slane %v3897_v32, %v16381_v18  ;;  %v3929_v45 = vrot.slane %v3899_v5, %v16381_v18  ;;  %v3946_v47 = vadd.f32 %v3921_v7, %v3848_v25 }
 0xfaa   :  { %v3945_v56 = vadd.f32 %v3917_v40, %v3847_v1  ;;  %15614 = vtanh.f32 %v3943_v8  ;;  %v3933_v19 = vrot.slane %v3901_v14, %v16381_v18 }
 0xfab   :  { %15616 = vtanh.f32 %v3944_v4  ;;  %v3947_v22 = vadd.f32 %v3925_v48, %v3849_v10  ;;  %v3948_v23 = vadd.f32 %v3929_v45, %v3850_v17 }
 0xfac   :  { %15618 = vtanh.f32 %v3945_v56  ;;  %v3949_v24 = vadd.f32 %v3933_v19, %v3851_v53 }
 0xfad   :  { %15620 = vtanh.f32 %v3946_v47 }
 0xfae   :  { %15622 = vtanh.f32 %v3947_v22 }
 0xfaf   :  { %15624 = vtanh.f32 %v3948_v23 }
 0xfb0   :  { %15626 = vtanh.f32 %v3949_v24 }
 0xfb3   :  { %v15613_v55 = vpop.eup %15612 }
 0xfb4   :  { %14910 = vmatpush3.xpose.msk.msra.mxu1 %vm110_vm1, %v15613_v55  ;;  %v15615_v21 = vpop.eup %15614 }
 0xfb5   :  { %14919 = vmatprep.subr.mxu1 %v16194_v0  ;;  %14915 = vmatpush3.xpose.msk.msra.mxu0 %vm110_vm1, %v15615_v21  ;;  %v15617_v6 = vpop.eup %15616 }
 0xfb6   :  { %14924 = vmatprep.subr.mxu0 %v16194_v0  ;;  %v15619_v3 = vpop.eup %15618 }
 0xfb7   :  { %14912 = vmatmul.mubr.msk.f32.vlgmr.msra.gmra.mrb[38].mxu1 %vm110_vm1, %v16916_v13  ;;  %v15621_v29 = vpop.eup %15620 }
 0xfb8   :  { %14920 = vmatpush3.xpose.msk.msra.mxu1 %vm110_vm1, %v15617_v6  ;;  %14921 = vmatprep.mubr.msk.f32.mxu1 %vm16195_vm0, %v16194_v0  ;;  %v15623_v35 = vpop.eup %15622 }
 0xfb9   :  { %14917 = vmatmul.mubr.msk.f32.vlgmr.msra.gmra.mrb[40].mxu0 %vm110_vm1, %v16927_v26  ;;  %14929 = vmatprep.subr.mxu1 %v16194_v0  ;;  %v15625_v39 = vpop.eup %15624 }
 0xfba   :  { %14925 = vmatpush3.xpose.msk.msra.mxu0 %vm110_vm1, %v15619_v3  ;;  %14926 = vmatprep.mubr.msk.f32.mxu0 %vm16195_vm0, %v16194_v0  ;;  %v15627_v11 = vpop.eup %15626 }
 0xfbb   :  { %14922 = vmatmul.mubr.msk.f32.vlgmr.msra.gmra.mrb[40].mxu1 %vm110_vm1, %v16938_v31  ;;  %14934 = vmatprep.subr.mxu0 %v16194_v0 }
 0xfbc   :  { %14930 = vmatpush3.xpose.msk.msra.mxu1 %vm110_vm1, %v15621_v29  ;;  %14931 = vmatprep.mubr.msk.f32.mxu1 %vm16195_vm0, %v16194_v0 }
 0xfbd   :  { %14927 = vmatmul.mubr.msk.f32.vlgmr.msra.gmra.mrb[42].mxu0 %vm110_vm1, %v16949_v37  ;;  %14939 = vmatprep.subr.mxu1 %v16194_v0 }
 0xfbe   :  { %14935 = vmatpush3.xpose.msk.msra.mxu0 %vm110_vm1, %v15623_v35  ;;  %14936 = vmatprep.mubr.msk.f32.mxu0 %vm16195_vm0, %v16194_v0 }
 0xfbf   :  { %14932 = vmatmul.mubr.msk.f32.vlgmr.msra.gmra.mrb[42].mxu1 %vm110_vm1, %v16960_v41  ;;  %14944 = vmatprep.subr.mxu0 %v16194_v0 }
 0xfc0   :  { %14940 = vmatpush3.xpose.msk.msra.mxu1 %vm110_vm1, %v15625_v39  ;;  %14941 = vmatprep.mubr.msk.f32.mxu1 %vm16195_vm0, %v16194_v0 }
 0xfc1   :  { %14937 = vmatmul.mubr.msk.f32.vlgmr.msra.gmra.mrb[44].mxu0 %vm110_vm1, %v16971_v44  ;;  %14949 = vmatprep.subr.mxu1 %v16194_v0 }
 0xfc2   :  { %14945 = vmatpush3.xpose.msk.msra.mxu0 %vm110_vm1, %v15627_v11  ;;  %14946 = vmatprep.mubr.msk.f32.mxu0 %vm16195_vm0, %v16194_v0 }
 0xfc3   :  { %14942 = vmatmul.mubr.msk.f32.vlgmr.msra.gmra.mrb[44].mxu1 %vm110_vm1, %v16982_v30  ;;  %14954 = vmatprep.subr.mxu0 %v16194_v0 }
 0xfc4   :  { %14950 = vmatpush3.msra.mxu1 %v16987_v36  ;;  %14951 = vmatprep.mubr.msk.f32.mxu1 %vm16195_vm0, %v16194_v0 }
 0xfc5   :  { %14947 = vmatmul.mubr.msk.f32.vlgmr.msra.gmra.mrb[46].mxu0 %vm110_vm1, %v16995_v38  ;;  %14959 = vmatprep.subr.mxu1 %v16194_v0 }
 0xfc6   :  { %14955 = vmatpush3.msra.mxu0 %v17000_v43  ;;  %14956 = vmatprep.mubr.msk.f32.mxu0 %vm16195_vm0, %v16194_v0 }
 0xfc7   :  { %14964 = vmatprep.subr.mxu0 %v16194_v0 }
0x108a   :  { %v4027_v50 = vpop.f32.mrb[38].mxu1 }
0x108b   :  { %v4542_v52 = vsel %vm1035_vm2, %v4027_v50, -inf  ;;  %v14913_v54 = vpop.f32.mrb[39].mxu1 }
0x108c   :  { %4543 = vmax.xlane.f32.xlu1 %v4542_v52  ;;  %v4100_v57 = vpop.f32.mrb[40].mxu0 }
0x108d   :  { %v14918_v27 = vpop.f32.mrb[41].mxu0  ;;  %v4545_v58 = vsel %vm1035_vm2, %v4100_v57, -inf }
0x108e   :  { %4546 = vmax.xlane.f32.xlu0 %v4545_v58  ;;  %v4173_v60 = vpop.f32.mrb[40].mxu1 }
0x108f   :  { %v14923_v1 = vpop.f32.mrb[41].mxu1  ;;  %v4548_v32 = vsel %vm1035_vm2, %v4173_v60, -inf }
0x1090   :  { %v4246_v33 = vpop.f32.mrb[42].mxu0 }
0x1091   :  { %v14928_v62 = vpop.f32.mrb[43].mxu0  ;;  %v4551_v40 = vsel %vm1035_vm2, %v4246_v33, -inf }
0x1092   :  { %v4319_v63 = vpop.f32.mrb[42].mxu1  ;;  %4549 = vmax.xlane.f32.xlu0 %v4548_v32 }
0x1093   :  { %v4554_v25 = vsel %vm1035_vm2, %v4319_v63, -inf  ;;  %v14933_v5 = vpop.f32.mrb[43].mxu1 }
0x1094   :  { %4555 = vmax.xlane.f32.xlu1 %v4554_v25  ;;  %v4392_v7 = vpop.f32.mrb[44].mxu0 }
0x1095   :  { %v14938_v8 = vpop.f32.mrb[45].mxu0  ;;  %v4557_v10 = vsel %vm1035_vm2, %v4392_v7, -inf }
0x1096   :  { %v4465_v4 = vpop.f32.mrb[44].mxu1  ;;  %4552 = vmax.xlane.f32.xlu0 %v4551_v40 }
0x1097   :  { %v4560_v42 = vsel %vm1035_vm2, %v4465_v4, -inf  ;;  %v14943_v14 = vpop.f32.mrb[45].mxu1 }
0x1098   :  { %4561 = vmax.xlane.f32.xlu1 %v4560_v42  ;;  %v4538_v48 = vpop.f32.mrb[46].mxu0 }
0x1099   :  { %v14948_v56 = vpop.f32.mrb[47].mxu0  ;;  %v4563_v17 = vsel %vm1035_vm2, %v4538_v48, -inf }
0x109a   :  { %4558 = vmax.xlane.f32.xlu0 %v4557_v10 }
0x109e   :  { %4564 = vmax.xlane.f32.xlu0 %v4563_v17 }
0x1119   :  { %v4544_v45 = vpop.xlane.xlu1 %4543 }
0x111a   :  { %v4566_v47 = vsub.f32 %v4027_v50, %v4544_v45 }
0x111b   :  { %v4547_v53 = vpop.xlane.xlu0 %4546 }
0x111c   :  { %v4574_v19 = vmul.f32 1.442695, %v4566_v47  ;;  %v4567_v22 = vsub.f32 %v4100_v57, %v4547_v53 }
0x111e   :  { %15628 = vpow2.f32 %v4574_v19  ;;  %v4576_v23 = vmul.f32 1.442695, %v4567_v22 }
0x111f   :  { %v4550_v55 = vpop.xlane.xlu0 %4549 }
0x1120   :  { %15630 = vpow2.f32 %v4576_v23  ;;  %v4568_v24 = vsub.f32 %v4173_v60, %v4550_v55 }
0x1121   :  { %v4556_v21 = vpop.xlane.xlu1 %4555 }
0x1122   :  { %v4578_v6 = vmul.f32 1.442695, %v4568_v24  ;;  %v4570_v3 = vsub.f32 %v4319_v63, %v4556_v21 }
0x1123   :  { %v4553_v29 = vpop.xlane.xlu0 %4552 }
0x1124   :  { %15632 = vpow2.f32 %v4578_v6  ;;  %v4582_v35 = vmul.f32 1.442695, %v4570_v3  ;;  %v4569_v39 = vsub.f32 %v4246_v33, %v4553_v29 }
0x1125   :  { %v4562_v11 = vpop.xlane.xlu1 %4561 }
0x1126   :  { %15634 = vpow2.f32 %v4582_v35  ;;  %v4580_v52 = vmul.f32 1.442695, %v4569_v39  ;;  %v4572_v54 = vsub.f32 %v4465_v4, %v4562_v11  ;;  %v17040_v39 = vld [vmem:[#allocation9 + $0x18] sm:$0xff] }
0x1127   :  { %v4559_v50 = vpop.xlane.xlu0 %4558 }
0x1128   :  { %v15629_v27 = vpop.eup %15628  ;;  %15636 = vpow2.f32 %v4580_v52  ;;  %v4586_v57 = vmul.f32 1.442695, %v4572_v54  ;;  %v4571_v58 = vsub.f32 %v4392_v7, %v4559_v50  ;;  %v17047_v50 = vld [vmem:[#allocation9 + $0x20] sm:$0xff] }
0x1129   :  { %v4590_v1 = vsel %vm1035_vm2, %v15629_v27, 0.0 }
0x112a   :  { %v15631_v32 = vpop.eup %15630  ;;  %15638 = vpow2.f32 %v4586_v57  ;;  %v4584_v60 = vmul.f32 1.442695, %v4571_v58  ;;  %4591 = vadd.xlane.f32.xlu1 %v4590_v1 }
0x112b   :  { %v4565_v62 = vpop.xlane.xlu0 %4564  ;;  %v4593_v63 = vsel %vm1035_vm2, %v15631_v32, 0.0 }
0x112c   :  { %15640 = vpow2.f32 %v4584_v60  ;;  %v4573_v33 = vsub.f32 %v4538_v48, %v4565_v62  ;;  %4594 = vadd.xlane.f32.xlu0 %v4593_v63  ;;  %v17058_v62 = vld [vmem:[#allocation9 + $0x28] sm:$0xff] }
0x112e   :  { %v15633_v25 = vpop.eup %15632  ;;  %v4588_v5 = vmul.f32 1.442695, %v4573_v33 }
0x112f   :  { %v4596_v40 = vsel %vm1035_vm2, %v15633_v25, 0.0 }
0x1130   :  { %v15635_v8 = vpop.eup %15634  ;;  %15642 = vpow2.f32 %v4588_v5  ;;  %4597 = vadd.xlane.f32.xlu1 %v4596_v40  ;;  %v17070_v5 = vld [vmem:[#allocation11] sm:$0xff]  ;;  %v17073_v40 = vld [vmem:[#allocation9 + $0x38] sm:$0xff] }
0x1131   :  { %v4602_v4 = vsel %vm1035_vm2, %v15635_v8, 0.0 }
0x1132   :  { %v15637_v7 = vpop.eup %15636 }
0x1133   :  { %v4599_v42 = vsel %vm1035_vm2, %v15637_v7, 0.0 }
0x1134   :  { %v17019_v10 = vpop.eup %15638  ;;  %4603 = vadd.xlane.f32.xlu1 %v4602_v4  ;;  %4600 = vadd.xlane.f32.xlu0 %v4599_v42 }
0x1135   :  { %v4608_v48 = vsel %vm1035_vm2, %v17019_v10, 0.0 }
0x1136   :  { %v15641_v14 = vpop.eup %15640 }
0x1137   :  { %v4605_v56 = vsel %vm1035_vm2, %v15641_v14, 0.0 }
0x1138   :  { %4609 = vadd.xlane.f32.xlu1 %v4608_v48  ;;  %4606 = vadd.xlane.f32.xlu0 %v4605_v56 }
0x113a   :  { %v17024_v17 = vpop.eup %15642 }
0x113b   :  { %v4611_v45 = vsel %vm1035_vm2, %v17024_v17, 0.0 }
0x113c   :  { %4612 = vadd.xlane.f32.xlu0 %v4611_v45 }
0x1149   :  { %5392 = vrot.lane.b32.xlu1 %v16857_v20, %s16198_s6 }
0x1152   :  { %5402 = vrot.lane.b32.xlu0 %v16857_v20, %s16197_s27  ;;  %v17033_v20 = vld [vmem:[#allocation9 + $0x10] sm:$0xff] }
0x11b7   :  { %v4592_v47 = vpop.xlane.xlu1 %4591 }
0x11b8   :  { %15644 = vrcp.f32 %v4592_v47 }
0x11b9   :  { %v4595_v53 = vpop.xlane.xlu0 %4594 }
0x11ba   :  { %15646 = vrcp.f32 %v4595_v53 }
0x11bd   :  { %v4598_v19 = vpop.xlane.xlu1 %4597 }
0x11be   :  { %15648 = vrcp.f32 %v4598_v19 }
0x11c1   :  { %v4604_v22 = vpop.xlane.xlu1 %4603  ;;  %v4601_v23 = vpop.xlane.xlu0 %4600 }
0x11c2   :  { %v15645_v55 = vpop.eup %15644  ;;  %15650 = vrcp.f32 %v4604_v22 }
0x11c3   :  { %15652 = vrcp.f32 %v4601_v23  ;;  %v4622_v24 = vmul.f32 %v15645_v55, %v15629_v27 }
0x11c4   :  { %v15647_v21 = vpop.eup %15646 }
0x11c5   :  { %14952 = vmatmul.mubr.msk.f32.vlgmr.msra.gmra.mrb[46].mxu1 %vm110_vm1, %v4622_v24  ;;  %v4610_v6 = vpop.xlane.xlu1 %4609  ;;  %v4607_v3 = vpop.xlane.xlu0 %4606  ;;  %v4623_v29 = vmul.f32 %v15647_v21, %v15631_v32  ;;  %v17055_v32 = vld [vmem:[#allocation9 + $0x30] sm:$0xff] }
0x11c6   :  { %15654 = vrcp.f32 %v4610_v6  ;;  %14960 = vmatpush3.msra.mxu1 %v17033_v20  ;;  %14961 = vmatprep.mubr.msk.f32.mxu1 %vm16195_vm0, %v16194_v0 }
0x11c7   :  { %15656 = vrcp.f32 %v4607_v3  ;;  %14957 = vmatmul.mubr.msk.f32.vlgmr.msra.gmra.mrb[48].mxu0 %vm110_vm1, %v4623_v29  ;;  %14969 = vmatprep.subr.mxu1 %v16194_v0 }
0x11c8   :  { %v15649_v35 = vpop.eup %15648  ;;  %14965 = vmatpush3.msra.mxu0 %v17040_v39  ;;  %14966 = vmatprep.mubr.msk.f32.mxu0 %vm16195_vm0, %v16194_v0 }
0x11c9   :  { %v4613_v11 = vpop.xlane.xlu0 %4612  ;;  %v4624_v52 = vmul.f32 %v15649_v35, %v15633_v25  ;;  %14974 = vmatprep.subr.mxu0 %v16194_v0 }
0x11ca   :  { %15658 = vrcp.f32 %v4613_v11 }
0x11cb   :  { %14962 = vmatmul.mubr.msk.f32.vlgmr.msra.gmra.mrb[48].mxu1 %vm110_vm1, %v4624_v52 }
0x11cc   :  { %v15651_v54 = vpop.eup %15650  ;;  %14970 = vmatpush3.msra.mxu1 %v17047_v50  ;;  %14971 = vmatprep.mubr.msk.f32.mxu1 %vm16195_vm0, %v16194_v0 }
0x11cd   :  { %v15653_v27 = vpop.eup %15652  ;;  %v4626_v57 = vmul.f32 %v15651_v54, %v15635_v8  ;;  %14979 = vmatprep.subr.mxu1 %v16194_v0 }
0x11ce   :  { %v4625_v58 = vmul.f32 %v15653_v27, %v15637_v7  ;;  %v17087_v7 = vld [vmem:[%s18235_s7] sm:$0xff] }
0x11cf   :  { %14972 = vmatmul.mubr.msk.f32.vlgmr.msra.gmra.mrb[50].mxu1 %vm110_vm1, %v4626_v57 }
0x11d0   :  { %v15655_v1 = vpop.eup %15654  ;;  %14967 = vmatmul.mubr.msk.f32.vlgmr.msra.gmra.mrb[50].mxu0 %vm110_vm1, %v4625_v58  ;;  %14980 = vmatpush3.msra.mxu1 %v17055_v32 }
0x11d1   :  { %v15657_v60 = vpop.eup %15656  ;;  %14975 = vmatpush3.msra.mxu0 %v17058_v62  ;;  %14976 = vmatprep.mubr.msk.f32.mxu0 %vm16195_vm0, %v16194_v0  ;;  %v4628_v63 = vmul.f32 %v15655_v1, %v17019_v10 }
0x11d2   :  { %14981 = vmatprep.mubr.msk.f32.mxu1 %vm16195_vm0, %v16194_v0  ;;  %v4627_v33 = vmul.f32 %v15657_v60, %v15641_v14  ;;  %14984 = vmatprep.subr.mxu0 %v16194_v0 }
0x11d3   :  { %14982 = vmatmul.mubr.msk.f32.vlgmr.msra.gmra.mrb[52].mxu1 %vm110_vm1, %v4628_v63  ;;  %14989 = vmatprep.subr.mxu1 %v16194_v0 }
0x11d4   :  { %v15659_v25 = vpop.eup %15658  ;;  %14977 = vmatmul.mubr.msk.f32.vlgmr.msra.gmra.mrb[52].mxu0 %vm110_vm1, %v4627_v33  ;;  %14990 = vmatpush3.msra.mxu1 %v17070_v5 }
0x11d5   :  { %14985 = vmatpush3.msra.mxu0 %v17073_v40  ;;  %14986 = vmatprep.mubr.msk.f32.mxu0 %vm16195_vm0, %v16194_v0  ;;  %v4629_v8 = vmul.f32 %v15659_v25, %v17024_v17  ;;  %v5215_v25 = vld [vmem:[#allocation6 + $0x10] sm:$0xff] }
0x11d6   :  { %14991 = vmatprep.mubr.msk.f32.mxu1 %vm16195_vm0, %v16194_v0  ;;  %14994 = vmatprep.subr.mxu0 %v16194_v0 }
0x11d7   :  { %14999 = vmatprep.subr.mxu1 %v16194_v0 }
0x11d8   :  { %14987 = vmatmul.mubr.msk.f32.vlgmr.msra.gmra.mrb[54].mxu0 %vm110_vm1, %v4629_v8 }
0x11d9   :  { %14995 = vmatpush3.msra.mxu0 %v17087_v7  ;;  %14996 = vmatprep.mubr.msk.f32.mxu0 %vm16195_vm0, %v16194_v0 }
0x11da   :  { %15004 = vmatprep.subr.mxu0 %v16194_v0 }
0x1298   :  { %v4699_v4 = vpop.f32.mrb[46].mxu1 }
0x1299   :  { %v14953_v42 = vpop.f32.mrb[47].mxu1 }
0x129a   :  { %v4772_v10 = vpop.f32.mrb[48].mxu0 }
0x129b   :  { %v5224_v14 = vrot.slane %v4772_v10, 7  ;;  %v14958_v48 = vpop.f32.mrb[49].mxu0 }
0x129d   :  { %v5225_v56 = vsel %vm1718_vm3, %v5224_v14, %v4699_v4 }
0x129e   :  { %v4845_v17 = vpop.f32.mrb[48].mxu1 }
0x129f   :  { %v5226_v45 = vrot.slane %v4845_v17, 6  ;;  %v14963_v47 = vpop.f32.mrb[49].mxu1 }
0x12a1   :  { %v5227_v53 = vsel %vm1721_vm4, %v5226_v45, %v5225_v56  ;;  %v17111_v45 = vld [vmem:[%s18236_s8] ss:$0 sm:$0xff] }
0x12a2   :  { %v4991_v19 = vpop.f32.mrb[50].mxu1 }
0x12a3   :  { %v4918_v22 = vpop.f32.mrb[50].mxu0  ;;  %v5230_v23 = vrot.slane %v4991_v19, 4  ;;  %v14973_v55 = vpop.f32.mrb[51].mxu1 }
0x12a4   :  { %v5228_v24 = vrot.slane %v4918_v22, 5  ;;  %v14968_v21 = vpop.f32.mrb[51].mxu0  ;;  %v5393_v19 = vpop.permute.xlu1 %5392 }
0x12a6   :  { %v5229_v6 = vsel %vm1724_vm5, %v5228_v24, %v5227_v53  ;;  %v5137_v3 = vpop.f32.mrb[52].mxu1 }
0x12a7   :  { %v5231_v29 = vsel %vm1727_vm6, %v5230_v23, %v5229_v6  ;;  %v5064_v35 = vpop.f32.mrb[52].mxu0  ;;  %v5234_v11 = vrot.slane %v5137_v3, 2  ;;  %v14983_v52 = vpop.f32.mrb[53].mxu1 }
0x12a8   :  { %v5232_v54 = vrot.slane %v5064_v35, 3  ;;  %v14978_v27 = vpop.f32.mrb[53].mxu0  ;;  %v5403_v6 = vpop.permute.xlu0 %5402 }
0x12aa   :  { %v5233_v57 = vsel %vm1730_vm7, %v5232_v54, %v5231_v29 }
0x12ab   :  { %v5235_v58 = vsel %vm1733_vm8, %v5234_v11, %v5233_v57  ;;  %v5210_v1 = vpop.f32.mrb[54].mxu0 }
0x12ac   :  { %v5236_v60 = vrot.slane %v5210_v1, 1  ;;  %v14988_v63 = vpop.f32.mrb[55].mxu0 }
0x12ae   :  { %v5237_v33 = vsel %vm1736_vm9, %v5236_v60, %v5235_v58  ;;  %v5499_v60 = vld [vmem:[#allocation3 + $0x18] sm:$0xff] }
0x12af   :  { %14992 = vmatmul.mubr.msk.f32.vlgmr.msra.gmra.mrb[54].mxu1 %vm110_vm1, %v5237_v33  ;;  %v5508_v63 = vrot.slane %v5499_v60, %v16370_v9 }
0x12b0   :  { %15000 = vmatpush3.msra.mxu1 %v16826_v12  ;;  %15001 = vmatprep.mubr.msk.f32.mxu1 %vm16195_vm0, %v16194_v0 }
0x12b1   :  { %15009 = vmatprep.subr.mxu1 %v16194_v0 }
0x1382   :  { %v5306_v8 = vpop.f32.mrb[54].mxu1 }
0x1383   :  { %v5310_v4 = vadd.f32 %v5306_v8, %v5215_v25  ;;  %v14993_v42 = vpop.f32.mrb[55].mxu1  ;;  %v5516_v25 = vcombine.high %v5508_v63, %v5508_v63 }
0x1385   :  { %v14262_v10 = vmul.f32 -1.442695, %v5310_v4  ;;  %v5538_v4 = vrot.slane %v5516_v25, %v16370_v9 }
0x1387   :  { %15660 = vpow2.f32 %v14262_v10 }
0x1391   :  { %v15661_v14 = vpop.eup %15660 }
0x1392   :  { %v5314_v48 = vadd.f32 1.0, %v15661_v14 }
0x1394   :  { %15662 = vrcp.f32 %v5314_v48 }
0x139e   :  { %v15663_v56 = vpop.eup %15662 }
0x139f   :  { %v5318_v17 = vmul.f32 %v15663_v56, %v5237_v33  ;;  %v5501_v33 = vcombine.high %v5499_v60, %v5499_v60 }
0x13a1   :  { %14997 = vmatmul.mubr.msk.f32.vlgmr.msra.gmra.mrb[56].mxu0 %vm110_vm1, %v5318_v17  ;;  %v5515_v8 = vrot.slane %v5501_v33, %v16370_v9 }
0x13a2   :  { %15006 = vmatprep.mubr.msk.f32.mxu0 %vm16195_vm0, %v16194_v0 }
0x13a3   :  { %v5517_v48 = vcombine.high %v5515_v8, %v5515_v8  ;;  %v5531_v17 = vrot.slane %v5515_v8, %v16370_v9 }
0x1474   :  { %v5388_v12 = vpop.f32.mrb[56].mxu0 }
0x1475   :  { %v5389_v47 = vadd.f32 %v17111_v45, %v5388_v12  ;;  %v14998_v53 = vpop.f32.mrb[57].mxu0  ;;  %v5548_v12 = vcombine.high %v5538_v4, %v5538_v4 }
0x1477   :  { %v5395_v22 = vadd.f32 %v5393_v19, %v5389_v47 }
0x1479   :  { %v14264_v23 = vmul.f32 -1.442695, %v5395_v22  ;;  %v5557_v22 = vrot.slane %v5538_v4, %v16381_v18 }
0x147b   :  { %15664 = vpow2.f32 %v14264_v23 }
0x1485   :  { %v15665_v55 = vpop.eup %15664 }
0x1486   :  { %v5399_v24 = vadd.f32 1.0, %v15665_v55 }
0x1488   :  { %15666 = vrcp.f32 %v5399_v24 }
0x1492   :  { %v15667_v21 = vpop.eup %15666 }
0x1493   :  { %v5405_v3 = vmul.f32 %v15667_v21, %v5403_v6  ;;  %v5412_v52 = vsub.f32 1.0, %v15667_v21  ;;  %v5418_v27 = vmul.f32 %v15667_v21, %v16839_v51  ;;  %v5524_v51 = vrot.slane %v5508_v63, %v16370_v9 }
0x1494   :  { %v5547_v6 = vcombine.high %v5531_v17, %v5531_v17 }
0x1495   :  { %5407 = vrot.lane.b32.xlu1 %v5405_v3, %s16199_s18  ;;  %v5546_v10 = vcombine.high %v5524_v51, %v5524_v51  ;;  %v5565_v3 = vrot.slane %v5548_v12, %v16381_v18 }
0x1497   :  { %v5561_v23 = vrot.slane %v5546_v10, %v16381_v18  ;;  %v5577_v10 = vrot.slane %v5547_v6, %v16381_v18 }
0x1507   :  { %v5408_v29 = vpop.permute.xlu1 %5407 }
0x1508   :  { %v5410_v35 = vadd.f32 %v5408_v29, %v5389_v47  ;;  %v5553_v47 = vrot.slane %v5524_v51, %v16381_v18  ;;  %v5569_v29 = vrot.slane %v5531_v17, %v16381_v18 }
0x150a   :  { %15668 = vtanh.f32 %v5410_v35  ;;  %v5590_v35 = vadd.f32 %v16872_v28, %v5553_v47  ;;  %v5593_v28 = vadd.f32 %v16886_v61, %v5565_v3 }
0x1514   :  { %v15669_v11 = vpop.eup %15668 }
0x1515   :  { %5414 = vrot.lane.b32.xlu1 %v15669_v11, %s16198_s6 }
0x1587   :  { %v5415_v54 = vpop.permute.xlu1 %5414 }
0x1588   :  { %v5417_v57 = vmul.f32 %v5415_v54, %v5412_v52 }
0x158a   :  { %v17117_v58 = vadd.f32 %v5418_v27, %v5417_v57  ;;  %v5591_v57 = vadd.f32 %v16877_v46, %v5557_v22  ;;  %v5594_v46 = vadd.f32 %v16892_v2, %v5569_v29 }
0x158c   :  { %5421 = vrot.lane.b32.xlu1 %v17117_v58, %s16198_s6 }
0x15fe   :  { %v5422_v1 = vpop.permute.xlu1 %5421 }
0x15ff   :  { %5425 = vst.msk [vmem:[#allocation12 + $0x10] sm:$0xff] %vm110_vm1, %v5422_v1  ;;  %15002 = vmatmul.mubr.msk.f32.vlgmr.msra.gmra.mrb[56].mxu1 %vm110_vm1, %v5422_v1  ;;  %v5592_v1 = vadd.f32 %v16880_v49, %v5561_v23  ;;  %v5596_v23 = vadd.f32 %v16902_v15, %v5577_v10 }
0x1600   :  { %15011 = vmatprep.mubr.msk.f32.mxu1 %vm16195_vm0, %v16194_v0 }
0x16d2   :  { %v5494_v42 = vpop.f32.mrb[56].mxu1 }
0x16d3   :  { %v17130_v14 = vadd.f32 %v16854_v59, %v5494_v42  ;;  %v15003_v56 = vpop.f32.mrb[57].mxu1  ;;  %v5545_v59 = vrot.slane %v5517_v48, %v16370_v9 }
0x16d5   :  { %v5599_v53 = vcombine.high %v17130_v14, %v17130_v14  ;;  %v5606_v19 = vrot.slane %v17130_v14, %v16370_v9  ;;  %v5549_v63 = vcombine.high %v5545_v59, %v5545_v59  ;;  %v5573_v33 = vrot.slane %v5545_v59, %v16381_v18 }
0x16d7   :  { %v5613_v55 = vrot.slane %v5599_v53, %v16370_v9  ;;  %v5614_v24 = vcombine.high %v5606_v19, %v5606_v19  ;;  %v5622_v21 = vrot.slane %v5606_v19, %v16370_v9  ;;  %v5581_v47 = vrot.slane %v5549_v63, %v16381_v18 }
0x16d8   :  { %v5595_v61 = vadd.f32 %v16898_v34, %v5573_v33 }
0x16d9   :  { %v5615_v11 = vcombine.high %v5613_v55, %v5613_v55  ;;  %v5629_v52 = vrot.slane %v5613_v55, %v16370_v9  ;;  %v5636_v54 = vrot.slane %v5614_v24, %v16370_v9  ;;  %v5644_v27 = vcombine.high %v5622_v21, %v5622_v21 }
0x16da   :  { %v5651_v60 = vrot.slane %v5622_v21, %v16381_v18  ;;  %v5597_v55 = vadd.f32 %v16906_v16, %v5581_v47 }
0x16db   :  { %v5646_v25 = vcombine.high %v5636_v54, %v5636_v54  ;;  %v5655_v51 = vrot.slane %v5636_v54, %v16381_v18  ;;  %v5643_v8 = vrot.slane %v5615_v11, %v16370_v9  ;;  %v5659_v4 = vrot.slane %v5644_v27, %v16381_v18 }
0x16dc   :  { %v5688_v42 = vadd.f32 %v5651_v60, %v5590_v35  ;;  %v5645_v49 = vcombine.high %v5629_v52, %v5629_v52  ;;  %v5667_v56 = vrot.slane %v5629_v52, %v16381_v18 }
0x16dd   :  { %v5663_v48 = vrot.slane %v5646_v25, %v16381_v18  ;;  %v5689_v17 = vadd.f32 %v5655_v51, %v5591_v57  ;;  %v5690_v12 = vadd.f32 %v5659_v4, %v5592_v1  ;;  %v5647_v53 = vcombine.high %v5643_v8, %v5643_v8 }
0x16de   :  { %15670 = vtanh.f32 %v5688_v42  ;;  %v5671_v19 = vrot.slane %v5643_v8, %v16381_v18  ;;  %v5675_v2 = vrot.slane %v5645_v49, %v16381_v18  ;;  %v5692_v59 = vadd.f32 %v5667_v56, %v5594_v46 }
0x16df   :  { %v5691_v22 = vadd.f32 %v5663_v48, %v5593_v28  ;;  %15672 = vtanh.f32 %v5689_v17  ;;  %v5679_v24 = vrot.slane %v5647_v53, %v16381_v18 }
0x16e0   :  { %15674 = vtanh.f32 %v5690_v12  ;;  %v5693_v21 = vadd.f32 %v5671_v19, %v5595_v61  ;;  %v5694_v6 = vadd.f32 %v5675_v2, %v5596_v23 }
0x16e1   :  { %15676 = vtanh.f32 %v5691_v22  ;;  %v5695_v3 = vadd.f32 %v5679_v24, %v5597_v55 }
0x16e2   :  { %15678 = vtanh.f32 %v5692_v59 }
0x16e3   :  { %15680 = vtanh.f32 %v5693_v21 }
0x16e4   :  { %15682 = vtanh.f32 %v5694_v6 }
0x16e5   :  { %15684 = vtanh.f32 %v5695_v3 }
0x16e8   :  { %v15671_v34 = vpop.eup %15670 }
0x16e9   :  { %15005 = vmatpush3.xpose.msk.msra.mxu0 %vm110_vm1, %v15671_v34  ;;  %v15673_v29 = vpop.eup %15672 }
0x16ea   :  { %15014 = vmatprep.subr.mxu0 %v16194_v0  ;;  %15010 = vmatpush3.xpose.msk.msra.mxu1 %vm110_vm1, %v15673_v29  ;;  %v15675_v15 = vpop.eup %15674 }
0x16eb   :  { %15019 = vmatprep.subr.mxu1 %v16194_v0  ;;  %v15677_v16 = vpop.eup %15676 }
0x16ec   :  { %15007 = vmatmul.mubr.msk.f32.vlgmr.msra.gmra.mrb[58].mxu0 %vm110_vm1, %v16916_v13  ;;  %v15679_v35 = vpop.eup %15678 }
0x16ed   :  { %15015 = vmatpush3.xpose.msk.msra.mxu0 %vm110_vm1, %v15675_v15  ;;  %15016 = vmatprep.mubr.msk.f32.mxu0 %vm16195_vm0, %v16194_v0  ;;  %v15681_v13 = vpop.eup %15680 }
0x16ee   :  { %15012 = vmatmul.mubr.msk.f32.vlgmr.msra.gmra.mrb[58].mxu1 %vm110_vm1, %v16927_v26  ;;  %15024 = vmatprep.subr.mxu0 %v16194_v0  ;;  %v15683_v26 = vpop.eup %15682 }
0x16ef   :  { %15020 = vmatpush3.xpose.msk.msra.mxu1 %vm110_vm1, %v15677_v16  ;;  %15021 = vmatprep.mubr.msk.f32.mxu1 %vm16195_vm0, %v16194_v0 }
0x16f0   :  { %15017 = vmatmul.mubr.msk.f32.vlgmr.msra.gmra.mrb[60].mxu0 %vm110_vm1, %v16938_v31  ;;  %15029 = vmatprep.subr.mxu1 %v16194_v0  ;;  %v15685_v31 = vpop.eup %15684 }
0x16f1   :  { %15025 = vmatpush3.xpose.msk.msra.mxu0 %vm110_vm1, %v15679_v35  ;;  %15026 = vmatprep.mubr.msk.f32.mxu0 %vm16195_vm0, %v16194_v0 }
0x16f2   :  { %15022 = vmatmul.mubr.msk.f32.vlgmr.msra.gmra.mrb[60].mxu1 %vm110_vm1, %v16949_v37  ;;  %15034 = vmatprep.subr.mxu0 %v16194_v0 }
0x16f3   :  { %15030 = vmatpush3.xpose.msk.msra.mxu1 %vm110_vm1, %v15681_v13  ;;  %15031 = vmatprep.mubr.msk.f32.mxu1 %vm16195_vm0, %v16194_v0 }
0x16f4   :  { %15027 = vmatmul.mubr.msk.f32.vlgmr.msra.gmra.mrb[62].mxu0 %vm110_vm1, %v16960_v41  ;;  %15039 = vmatprep.subr.mxu1 %v16194_v0 }
0x16f5   :  { %15035 = vmatpush3.xpose.msk.msra.mxu0 %vm110_vm1, %v15683_v26  ;;  %15036 = vmatprep.mubr.msk.f32.mxu0 %vm16195_vm0, %v16194_v0 }
0x16f6   :  { %15032 = vmatmul.mubr.msk.f32.vlgmr.msra.gmra.mrb[62].mxu1 %vm110_vm1, %v16971_v44  ;;  %15044 = vmatprep.subr.mxu0 %v16194_v0 }
0x16f7   :  { %15040 = vmatpush3.xpose.msk.msra.mxu1 %vm110_vm1, %v15685_v31  ;;  %15041 = vmatprep.mubr.msk.f32.mxu1 %vm16195_vm0, %v16194_v0 }
0x16f8   :  { %15037 = vmatmul.mubr.msk.f32.vlgmr.msra.gmra.mrb[64].mxu0 %vm110_vm1, %v16982_v30  ;;  %15049 = vmatprep.subr.mxu1 %v16194_v0 }
0x16f9   :  { %15045 = vmatpush3.msra.mxu0 %v16987_v36  ;;  %15046 = vmatprep.mubr.msk.f32.mxu0 %vm16195_vm0, %v16194_v0 }
0x16fa   :  { %15042 = vmatmul.mubr.msk.f32.vlgmr.msra.gmra.mrb[64].mxu1 %vm110_vm1, %v16995_v38  ;;  %15054 = vmatprep.subr.mxu0 %v16194_v0 }
0x16fb   :  { %15050 = vmatpush3.msra.mxu1 %v17000_v43  ;;  %15051 = vmatprep.mubr.msk.f32.mxu1 %vm16195_vm0, %v16194_v0 }
0x16fc   :  { %15059 = vmatprep.subr.mxu1 %v16194_v0 }
0x17bf   :  { %v5773_v37 = vpop.f32.mrb[58].mxu0 }
0x17c0   :  { %v15008_v41 = vpop.f32.mrb[59].mxu0  ;;  %v6288_v44 = vsel %vm1035_vm2, %v5773_v37, -inf }
0x17c1   :  { %v5846_v30 = vpop.f32.mrb[58].mxu1  ;;  %6289 = vmax.xlane.f32.xlu0 %v6288_v44 }
0x17c2   :  { %v6291_v36 = vsel %vm1035_vm2, %v5846_v30, -inf  ;;  %v15013_v11 = vpop.f32.mrb[59].mxu1 }
0x17c3   :  { %6292 = vmax.xlane.f32.xlu1 %v6291_v36  ;;  %v5919_v38 = vpop.f32.mrb[60].mxu0 }
0x17c4   :  { %v15018_v52 = vpop.f32.mrb[61].mxu0  ;;  %v6294_v54 = vsel %vm1035_vm2, %v5919_v38, -inf }
0x17c5   :  { %6295 = vmax.xlane.f32.xlu0 %v6294_v54  ;;  %v5992_v43 = vpop.f32.mrb[60].mxu1 }
0x17c6   :  { %v15023_v27 = vpop.f32.mrb[61].mxu1  ;;  %v6297_v57 = vsel %vm1035_vm2, %v5992_v43, -inf }
0x17c7   :  { %v6065_v1 = vpop.f32.mrb[62].mxu0 }
0x17c8   :  { %v15028_v60 = vpop.f32.mrb[63].mxu0  ;;  %v6300_v51 = vsel %vm1035_vm2, %v6065_v1, -inf }
0x17c9   :  { %v6138_v63 = vpop.f32.mrb[62].mxu1  ;;  %6298 = vmax.xlane.f32.xlu0 %v6297_v57 }
0x17ca   :  { %v6303_v33 = vsel %vm1035_vm2, %v6138_v63, -inf  ;;  %v15033_v25 = vpop.f32.mrb[63].mxu1 }
0x17cb   :  { %6304 = vmax.xlane.f32.xlu1 %v6303_v33  ;;  %v6211_v28 = vpop.f32.mrb[64].mxu0 }
0x17cc   :  { %v15038_v8 = vpop.f32.mrb[65].mxu0  ;;  %v6306_v46 = vsel %vm1035_vm2, %v6211_v28, -inf }
0x17cd   :  { %v6284_v4 = vpop.f32.mrb[64].mxu1  ;;  %6301 = vmax.xlane.f32.xlu0 %v6300_v51 }
0x17ce   :  { %v6309_v42 = vsel %vm1035_vm2, %v6284_v4, -inf  ;;  %v15043_v10 = vpop.f32.mrb[65].mxu1 }
0x17cf   :  { %6310 = vmax.xlane.f32.xlu1 %v6309_v42 }
0x17d1   :  { %6307 = vmax.xlane.f32.xlu0 %v6306_v46 }
0x184e   :  { %v6290_v49 = vpop.xlane.xlu0 %6289 }
0x184f   :  { %v6312_v48 = vsub.f32 %v5773_v37, %v6290_v49 }
0x1850   :  { %v6293_v56 = vpop.xlane.xlu1 %6292 }
0x1851   :  { %v6320_v17 = vmul.f32 1.442695, %v6312_v48  ;;  %v6313_v12 = vsub.f32 %v5846_v30, %v6293_v56 }
0x1852   :  { %v6296_v47 = vpop.xlane.xlu0 %6295 }
0x1853   :  { %15686 = vpow2.f32 %v6320_v17  ;;  %v6322_v61 = vmul.f32 1.442695, %v6313_v12  ;;  %v6314_v53 = vsub.f32 %v5919_v38, %v6296_v47 }
0x1855   :  { %15688 = vpow2.f32 %v6322_v61  ;;  %v6324_v19 = vmul.f32 1.442695, %v6314_v53 }
0x1856   :  { %v6299_v22 = vpop.xlane.xlu0 %6298 }
0x1857   :  { %15690 = vpow2.f32 %v6324_v19  ;;  %v6315_v23 = vsub.f32 %v5992_v43, %v6299_v22 }
0x1858   :  { %v6305_v2 = vpop.xlane.xlu1 %6304 }
0x1859   :  { %v6326_v59 = vmul.f32 1.442695, %v6315_v23  ;;  %v6317_v55 = vsub.f32 %v6138_v63, %v6305_v2 }
0x185a   :  { %v6302_v24 = vpop.xlane.xlu0 %6301 }
0x185b   :  { %15692 = vpow2.f32 %v6326_v59  ;;  %v6330_v21 = vmul.f32 1.442695, %v6317_v55  ;;  %v6316_v6 = vsub.f32 %v6065_v1, %v6302_v24 }
0x185c   :  { %v6311_v34 = vpop.xlane.xlu1 %6310 }
0x185d   :  { %v15687_v3 = vpop.eup %15686  ;;  %15694 = vpow2.f32 %v6330_v21  ;;  %v6328_v29 = vmul.f32 1.442695, %v6316_v6  ;;  %v6319_v15 = vsub.f32 %v6284_v4, %v6311_v34 }
0x185e   :  { %v6308_v16 = vpop.xlane.xlu0 %6307  ;;  %v6336_v35 = vsel %vm1035_vm2, %v15687_v3, 0.0 }
0x185f   :  { %v15689_v13 = vpop.eup %15688  ;;  %15696 = vpow2.f32 %v6328_v29  ;;  %v6334_v26 = vmul.f32 1.442695, %v6319_v15  ;;  %v6318_v31 = vsub.f32 %v6211_v28, %v6308_v16  ;;  %6337 = vadd.xlane.f32.xlu0 %v6336_v35 }
0x1860   :  { %v6339_v37 = vsel %vm1035_vm2, %v15689_v13, 0.0 }
0x1861   :  { %v15691_v41 = vpop.eup %15690  ;;  %15698 = vpow2.f32 %v6334_v26  ;;  %v6332_v44 = vmul.f32 1.442695, %v6318_v31  ;;  %6340 = vadd.xlane.f32.xlu1 %v6339_v37 }
0x1862   :  { %v6342_v30 = vsel %vm1035_vm2, %v15691_v41, 0.0 }
0x1863   :  { %15700 = vpow2.f32 %v6332_v44  ;;  %6343 = vadd.xlane.f32.xlu0 %v6342_v30 }
0x1865   :  { %v15693_v36 = vpop.eup %15692 }
0x1866   :  { %v6345_v11 = vsel %vm1035_vm2, %v15693_v36, 0.0 }
0x1867   :  { %v15695_v38 = vpop.eup %15694  ;;  %6346 = vadd.xlane.f32.xlu1 %v6345_v11 }
0x1868   :  { %v6351_v54 = vsel %vm1035_vm2, %v15695_v38, 0.0 }
0x1869   :  { %v15697_v52 = vpop.eup %15696 }
0x186a   :  { %v6348_v43 = vsel %vm1035_vm2, %v15697_v52, 0.0 }
0x186b   :  { %v15699_v27 = vpop.eup %15698  ;;  %6352 = vadd.xlane.f32.xlu1 %v6351_v54  ;;  %6349 = vadd.xlane.f32.xlu0 %v6348_v43  ;;  %v17290_v43 = vld [vmem:[%s18233_s5] sm:$0xff] }
0x186c   :  { %v6357_v1 = vsel %vm1035_vm2, %v15699_v27, 0.0 }
0x186d   :  { %v15701_v57 = vpop.eup %15700 }
0x186e   :  { %v6354_v60 = vsel %vm1035_vm2, %v15701_v57, 0.0 }
0x186f   :  { %6358 = vadd.xlane.f32.xlu1 %v6357_v1  ;;  %6355 = vadd.xlane.f32.xlu0 %v6354_v60 }
0x1880   :  { %7148 = vrot.lane.b32.xlu1 %v17130_v14, %s16197_s27 }
0x1885   :  { %7138 = vrot.lane.b32.xlu0 %v17130_v14, %s16198_s6 }
0x18ec   :  { %v6338_v63 = vpop.xlane.xlu0 %6337 }
0x18ed   :  { %15702 = vrcp.f32 %v6338_v63 }
0x18ee   :  { %v6341_v33 = vpop.xlane.xlu1 %6340 }
0x18ef   :  { %15704 = vrcp.f32 %v6341_v33 }
0x18f0   :  { %v6344_v25 = vpop.xlane.xlu0 %6343 }
0x18f1   :  { %15706 = vrcp.f32 %v6344_v25 }
0x18f4   :  { %v6347_v51 = vpop.xlane.xlu1 %6346 }
0x18f5   :  { %15708 = vrcp.f32 %v6347_v51 }
0x18f7   :  { %v15703_v28 = vpop.eup %15702 }
0x18f8   :  { %v6368_v8 = vmul.f32 %v15703_v28, %v15687_v3  ;;  %v6353_v4 = vpop.xlane.xlu1 %6352  ;;  %v6350_v42 = vpop.xlane.xlu0 %6349 }
0x18f9   :  { %v15705_v10 = vpop.eup %15704  ;;  %15710 = vrcp.f32 %v6353_v4 }
0x18fa   :  { %v6369_v46 = vmul.f32 %v15705_v10, %v15689_v13  ;;  %15712 = vrcp.f32 %v6350_v42  ;;  %15047 = vmatmul.mubr.msk.f32.vlgmr.msra.gmra.mrb[66].mxu0 %vm110_vm1, %v6368_v8 }
0x18fb   :  { %v15707_v49 = vpop.eup %15706  ;;  %15055 = vmatpush3.msra.mxu0 %v17033_v20  ;;  %15056 = vmatprep.mubr.msk.f32.mxu0 %vm16195_vm0, %v16194_v0 }
0x18fc   :  { %v6370_v14 = vmul.f32 %v15707_v49, %v15691_v41  ;;  %15052 = vmatmul.mubr.msk.f32.vlgmr.msra.gmra.mrb[66].mxu1 %vm110_vm1, %v6369_v46  ;;  %v6359_v48 = vpop.xlane.xlu1 %6358  ;;  %v6356_v56 = vpop.xlane.xlu0 %6355  ;;  %15064 = vmatprep.subr.mxu0 %v16194_v0 }
0x18fd   :  { %15714 = vrcp.f32 %v6359_v48  ;;  %15060 = vmatpush3.msra.mxu1 %v17040_v39  ;;  %15061 = vmatprep.mubr.msk.f32.mxu1 %vm16195_vm0, %v16194_v0 }
0x18fe   :  { %15716 = vrcp.f32 %v6356_v56  ;;  %15057 = vmatmul.mubr.msk.f32.vlgmr.msra.gmra.mrb[68].mxu0 %vm110_vm1, %v6370_v14  ;;  %15069 = vmatprep.subr.mxu1 %v16194_v0 }
0x18ff   :  { %v15709_v20 = vpop.eup %15708  ;;  %15065 = vmatpush3.msra.mxu0 %v17047_v50  ;;  %15066 = vmatprep.mubr.msk.f32.mxu0 %vm16195_vm0, %v16194_v0 }
0x1900   :  { %v6371_v17 = vmul.f32 %v15709_v20, %v15693_v36  ;;  %15074 = vmatprep.subr.mxu0 %v16194_v0  ;;  %v7139_v10 = vpop.permute.xlu0 %7138  ;;  %v7149_v20 = vpop.permute.xlu1 %7148 }
0x1902   :  { %15062 = vmatmul.mubr.msk.f32.vlgmr.msra.gmra.mrb[68].mxu1 %vm110_vm1, %v6371_v17 }
0x1903   :  { %v15711_v39 = vpop.eup %15710  ;;  %15070 = vmatpush3.msra.mxu1 %v17058_v62  ;;  %15071 = vmatprep.mubr.msk.f32.mxu1 %vm16195_vm0, %v16194_v0 }
0x1904   :  { %v15713_v12 = vpop.eup %15712  ;;  %v6373_v47 = vmul.f32 %v15711_v39, %v15695_v38  ;;  %15079 = vmatprep.subr.mxu1 %v16194_v0 }
0x1905   :  { %v6372_v61 = vmul.f32 %v15713_v12, %v15697_v52 }
0x1906   :  { %15072 = vmatmul.mubr.msk.f32.vlgmr.msra.gmra.mrb[70].mxu1 %vm110_vm1, %v6373_v47 }
0x1907   :  { %v15715_v50 = vpop.eup %15714  ;;  %15067 = vmatmul.mubr.msk.f32.vlgmr.msra.gmra.mrb[70].mxu0 %vm110_vm1, %v6372_v61  ;;  %15080 = vmatpush3.msra.mxu1 %v17073_v40 }
0x1908   :  { %v15717_v53 = vpop.eup %15716  ;;  %v6375_v19 = vmul.f32 %v15715_v50, %v15699_v27  ;;  %15075 = vmatpush3.msra.mxu0 %v17055_v32  ;;  %15076 = vmatprep.mubr.msk.f32.mxu0 %vm16195_vm0, %v16194_v0  ;;  %v6961_v27 = vld [vmem:[#allocation6 + $0x18] sm:$0xff] }
0x1909   :  { %v6374_v62 = vmul.f32 %v15717_v53, %v15701_v57  ;;  %15081 = vmatprep.mubr.msk.f32.mxu1 %vm16195_vm0, %v16194_v0  ;;  %15084 = vmatprep.subr.mxu0 %v16194_v0 }
0x190a   :  { %15082 = vmatmul.mubr.msk.f32.vlgmr.msra.gmra.mrb[72].mxu1 %vm110_vm1, %v6375_v19  ;;  %15089 = vmatprep.subr.mxu1 %v16194_v0 }
0x190b   :  { %15077 = vmatmul.mubr.msk.f32.vlgmr.msra.gmra.mrb[72].mxu0 %vm110_vm1, %v6374_v62  ;;  %15090 = vmatpush3.msra.mxu1 %v17087_v7 }
0x190c   :  { %15085 = vmatpush3.msra.mxu0 %v17070_v5  ;;  %15086 = vmatprep.mubr.msk.f32.mxu0 %vm16195_vm0, %v16194_v0 }
0x190d   :  { %15091 = vmatprep.mubr.msk.f32.mxu1 %vm16195_vm0, %v16194_v0  ;;  %15094 = vmatprep.subr.mxu0 %v16194_v0 }
0x190e   :  { %15099 = vmatprep.subr.mxu1 %v16194_v0 }
0x19cd   :  { %v6445_v32 = vpop.f32.mrb[66].mxu0 }
0x19ce   :  { %v15048_v40 = vpop.f32.mrb[67].mxu0 }
0x19cf   :  { %v6518_v22 = vpop.f32.mrb[66].mxu1 }
0x19d0   :  { %v6970_v23 = vrot.slane %v6518_v22, 7  ;;  %v15053_v2 = vpop.f32.mrb[67].mxu1 }
0x19d1   :  { %v6591_v59 = vpop.f32.mrb[68].mxu0 }
0x19d2   :  { %v6971_v7 = vsel %vm1718_vm3, %v6970_v23, %v6445_v32  ;;  %v6972_v55 = vrot.slane %v6591_v59, 6  ;;  %v15058_v5 = vpop.f32.mrb[69].mxu0  ;;  %v7245_v32 = vld [vmem:[#allocation3 + $0x20] sm:$0xff] }
0x19d3   :  { %v7254_v40 = vrot.slane %v7245_v32, %v16370_v9  ;;  %v7247_v22 = vcombine.high %v7245_v32, %v7245_v32  ;;  %v17318_v5 = vld [vmem:[%s18237_s9] ss:$0 sm:$0xff] }
0x19d4   :  { %v6973_v24 = vsel %vm1721_vm4, %v6972_v55, %v6971_v7 }
0x19d5   :  { %v6664_v21 = vpop.f32.mrb[68].mxu1  ;;  %v7262_v23 = vcombine.high %v7254_v40, %v7254_v40  ;;  %v7261_v2 = vrot.slane %v7247_v22, %v16370_v9  ;;  %v17366_v22 = vld [vmem:[#allocation8 + $0x30] sm:$0xff] }
0x19d6   :  { %v6974_v6 = vrot.slane %v6664_v21, 5  ;;  %v15063_v34 = vpop.f32.mrb[69].mxu1 }
0x19d7   :  { %v7284_v59 = vrot.slane %v7262_v23, %v16370_v9  ;;  %v7263_v21 = vcombine.high %v7261_v2, %v7261_v2  ;;  %v7277_v34 = vrot.slane %v7261_v2, %v16370_v9 }
0x19d8   :  { %v6975_v3 = vsel %vm1724_vm5, %v6974_v6, %v6973_v24 }
0x19d9   :  { %v6810_v29 = vpop.f32.mrb[70].mxu1 }
0x19da   :  { %v6737_v15 = vpop.f32.mrb[70].mxu0  ;;  %v6978_v16 = vrot.slane %v6810_v29, 3  ;;  %v15073_v35 = vpop.f32.mrb[71].mxu1 }
0x19db   :  { %v6976_v13 = vrot.slane %v6737_v15, 4  ;;  %v15068_v26 = vpop.f32.mrb[71].mxu0  ;;  %v7303_v35 = vrot.slane %v7284_v59, %v16381_v18 }
0x19dc   :  { %v7291_v26 = vrot.slane %v7263_v21, %v16370_v9 }
0x19dd   :  { %v6977_v31 = vsel %vm1727_vm6, %v6976_v13, %v6975_v3  ;;  %v6956_v37 = vpop.f32.mrb[72].mxu1  ;;  %v7294_v3 = vcombine.high %v7284_v59, %v7284_v59  ;;  %v17370_v59 = vld [vmem:[#allocation8 + $0x38] sm:$0xff] }
0x19de   :  { %v6979_v41 = vsel %vm1730_vm7, %v6978_v16, %v6977_v31  ;;  %v6883_v44 = vpop.f32.mrb[72].mxu0  ;;  %v6982_v30 = vrot.slane %v6956_v37, 1  ;;  %v15083_v36 = vpop.f32.mrb[73].mxu1 }
0x19df   :  { %v6980_v11 = vrot.slane %v6883_v44, 2  ;;  %v15078_v38 = vpop.f32.mrb[73].mxu0  ;;  %v7293_v44 = vcombine.high %v7277_v34, %v7277_v34  ;;  %v7315_v36 = vrot.slane %v7277_v34, %v16381_v18 }
0x19e1   :  { %v6981_v52 = vsel %vm1733_vm8, %v6980_v11, %v6979_v41  ;;  %v17336_v11 = vld [vmem:[#allocation8] sm:$0xff] }
0x19e2   :  { %v6983_v54 = vsel %vm1736_vm9, %v6982_v30, %v6981_v52  ;;  %v7311_v30 = vrot.slane %v7294_v3, %v16381_v18 }
0x19e3   :  { %15087 = vmatmul.mubr.msk.f32.vlgmr.msra.gmra.mrb[74].mxu0 %vm110_vm1, %v6983_v54 }
0x19e4   :  { %15095 = vmatpush3.msra.mxu0 %v17290_v43  ;;  %15096 = vmatprep.mubr.msk.f32.mxu0 %vm16195_vm0, %v16194_v0 }
0x19e5   :  { %15104 = vmatprep.subr.mxu0 %v16194_v0 }
0x1ab6   :  { %v7052_v57 = vpop.f32.mrb[74].mxu0 }
0x1ab7   :  { %v7056_v1 = vadd.f32 %v7052_v57, %v6961_v27  ;;  %v15088_v60 = vpop.f32.mrb[75].mxu0 }
0x1ab9   :  { %v14291_v63 = vmul.f32 -1.442695, %v7056_v1  ;;  %v17341_v1 = vld [vmem:[#allocation8 + $0x8] sm:$0xff] }
0x1aba   :  { %v7337_v60 = vadd.f32 %v17341_v1, %v7303_v35 }
0x1abb   :  { %15718 = vpow2.f32 %v14291_v63  ;;  %v17344_v63 = vld [vmem:[#allocation8 + $0x10] sm:$0xff] }
0x1ac5   :  { %v15719_v33 = vpop.eup %15718 }
0x1ac6   :  { %v7060_v25 = vadd.f32 1.0, %v15719_v33 }
0x1ac8   :  { %15720 = vrcp.f32 %v7060_v25 }
0x1ad2   :  { %v15721_v51 = vpop.eup %15720 }
0x1ad3   :  { %v7064_v28 = vmul.f32 %v15721_v51, %v6983_v54  ;;  %v7295_v51 = vcombine.high %v7291_v26, %v7291_v26 }
0x1ad5   :  { %15092 = vmatmul.mubr.msk.f32.vlgmr.msra.gmra.mrb[74].mxu1 %vm110_vm1, %v7064_v28  ;;  %v7319_v28 = vrot.slane %v7291_v26, %v16381_v18 }
0x1ad6   :  { %15101 = vmatprep.mubr.msk.f32.mxu1 %vm16195_vm0, %v16194_v0 }
0x1ba8   :  { %v7134_v8 = vpop.f32.mrb[74].mxu1 }
0x1ba9   :  { %v7135_v4 = vadd.f32 %v17111_v45, %v7134_v8  ;;  %v15093_v42 = vpop.f32.mrb[75].mxu1 }
0x1baa   :  { %v17350_v42 = vld [vmem:[#allocation8 + $0x18] sm:$0xff] }
0x1bab   :  { %v7141_v46 = vadd.f32 %v7139_v10, %v7135_v4  ;;  %v7339_v10 = vadd.f32 %v17350_v42, %v7311_v30  ;;  %v17424_v30 = vld [vmem:[%s18232_s4 + $0x4] sm:$0x1] }
0x1bad   :  { %v14293_v49 = vmul.f32 -1.442695, %v7141_v46 }
0x1baf   :  { %15722 = vpow2.f32 %v14293_v49 }
0x1bb9   :  { %v15723_v14 = vpop.eup %15722 }
0x1bba   :  { %v7145_v48 = vadd.f32 1.0, %v15723_v14 }
0x1bbc   :  { %15724 = vrcp.f32 %v7145_v48  ;;  %v7323_v48 = vrot.slane %v7293_v44, %v16381_v18 }
0x1bbe   :  { %v7342_v23 = vadd.f32 %v17366_v22, %v7323_v48 }
0x1bc6   :  { %v15725_v56 = vpop.eup %15724 }
0x1bc7   :  { %v7151_v17 = vmul.f32 %v15725_v56, %v7149_v20  ;;  %v7158_v45 = vsub.f32 1.0, %v15725_v56  ;;  %v7164_v50 = vmul.f32 %v15725_v56, %v17117_v58  ;;  %v7270_v58 = vrot.slane %v7254_v40, %v16370_v9  ;;  %v17356_v56 = vld [vmem:[#allocation8 + $0x20] sm:$0xff] }
0x1bc8   :  { %v7340_v20 = vadd.f32 %v17356_v56, %v7315_v36 }
0x1bc9   :  { %7153 = vrot.lane.b32.xlu1 %v7151_v17, %s16199_s18  ;;  %v7292_v55 = vcombine.high %v7270_v58, %v7270_v58  ;;  %v7299_v29 = vrot.slane %v7270_v58, %v16381_v18 }
0x1bcb   :  { %v7307_v13 = vrot.slane %v7292_v55, %v16381_v18  ;;  %v7336_v38 = vadd.f32 %v17336_v11, %v7299_v29 }
0x1bcd   :  { %v7338_v33 = vadd.f32 %v17344_v63, %v7307_v13  ;;  %v17391_v13 = vld [vmem:[%s18232_s4 + $0x1] sm:$0x1] }
0x1c3b   :  { %v7154_v39 = vpop.permute.xlu1 %7153 }
0x1c3c   :  { %v7156_v12 = vadd.f32 %v7154_v39, %v7135_v4 }
0x1c3e   :  { %15726 = vtanh.f32 %v7156_v12 }
0x1c48   :  { %v15727_v47 = vpop.eup %15726 }
0x1c49   :  { %7160 = vrot.lane.b32.xlu1 %v15727_v47, %s16198_s6 }
0x1cbb   :  { %v7161_v61 = vpop.permute.xlu1 %7160 }
0x1cbc   :  { %v7163_v53 = vmul.f32 %v7161_v61, %v7158_v45  ;;  %v7327_v61 = vrot.slane %v7295_v51, %v16381_v18 }
0x1cbe   :  { %v17303_v19 = vadd.f32 %v7164_v50, %v7163_v53  ;;  %v17362_v50 = vld [vmem:[#allocation8 + $0x28] sm:$0xff] }
0x1cbf   :  { %v7341_v53 = vadd.f32 %v17362_v50, %v7319_v28 }
0x1cc0   :  { %7167 = vrot.lane.b32.xlu0 %v17303_v19, %s16198_s6 }
0x1d32   :  { %v7168_v62 = vpop.permute.xlu0 %7167 }
0x1d33   :  { %7171 = vst.msk [vmem:[#allocation12 + $0x18] sm:$0xff] %vm110_vm1, %v7168_v62  ;;  %15097 = vmatmul.mubr.msk.f32.vlgmr.msra.gmra.mrb[76].mxu0 %vm110_vm1, %v7168_v62 }
0x1d34   :  { %15106 = vmatprep.mubr.msk.f32.mxu0 %vm16195_vm0, %v16194_v0 }
0x1e06   :  { %v7240_v7 = vpop.f32.mrb[76].mxu0 }
0x1e07   :  { %v17321_v24 = vadd.f32 %v17318_v5, %v7240_v7  ;;  %v15098_v6 = vpop.f32.mrb[77].mxu0  ;;  %v7343_v7 = vadd.f32 %v17370_v59, %v7327_v61 }
0x1e09   :  { %v7345_v15 = vcombine.high %v17321_v24, %v17321_v24  ;;  %v7352_v16 = vrot.slane %v17321_v24, %v16370_v9 }
0x1e0b   :  { %v7359_v31 = vrot.slane %v7345_v15, %v16370_v9  ;;  %v7360_v37 = vcombine.high %v7352_v16, %v7352_v16  ;;  %v7368_v41 = vrot.slane %v7352_v16, %v16370_v9  ;;  %v17380_v16 = vld [vmem:[%s18232_s4] sm:$0x1] }
0x1e0d   :  { %v7361_v52 = vcombine.high %v7359_v31, %v7359_v31  ;;  %v7375_v54 = vrot.slane %v7359_v31, %v16370_v9  ;;  %v7382_v27 = vrot.slane %v7360_v37, %v16370_v9  ;;  %v7390_v57 = vcombine.high %v7368_v41, %v7368_v41  ;;  %v17402_v31 = vld [vmem:[%s18232_s4 + $0x2] sm:$0x1] }
0x1e0e   :  { %v7397_v25 = vrot.slane %v7368_v41, %v16381_v18  ;;  %v17413_v41 = vld [vmem:[%s18232_s4 + $0x3] sm:$0x1] }
0x1e0f   :  { %v7392_v8 = vcombine.high %v7382_v27, %v7382_v27  ;;  %v7401_v4 = vrot.slane %v7382_v27, %v16381_v18  ;;  %v7389_v46 = vrot.slane %v7361_v52, %v16370_v9  ;;  %v7405_v49 = vrot.slane %v7390_v57, %v16381_v18  ;;  %v17446_v52 = vld [vmem:[%s18232_s4 + $0x6] sm:$0x1]  ;;  %v17459_v27 = vld [vmem:[%s18232_s4 + $0x7] sm:$0x1]  ;;  %v17464_v57 = vld [vmem:[#allocation9 + $0x8] sm:$0xff] }
0x1e10   :  { %v7434_v14 = vadd.f32 %v7397_v25, %v7336_v38  ;;  %v7391_v17 = vcombine.high %v7375_v54, %v7375_v54  ;;  %v7413_v12 = vrot.slane %v7375_v54, %v16381_v18  ;;  %v17435_v38 = vld [vmem:[%s18232_s4 + $0x5] sm:$0x1]  ;;  %v17451_v54 = vld [vmem:[#allocation9] sm:$0xff] }
0x1e11   :  { %v7409_v39 = vrot.slane %v7392_v8, %v16381_v18  ;;  %v7435_v47 = vadd.f32 %v7401_v4, %v7337_v60  ;;  %v7436_v45 = vadd.f32 %v7405_v49, %v7338_v33  ;;  %v7393_v62 = vcombine.high %v7389_v46, %v7389_v46 }
0x1e12   :  { %15728 = vtanh.f32 %v7434_v14  ;;  %v7417_v32 = vrot.slane %v7389_v46, %v16381_v18  ;;  %v7421_v58 = vrot.slane %v7391_v17, %v16381_v18  ;;  %v7438_v2 = vadd.f32 %v7413_v12, %v7340_v20 }
0x1e13   :  { %v7437_v40 = vadd.f32 %v7409_v39, %v7339_v10  ;;  %15730 = vtanh.f32 %v7435_v47  ;;  %v7425_v55 = vrot.slane %v7393_v62, %v16381_v18 }
0x1e14   :  { %15732 = vtanh.f32 %v7436_v45  ;;  %v7439_v21 = vadd.f32 %v7417_v32, %v7341_v53  ;;  %v7440_v6 = vadd.f32 %v7421_v58, %v7342_v23 }
0x1e15   :  { %15734 = vtanh.f32 %v7437_v40  ;;  %v7441_v3 = vadd.f32 %v7425_v55, %v7343_v7 }
0x1e16   :  { %15736 = vtanh.f32 %v7438_v2 }
0x1e17   :  { %15738 = vtanh.f32 %v7439_v21 }
0x1e18   :  { %15740 = vtanh.f32 %v7440_v6 }
0x1e19   :  { %15742 = vtanh.f32 %v7441_v3 }
0x1e1c   :  { %v15729_v34 = vpop.eup %15728 }
0x1e1d   :  { %15100 = vmatpush3.xpose.msk.msra.mxu1 %vm110_vm1, %v15729_v34  ;;  %v15731_v29 = vpop.eup %15730 }
0x1e1e   :  { %15109 = vmatprep.subr.mxu1 %v16194_v0  ;;  %15105 = vmatpush3.xpose.msk.msra.mxu0 %vm110_vm1, %v15731_v29  ;;  %v15733_v15 = vpop.eup %15732 }
0x1e1f   :  { %15114 = vmatprep.subr.mxu0 %v16194_v0  ;;  %v15735_v35 = vpop.eup %15734 }
0x1e20   :  { %15102 = vmatmul.mubr.msk.f32.vlgmr.msra.gmra.mrb[76].mxu1 %vm110_vm1, %v17380_v16  ;;  %v15737_v26 = vpop.eup %15736 }
0x1e21   :  { %15110 = vmatpush3.xpose.msk.msra.mxu1 %vm110_vm1, %v15733_v15  ;;  %15111 = vmatprep.mubr.msk.f32.mxu1 %vm16195_vm0, %v16194_v0  ;;  %v15739_v37 = vpop.eup %15738 }
0x1e22   :  { %15107 = vmatmul.mubr.msk.f32.vlgmr.msra.gmra.mrb[78].mxu0 %vm110_vm1, %v17391_v13  ;;  %15119 = vmatprep.subr.mxu1 %v16194_v0  ;;  %v15741_v44 = vpop.eup %15740 }
0x1e23   :  { %15115 = vmatpush3.xpose.msk.msra.mxu0 %vm110_vm1, %v15735_v35  ;;  %15116 = vmatprep.mubr.msk.f32.mxu0 %vm16195_vm0, %v16194_v0  ;;  %v15743_v36 = vpop.eup %15742 }
0x1e24   :  { %15112 = vmatmul.mubr.msk.f32.vlgmr.msra.gmra.mrb[78].mxu1 %vm110_vm1, %v17402_v31  ;;  %15124 = vmatprep.subr.mxu0 %v16194_v0 }
0x1e25   :  { %15120 = vmatpush3.xpose.msk.msra.mxu1 %vm110_vm1, %v15737_v26  ;;  %15121 = vmatprep.mubr.msk.f32.mxu1 %vm16195_vm0, %v16194_v0 }
0x1e26   :  { %15117 = vmatmul.mubr.msk.f32.vlgmr.msra.gmra.mrb[80].mxu0 %vm110_vm1, %v17413_v41  ;;  %15129 = vmatprep.subr.mxu1 %v16194_v0 }
0x1e27   :  { %15125 = vmatpush3.xpose.msk.msra.mxu0 %vm110_vm1, %v15739_v37  ;;  %15126 = vmatprep.mubr.msk.f32.mxu0 %vm16195_vm0, %v16194_v0 }
0x1e28   :  { %15122 = vmatmul.mubr.msk.f32.vlgmr.msra.gmra.mrb[80].mxu1 %vm110_vm1, %v17424_v30  ;;  %15134 = vmatprep.subr.mxu0 %v16194_v0 }
0x1e29   :  { %15130 = vmatpush3.xpose.msk.msra.mxu1 %vm110_vm1, %v15741_v44  ;;  %15131 = vmatprep.mubr.msk.f32.mxu1 %vm16195_vm0, %v16194_v0 }
0x1e2a   :  { %15127 = vmatmul.mubr.msk.f32.vlgmr.msra.gmra.mrb[82].mxu0 %vm110_vm1, %v17435_v38  ;;  %15139 = vmatprep.subr.mxu1 %v16194_v0 }
0x1e2b   :  { %15135 = vmatpush3.xpose.msk.msra.mxu0 %vm110_vm1, %v15743_v36  ;;  %15136 = vmatprep.mubr.msk.f32.mxu0 %vm16195_vm0, %v16194_v0 }
0x1e2c   :  { %15132 = vmatmul.mubr.msk.f32.vlgmr.msra.gmra.mrb[82].mxu1 %vm110_vm1, %v17446_v52  ;;  %15144 = vmatprep.subr.mxu0 %v16194_v0 }
0x1e2d   :  { %15140 = vmatpush3.msra.mxu1 %v17451_v54  ;;  %15141 = vmatprep.mubr.msk.f32.mxu1 %vm16195_vm0, %v16194_v0 }
0x1e2e   :  { %15137 = vmatmul.mubr.msk.f32.vlgmr.msra.gmra.mrb[84].mxu0 %vm110_vm1, %v17459_v27  ;;  %15149 = vmatprep.subr.mxu1 %v16194_v0 }
0x1e2f   :  { %15145 = vmatpush3.msra.mxu0 %v17464_v57  ;;  %15146 = vmatprep.mubr.msk.f32.mxu0 %vm16195_vm0, %v16194_v0 }
0x1e30   :  { %15154 = vmatprep.subr.mxu0 %v16194_v0 }
0x1ef3   :  { %v7519_v60 = vpop.f32.mrb[76].mxu1 }
0x1ef4   :  { %v8034_v33 = vsel %vm1035_vm2, %v7519_v60, -inf  ;;  %v15103_v25 = vpop.f32.mrb[77].mxu1 }
0x1ef5   :  { %8035 = vmax.xlane.f32.xlu1 %v8034_v33  ;;  %v7592_v51 = vpop.f32.mrb[78].mxu0 }
0x1ef6   :  { %v15108_v28 = vpop.f32.mrb[79].mxu0  ;;  %v8037_v8 = vsel %vm1035_vm2, %v7592_v51, -inf }
0x1ef7   :  { %8038 = vmax.xlane.f32.xlu0 %v8037_v8  ;;  %v7665_v4 = vpop.f32.mrb[78].mxu1 }
0x1ef8   :  { %v15113_v10 = vpop.f32.mrb[79].mxu1  ;;  %v8040_v46 = vsel %vm1035_vm2, %v7665_v4, -inf }
0x1ef9   :  { %v7738_v49 = vpop.f32.mrb[80].mxu0 }
0x1efa   :  { %v15118_v14 = vpop.f32.mrb[81].mxu0  ;;  %v8043_v39 = vsel %vm1035_vm2, %v7738_v49, -inf }
0x1efb   :  { %v7811_v48 = vpop.f32.mrb[80].mxu1  ;;  %8041 = vmax.xlane.f32.xlu0 %v8040_v46 }
0x1efc   :  { %v8046_v20 = vsel %vm1035_vm2, %v7811_v48, -inf  ;;  %v15123_v17 = vpop.f32.mrb[81].mxu1 }
0x1efd   :  { %8047 = vmax.xlane.f32.xlu1 %v8046_v20  ;;  %v7884_v12 = vpop.f32.mrb[82].mxu0 }
0x1efe   :  { %v15128_v47 = vpop.f32.mrb[83].mxu0  ;;  %v8049_v53 = vsel %vm1035_vm2, %v7884_v12, -inf }
0x1eff   :  { %v7957_v45 = vpop.f32.mrb[82].mxu1  ;;  %8044 = vmax.xlane.f32.xlu0 %v8043_v39 }
0x1f00   :  { %v8052_v61 = vsel %vm1035_vm2, %v7957_v45, -inf  ;;  %v15133_v62 = vpop.f32.mrb[83].mxu1 }
0x1f01   :  { %8053 = vmax.xlane.f32.xlu1 %v8052_v61  ;;  %v8030_v32 = vpop.f32.mrb[84].mxu0 }
0x1f02   :  { %v15138_v40 = vpop.f32.mrb[85].mxu0  ;;  %v8055_v23 = vsel %vm1035_vm2, %v8030_v32, -inf }
0x1f03   :  { %8050 = vmax.xlane.f32.xlu0 %v8049_v53 }
0x1f07   :  { %8056 = vmax.xlane.f32.xlu0 %v8055_v23 }
0x1f82   :  { %v8036_v58 = vpop.xlane.xlu1 %8035 }
0x1f83   :  { %v8058_v2 = vsub.f32 %v7519_v60, %v8036_v58 }
0x1f84   :  { %v8039_v7 = vpop.xlane.xlu0 %8038 }
0x1f85   :  { %v8066_v55 = vmul.f32 1.442695, %v8058_v2  ;;  %v8059_v21 = vsub.f32 %v7592_v51, %v8039_v7 }
0x1f87   :  { %15744 = vpow2.f32 %v8066_v55  ;;  %v8068_v6 = vmul.f32 1.442695, %v8059_v21 }
0x1f88   :  { %v8042_v34 = vpop.xlane.xlu0 %8041 }
0x1f89   :  { %15746 = vpow2.f32 %v8068_v6  ;;  %v8060_v3 = vsub.f32 %v7665_v4, %v8042_v34 }
0x1f8a   :  { %v8048_v29 = vpop.xlane.xlu1 %8047 }
0x1f8b   :  { %v8070_v15 = vmul.f32 1.442695, %v8060_v3  ;;  %v8062_v35 = vsub.f32 %v7811_v48, %v8048_v29 }
0x1f8c   :  { %v8045_v26 = vpop.xlane.xlu0 %8044 }
0x1f8d   :  { %15748 = vpow2.f32 %v8070_v15  ;;  %v8074_v37 = vmul.f32 1.442695, %v8062_v35  ;;  %v8061_v44 = vsub.f32 %v7738_v49, %v8045_v26 }
0x1f8e   :  { %v8054_v36 = vpop.xlane.xlu1 %8053 }
0x1f8f   :  { %15750 = vpow2.f32 %v8074_v37  ;;  %v8072_v33 = vmul.f32 1.442695, %v8061_v44  ;;  %v8064_v25 = vsub.f32 %v7957_v45, %v8054_v36  ;;  %v17501_v44 = vld [vmem:[#allocation9 + $0x18] sm:$0xff] }
0x1f90   :  { %v8051_v60 = vpop.xlane.xlu0 %8050 }
0x1f91   :  { %v15745_v28 = vpop.eup %15744  ;;  %15752 = vpow2.f32 %v8072_v33  ;;  %v8078_v51 = vmul.f32 1.442695, %v8064_v25  ;;  %v8063_v8 = vsub.f32 %v7884_v12, %v8051_v60  ;;  %v17508_v60 = vld [vmem:[#allocation9 + $0x20] sm:$0xff] }
0x1f92   :  { %v8082_v10 = vsel %vm1035_vm2, %v15745_v28, 0.0 }
0x1f93   :  { %v15747_v46 = vpop.eup %15746  ;;  %15754 = vpow2.f32 %v8078_v51  ;;  %v8076_v4 = vmul.f32 1.442695, %v8063_v8  ;;  %8083 = vadd.xlane.f32.xlu1 %v8082_v10 }
0x1f94   :  { %v8057_v14 = vpop.xlane.xlu0 %8056  ;;  %v8085_v48 = vsel %vm1035_vm2, %v15747_v46, 0.0 }
0x1f95   :  { %15756 = vpow2.f32 %v8076_v4  ;;  %v8065_v49 = vsub.f32 %v8030_v32, %v8057_v14  ;;  %8086 = vadd.xlane.f32.xlu0 %v8085_v48  ;;  %v17519_v48 = vld [vmem:[#allocation9 + $0x28] sm:$0xff] }
0x1f97   :  { %v15749_v20 = vpop.eup %15748  ;;  %v8080_v17 = vmul.f32 1.442695, %v8065_v49 }
0x1f98   :  { %v8088_v39 = vsel %vm1035_vm2, %v15749_v20, 0.0 }
0x1f99   :  { %v15751_v47 = vpop.eup %15750  ;;  %15758 = vpow2.f32 %v8080_v17  ;;  %8089 = vadd.xlane.f32.xlu1 %v8088_v39  ;;  %v17530_v17 = vld [vmem:[#allocation11] sm:$0xff] }
0x1f9a   :  { %v8094_v45 = vsel %vm1035_vm2, %v15751_v47, 0.0 }
0x1f9b   :  { %v15753_v12 = vpop.eup %15752 }
0x1f9c   :  { %v8091_v61 = vsel %vm1035_vm2, %v15753_v12, 0.0 }
0x1f9d   :  { %v15755_v53 = vpop.eup %15754  ;;  %8095 = vadd.xlane.f32.xlu1 %v8094_v45  ;;  %8092 = vadd.xlane.f32.xlu0 %v8091_v61 }
0x1f9e   :  { %v8100_v40 = vsel %vm1035_vm2, %v15755_v53, 0.0 }
0x1f9f   :  { %v15757_v62 = vpop.eup %15756 }
0x1fa0   :  { %v8097_v32 = vsel %vm1035_vm2, %v15757_v62, 0.0 }
0x1fa1   :  { %8101 = vadd.xlane.f32.xlu1 %v8100_v40  ;;  %8098 = vadd.xlane.f32.xlu0 %v8097_v32 }
0x1fa3   :  { %v17485_v23 = vpop.eup %15758 }
0x1fa4   :  { %v8103_v58 = vsel %vm1035_vm2, %v17485_v23, 0.0 }
0x1fa5   :  { %8104 = vadd.xlane.f32.xlu0 %v8103_v58 }
0x1fb2   :  { %8884 = vrot.lane.b32.xlu1 %v17321_v24, %s16198_s6 }
0x1fbb   :  { %8894 = vrot.lane.b32.xlu0 %v17321_v24, %s16197_s27  ;;  %v17494_v24 = vld [vmem:[#allocation9 + $0x10] sm:$0xff] }
0x2020   :  { %v8084_v2 = vpop.xlane.xlu1 %8083 }
0x2021   :  { %15760 = vrcp.f32 %v8084_v2 }
0x2022   :  { %v8087_v7 = vpop.xlane.xlu0 %8086 }
0x2023   :  { %15762 = vrcp.f32 %v8087_v7 }
0x2026   :  { %v8090_v55 = vpop.xlane.xlu1 %8089 }
0x2027   :  { %15764 = vrcp.f32 %v8090_v55 }
0x202a   :  { %v8096_v21 = vpop.xlane.xlu1 %8095  ;;  %v8093_v6 = vpop.xlane.xlu0 %8092 }
0x202b   :  { %v15761_v34 = vpop.eup %15760  ;;  %15766 = vrcp.f32 %v8096_v21 }
0x202c   :  { %v8114_v3 = vmul.f32 %v15761_v34, %v15745_v28  ;;  %15768 = vrcp.f32 %v8093_v6 }
0x202d   :  { %v15763_v29 = vpop.eup %15762 }
0x202e   :  { %v8115_v15 = vmul.f32 %v15763_v29, %v15747_v46  ;;  %15142 = vmatmul.mubr.msk.f32.vlgmr.msra.gmra.mrb[84].mxu1 %vm110_vm1, %v8114_v3  ;;  %v8102_v35 = vpop.xlane.xlu1 %8101  ;;  %v8099_v26 = vpop.xlane.xlu0 %8098  ;;  %v17516_v46 = vld [vmem:[#allocation9 + $0x30] sm:$0xff] }
0x202f   :  { %15770 = vrcp.f32 %v8102_v35  ;;  %15150 = vmatpush3.msra.mxu1 %v17494_v24  ;;  %15151 = vmatprep.mubr.msk.f32.mxu1 %vm16195_vm0, %v16194_v0 }
0x2030   :  { %15772 = vrcp.f32 %v8099_v26  ;;  %15147 = vmatmul.mubr.msk.f32.vlgmr.msra.gmra.mrb[86].mxu0 %vm110_vm1, %v8115_v15  ;;  %15159 = vmatprep.subr.mxu1 %v16194_v0 }
0x2031   :  { %v15765_v37 = vpop.eup %15764  ;;  %15155 = vmatpush3.msra.mxu0 %v17501_v44  ;;  %15156 = vmatprep.mubr.msk.f32.mxu0 %vm16195_vm0, %v16194_v0 }
0x2032   :  { %v8116_v36 = vmul.f32 %v15765_v37, %v15749_v20  ;;  %v8105_v33 = vpop.xlane.xlu0 %8104  ;;  %15164 = vmatprep.subr.mxu0 %v16194_v0 }
0x2033   :  { %15774 = vrcp.f32 %v8105_v33 }
0x2034   :  { %15152 = vmatmul.mubr.msk.f32.vlgmr.msra.gmra.mrb[86].mxu1 %vm110_vm1, %v8116_v36 }
0x2035   :  { %v15767_v25 = vpop.eup %15766  ;;  %15160 = vmatpush3.msra.mxu1 %v17508_v60  ;;  %15161 = vmatprep.mubr.msk.f32.mxu1 %vm16195_vm0, %v16194_v0 }
0x2036   :  { %v15769_v28 = vpop.eup %15768  ;;  %v8118_v51 = vmul.f32 %v15767_v25, %v15751_v47  ;;  %15169 = vmatprep.subr.mxu1 %v16194_v0  ;;  %v17534_v47 = vld [vmem:[#allocation9 + $0x38] sm:$0xff] }
0x2037   :  { %v8117_v8 = vmul.f32 %v15769_v28, %v15753_v12  ;;  %v17547_v12 = vld [vmem:[%s18235_s7] sm:$0xff] }
0x2038   :  { %15162 = vmatmul.mubr.msk.f32.vlgmr.msra.gmra.mrb[88].mxu1 %vm110_vm1, %v8118_v51 }
0x2039   :  { %v15771_v10 = vpop.eup %15770  ;;  %15157 = vmatmul.mubr.msk.f32.vlgmr.msra.gmra.mrb[88].mxu0 %vm110_vm1, %v8117_v8  ;;  %15170 = vmatpush3.msra.mxu1 %v17516_v46 }
0x203a   :  { %v15773_v4 = vpop.eup %15772  ;;  %v8120_v14 = vmul.f32 %v15771_v10, %v15755_v53  ;;  %15165 = vmatpush3.msra.mxu0 %v17519_v48  ;;  %15166 = vmatprep.mubr.msk.f32.mxu0 %vm16195_vm0, %v16194_v0 }
0x203b   :  { %v8119_v49 = vmul.f32 %v15773_v4, %v15757_v62  ;;  %15171 = vmatprep.mubr.msk.f32.mxu1 %vm16195_vm0, %v16194_v0  ;;  %15174 = vmatprep.subr.mxu0 %v16194_v0 }
0x203c   :  { %15172 = vmatmul.mubr.msk.f32.vlgmr.msra.gmra.mrb[90].mxu1 %vm110_vm1, %v8120_v14  ;;  %15179 = vmatprep.subr.mxu1 %v16194_v0 }
0x203d   :  { %v15775_v20 = vpop.eup %15774  ;;  %15167 = vmatmul.mubr.msk.f32.vlgmr.msra.gmra.mrb[90].mxu0 %vm110_vm1, %v8119_v49  ;;  %15180 = vmatpush3.msra.mxu1 %v17530_v17 }
0x203e   :  { %v8121_v39 = vmul.f32 %v15775_v20, %v17485_v23  ;;  %15175 = vmatpush3.msra.mxu0 %v17534_v47  ;;  %15176 = vmatprep.mubr.msk.f32.mxu0 %vm16195_vm0, %v16194_v0  ;;  %v8707_v20 = vld [vmem:[#allocation6 + $0x20] sm:$0xff] }
0x203f   :  { %15181 = vmatprep.mubr.msk.f32.mxu1 %vm16195_vm0, %v16194_v0  ;;  %15184 = vmatprep.subr.mxu0 %v16194_v0 }
0x2040   :  { %15189 = vmatprep.subr.mxu1 %v16194_v0 }
0x2041   :  { %15177 = vmatmul.mubr.msk.f32.vlgmr.msra.gmra.mrb[92].mxu0 %vm110_vm1, %v8121_v39 }
0x2042   :  { %15185 = vmatpush3.msra.mxu0 %v17547_v12  ;;  %15186 = vmatprep.mubr.msk.f32.mxu0 %vm16195_vm0, %v16194_v0 }
0x2043   :  { %15194 = vmatprep.subr.mxu0 %v16194_v0 }
0x2101   :  { %v8191_v45 = vpop.f32.mrb[84].mxu1 }
0x2102   :  { %v15143_v61 = vpop.f32.mrb[85].mxu1 }
0x2103   :  { %v8264_v53 = vpop.f32.mrb[86].mxu0 }
0x2104   :  { %v8716_v62 = vrot.slane %v8264_v53, 7  ;;  %v15148_v40 = vpop.f32.mrb[87].mxu0 }
0x2106   :  { %v8717_v32 = vsel %vm1718_vm3, %v8716_v62, %v8191_v45 }
0x2107   :  { %v8337_v23 = vpop.f32.mrb[86].mxu1 }
0x2108   :  { %v8718_v58 = vrot.slane %v8337_v23, 6  ;;  %v15153_v2 = vpop.f32.mrb[87].mxu1 }
0x210a   :  { %v8719_v7 = vsel %vm1721_vm4, %v8718_v58, %v8717_v32  ;;  %v17571_v58 = vld [vmem:[%s18236_s8] ss:$0 sm:$0xff] }
0x210b   :  { %v8483_v55 = vpop.f32.mrb[88].mxu1 }
0x210c   :  { %v8410_v21 = vpop.f32.mrb[88].mxu0  ;;  %v8722_v6 = vrot.slane %v8483_v55, 4  ;;  %v15163_v34 = vpop.f32.mrb[89].mxu1 }
0x210d   :  { %v8720_v3 = vrot.slane %v8410_v21, 5  ;;  %v15158_v29 = vpop.f32.mrb[89].mxu0  ;;  %v8885_v55 = vpop.permute.xlu1 %8884 }
0x210f   :  { %v8721_v15 = vsel %vm1724_vm5, %v8720_v3, %v8719_v7  ;;  %v8629_v35 = vpop.f32.mrb[90].mxu1 }
0x2110   :  { %v8723_v26 = vsel %vm1727_vm6, %v8722_v6, %v8721_v15  ;;  %v8556_v37 = vpop.f32.mrb[90].mxu0  ;;  %v8726_v36 = vrot.slane %v8629_v35, 2  ;;  %v15173_v33 = vpop.f32.mrb[91].mxu1 }
0x2111   :  { %v8724_v25 = vrot.slane %v8556_v37, 3  ;;  %v15168_v28 = vpop.f32.mrb[91].mxu0  ;;  %v8895_v15 = vpop.permute.xlu0 %8894 }
0x2113   :  { %v8725_v51 = vsel %vm1730_vm7, %v8724_v25, %v8723_v26 }
0x2114   :  { %v8727_v8 = vsel %vm1733_vm8, %v8726_v36, %v8725_v51  ;;  %v8702_v10 = vpop.f32.mrb[92].mxu0 }
0x2115   :  { %v8728_v4 = vrot.slane %v8702_v10, 1  ;;  %v15178_v14 = vpop.f32.mrb[93].mxu0 }
0x2117   :  { %v8729_v49 = vsel %vm1736_vm9, %v8728_v4, %v8727_v8  ;;  %v8991_v4 = vld [vmem:[#allocation3 + $0x28] sm:$0xff] }
0x2118   :  { %15182 = vmatmul.mubr.msk.f32.vlgmr.msra.gmra.mrb[92].mxu1 %vm110_vm1, %v8729_v49  ;;  %v9000_v14 = vrot.slane %v8991_v4, %v16370_v9 }
0x2119   :  { %15190 = vmatpush3.msra.mxu1 %v17290_v43  ;;  %15191 = vmatprep.mubr.msk.f32.mxu1 %vm16195_vm0, %v16194_v0 }
0x211a   :  { %15199 = vmatprep.subr.mxu1 %v16194_v0 }
0x21eb   :  { %v8798_v39 = vpop.f32.mrb[92].mxu1 }
0x21ec   :  { %v8802_v45 = vadd.f32 %v8798_v39, %v8707_v20  ;;  %v15183_v61 = vpop.f32.mrb[93].mxu1  ;;  %v9008_v20 = vcombine.high %v9000_v14, %v9000_v14 }
0x21ee   :  { %v14320_v53 = vmul.f32 -1.442695, %v8802_v45  ;;  %v9030_v45 = vrot.slane %v9008_v20, %v16370_v9 }
0x21f0   :  { %15776 = vpow2.f32 %v14320_v53 }
0x21fa   :  { %v15777_v62 = vpop.eup %15776 }
0x21fb   :  { %v8806_v40 = vadd.f32 1.0, %v15777_v62 }
0x21fd   :  { %15778 = vrcp.f32 %v8806_v40 }
0x2207   :  { %v15779_v32 = vpop.eup %15778 }
0x2208   :  { %v8810_v23 = vmul.f32 %v15779_v32, %v8729_v49  ;;  %v8993_v49 = vcombine.high %v8991_v4, %v8991_v4 }
0x220a   :  { %15187 = vmatmul.mubr.msk.f32.vlgmr.msra.gmra.mrb[94].mxu0 %vm110_vm1, %v8810_v23  ;;  %v9007_v39 = vrot.slane %v8993_v49, %v16370_v9 }
0x220b   :  { %15196 = vmatprep.mubr.msk.f32.mxu0 %vm16195_vm0, %v16194_v0 }
0x220c   :  { %v9009_v40 = vcombine.high %v9007_v39, %v9007_v39  ;;  %v9023_v23 = vrot.slane %v9007_v39, %v16370_v9 }
0x22dd   :  { %v8880_v43 = vpop.f32.mrb[94].mxu0 }
0x22de   :  { %v8881_v2 = vadd.f32 %v17571_v58, %v8880_v43  ;;  %v15188_v7 = vpop.f32.mrb[95].mxu0  ;;  %v9040_v43 = vcombine.high %v9030_v45, %v9030_v45 }
0x22e0   :  { %v8887_v21 = vadd.f32 %v8885_v55, %v8881_v2 }
0x22e2   :  { %v14322_v6 = vmul.f32 -1.442695, %v8887_v21  ;;  %v9049_v21 = vrot.slane %v9030_v45, %v16381_v18 }
0x22e4   :  { %15780 = vpow2.f32 %v14322_v6 }
0x22ee   :  { %v15781_v34 = vpop.eup %15780 }
0x22ef   :  { %v8891_v3 = vadd.f32 1.0, %v15781_v34 }
0x22f1   :  { %15782 = vrcp.f32 %v8891_v3 }
0x22fb   :  { %v15783_v29 = vpop.eup %15782 }
0x22fc   :  { %v8897_v35 = vmul.f32 %v15783_v29, %v8895_v15  ;;  %v8904_v33 = vsub.f32 1.0, %v15783_v29  ;;  %v8910_v28 = vmul.f32 %v15783_v29, %v17303_v19  ;;  %v9016_v19 = vrot.slane %v9000_v14, %v16370_v9 }
0x22fd   :  { %v9039_v15 = vcombine.high %v9023_v23, %v9023_v23 }
0x22fe   :  { %8899 = vrot.lane.b32.xlu1 %v8897_v35, %s16199_s18  ;;  %v9038_v53 = vcombine.high %v9016_v19, %v9016_v19  ;;  %v9057_v35 = vrot.slane %v9040_v43, %v16381_v18 }
0x2300   :  { %v9053_v6 = vrot.slane %v9038_v53, %v16381_v18  ;;  %v9069_v53 = vrot.slane %v9039_v15, %v16381_v18 }
0x2370   :  { %v8900_v26 = vpop.permute.xlu1 %8899 }
0x2371   :  { %v8902_v37 = vadd.f32 %v8900_v26, %v8881_v2  ;;  %v9045_v2 = vrot.slane %v9016_v19, %v16381_v18  ;;  %v9061_v26 = vrot.slane %v9023_v23, %v16381_v18 }
0x2373   :  { %15784 = vtanh.f32 %v8902_v37  ;;  %v9082_v37 = vadd.f32 %v17336_v11, %v9045_v2  ;;  %v9085_v11 = vadd.f32 %v17350_v42, %v9057_v35 }
0x237d   :  { %v15785_v36 = vpop.eup %15784 }
0x237e   :  { %8906 = vrot.lane.b32.xlu1 %v15785_v36, %s16198_s6 }
0x23f0   :  { %v8907_v25 = vpop.permute.xlu1 %8906 }
0x23f1   :  { %v8909_v51 = vmul.f32 %v8907_v25, %v8904_v33 }
0x23f3   :  { %v17577_v8 = vadd.f32 %v8910_v28, %v8909_v51  ;;  %v9083_v51 = vadd.f32 %v17341_v1, %v9049_v21  ;;  %v9086_v1 = vadd.f32 %v17356_v56, %v9061_v26 }
0x23f5   :  { %8913 = vrot.lane.b32.xlu1 %v17577_v8, %s16198_s6 }
0x2467   :  { %v8914_v10 = vpop.permute.xlu1 %8913 }
0x2468   :  { %8917 = vst.msk [vmem:[#allocation12 + $0x20] sm:$0xff] %vm110_vm1, %v8914_v10  ;;  %15192 = vmatmul.mubr.msk.f32.vlgmr.msra.gmra.mrb[94].mxu1 %vm110_vm1, %v8914_v10  ;;  %v9084_v10 = vadd.f32 %v17344_v63, %v9053_v6  ;;  %v9088_v6 = vadd.f32 %v17366_v22, %v9069_v53 }
0x2469   :  { %15201 = vmatprep.mubr.msk.f32.mxu1 %vm16195_vm0, %v16194_v0 }
0x253b   :  { %v8986_v61 = vpop.f32.mrb[94].mxu1 }
0x253c   :  { %v17590_v62 = vadd.f32 %v17318_v5, %v8986_v61  ;;  %v15193_v32 = vpop.f32.mrb[95].mxu1  ;;  %v9037_v5 = vrot.slane %v9009_v40, %v16370_v9 }
0x253e   :  { %v9091_v7 = vcombine.high %v17590_v62, %v17590_v62  ;;  %v9098_v55 = vrot.slane %v17590_v62, %v16370_v9  ;;  %v9041_v14 = vcombine.high %v9037_v5, %v9037_v5  ;;  %v9065_v49 = vrot.slane %v9037_v5, %v16381_v18 }
0x2540   :  { %v9105_v34 = vrot.slane %v9091_v7, %v16370_v9  ;;  %v9106_v3 = vcombine.high %v9098_v55, %v9098_v55  ;;  %v9114_v29 = vrot.slane %v9098_v55, %v16370_v9  ;;  %v9073_v2 = vrot.slane %v9041_v14, %v16381_v18 }
0x2541   :  { %v9087_v42 = vadd.f32 %v17362_v50, %v9065_v49 }
0x2542   :  { %v9107_v36 = vcombine.high %v9105_v34, %v9105_v34  ;;  %v9121_v33 = vrot.slane %v9105_v34, %v16370_v9  ;;  %v9128_v25 = vrot.slane %v9106_v3, %v16370_v9  ;;  %v9136_v28 = vcombine.high %v9114_v29, %v9114_v29 }
0x2543   :  { %v9143_v4 = vrot.slane %v9114_v29, %v16381_v18  ;;  %v9089_v34 = vadd.f32 %v17370_v59, %v9073_v2 }
0x2544   :  { %v9138_v20 = vcombine.high %v9128_v25, %v9128_v25  ;;  %v9147_v19 = vrot.slane %v9128_v25, %v16381_v18  ;;  %v9135_v39 = vrot.slane %v9107_v36, %v16370_v9  ;;  %v9151_v45 = vrot.slane %v9136_v28, %v16381_v18 }
0x2545   :  { %v9180_v61 = vadd.f32 %v9143_v4, %v9082_v37  ;;  %v9137_v63 = vcombine.high %v9121_v33, %v9121_v33  ;;  %v9159_v32 = vrot.slane %v9121_v33, %v16381_v18 }
0x2546   :  { %v9155_v40 = vrot.slane %v9138_v20, %v16381_v18  ;;  %v9181_v23 = vadd.f32 %v9147_v19, %v9083_v51  ;;  %v9182_v43 = vadd.f32 %v9151_v45, %v9084_v10  ;;  %v9139_v7 = vcombine.high %v9135_v39, %v9135_v39 }
0x2547   :  { %15786 = vtanh.f32 %v9180_v61  ;;  %v9163_v55 = vrot.slane %v9135_v39, %v16381_v18  ;;  %v9167_v56 = vrot.slane %v9137_v63, %v16381_v18  ;;  %v9184_v5 = vadd.f32 %v9159_v32, %v9086_v1 }
0x2548   :  { %v9183_v21 = vadd.f32 %v9155_v40, %v9085_v11  ;;  %15788 = vtanh.f32 %v9181_v23  ;;  %v9171_v3 = vrot.slane %v9139_v7, %v16381_v18 }
0x2549   :  { %15790 = vtanh.f32 %v9182_v43  ;;  %v9185_v29 = vadd.f32 %v9163_v55, %v9087_v42  ;;  %v9186_v15 = vadd.f32 %v9167_v56, %v9088_v6 }
0x254a   :  { %15792 = vtanh.f32 %v9183_v21  ;;  %v9187_v35 = vadd.f32 %v9171_v3, %v9089_v34 }
0x254b   :  { %15794 = vtanh.f32 %v9184_v5 }
0x254c   :  { %15796 = vtanh.f32 %v9185_v29 }
0x254d   :  { %15798 = vtanh.f32 %v9186_v15 }
0x254e   :  { %15800 = vtanh.f32 %v9187_v35 }
0x2551   :  { %v15787_v50 = vpop.eup %15786 }
0x2552   :  { %15195 = vmatpush3.xpose.msk.msra.mxu0 %vm110_vm1, %v15787_v50  ;;  %v15789_v26 = vpop.eup %15788 }
0x2553   :  { %15204 = vmatprep.subr.mxu0 %v16194_v0  ;;  %15200 = vmatpush3.xpose.msk.msra.mxu1 %vm110_vm1, %v15789_v26  ;;  %v15791_v22 = vpop.eup %15790 }
0x2554   :  { %15209 = vmatprep.subr.mxu1 %v16194_v0  ;;  %v15793_v59 = vpop.eup %15792 }
0x2555   :  { %15197 = vmatmul.mubr.msk.f32.vlgmr.msra.gmra.mrb[96].mxu0 %vm110_vm1, %v17380_v16  ;;  %v15795_v37 = vpop.eup %15794 }
0x2556   :  { %15205 = vmatpush3.xpose.msk.msra.mxu0 %vm110_vm1, %v15791_v22  ;;  %15206 = vmatprep.mubr.msk.f32.mxu0 %vm16195_vm0, %v16194_v0  ;;  %v15797_v16 = vpop.eup %15796 }
0x2557   :  { %15202 = vmatmul.mubr.msk.f32.vlgmr.msra.gmra.mrb[96].mxu1 %vm110_vm1, %v17391_v13  ;;  %15214 = vmatprep.subr.mxu0 %v16194_v0  ;;  %v15799_v13 = vpop.eup %15798 }
0x2558   :  { %15210 = vmatpush3.xpose.msk.msra.mxu1 %vm110_vm1, %v15793_v59  ;;  %15211 = vmatprep.mubr.msk.f32.mxu1 %vm16195_vm0, %v16194_v0 }
0x2559   :  { %15207 = vmatmul.mubr.msk.f32.vlgmr.msra.gmra.mrb[98].mxu0 %vm110_vm1, %v17402_v31  ;;  %15219 = vmatprep.subr.mxu1 %v16194_v0  ;;  %v15801_v31 = vpop.eup %15800 }
0x255a   :  { %15215 = vmatpush3.xpose.msk.msra.mxu0 %vm110_vm1, %v15795_v37  ;;  %15216 = vmatprep.mubr.msk.f32.mxu0 %vm16195_vm0, %v16194_v0 }
0x255b   :  { %15212 = vmatmul.mubr.msk.f32.vlgmr.msra.gmra.mrb[98].mxu1 %vm110_vm1, %v17413_v41  ;;  %15224 = vmatprep.subr.mxu0 %v16194_v0 }
0x255c   :  { %15220 = vmatpush3.xpose.msk.msra.mxu1 %vm110_vm1, %v15797_v16  ;;  %15221 = vmatprep.mubr.msk.f32.mxu1 %vm16195_vm0, %v16194_v0 }
0x255d   :  { %15217 = vmatmul.mubr.msk.f32.vlgmr.msra.gmra.mrb[100].mxu0 %vm110_vm1, %v17424_v30  ;;  %15229 = vmatprep.subr.mxu1 %v16194_v0 }
0x255e   :  { %15225 = vmatpush3.xpose.msk.msra.mxu0 %vm110_vm1, %v15799_v13  ;;  %15226 = vmatprep.mubr.msk.f32.mxu0 %vm16195_vm0, %v16194_v0 }
0x255f   :  { %15222 = vmatmul.mubr.msk.f32.vlgmr.msra.gmra.mrb[100].mxu1 %vm110_vm1, %v17435_v38  ;;  %15234 = vmatprep.subr.mxu0 %v16194_v0 }
0x2560   :  { %15230 = vmatpush3.xpose.msk.msra.mxu1 %vm110_vm1, %v15801_v31  ;;  %15231 = vmatprep.mubr.msk.f32.mxu1 %vm16195_vm0, %v16194_v0 }
0x2561   :  { %15227 = vmatmul.mubr.msk.f32.vlgmr.msra.gmra.mrb[102].mxu0 %vm110_vm1, %v17446_v52  ;;  %15239 = vmatprep.subr.mxu1 %v16194_v0 }
0x2562   :  { %15235 = vmatpush3.msra.mxu0 %v17451_v54  ;;  %15236 = vmatprep.mubr.msk.f32.mxu0 %vm16195_vm0, %v16194_v0 }
0x2563   :  { %15232 = vmatmul.mubr.msk.f32.vlgmr.msra.gmra.mrb[102].mxu1 %vm110_vm1, %v17459_v27  ;;  %15244 = vmatprep.subr.mxu0 %v16194_v0 }
0x2564   :  { %15240 = vmatpush3.msra.mxu1 %v17464_v57  ;;  %15241 = vmatprep.mubr.msk.f32.mxu1 %vm16195_vm0, %v16194_v0 }
0x2565   :  { %15249 = vmatprep.subr.mxu1 %v16194_v0 }
0x2628   :  { %v9265_v41 = vpop.f32.mrb[96].mxu0 }
0x2629   :  { %v15198_v30 = vpop.f32.mrb[97].mxu0  ;;  %v9780_v38 = vsel %vm1035_vm2, %v9265_v41, -inf }
0x262a   :  { %v9338_v52 = vpop.f32.mrb[96].mxu1  ;;  %9781 = vmax.xlane.f32.xlu0 %v9780_v38 }
0x262b   :  { %v9783_v54 = vsel %vm1035_vm2, %v9338_v52, -inf  ;;  %v15203_v36 = vpop.f32.mrb[97].mxu1 }
0x262c   :  { %9784 = vmax.xlane.f32.xlu1 %v9783_v54  ;;  %v9411_v27 = vpop.f32.mrb[98].mxu0 }
0x262d   :  { %v15208_v33 = vpop.f32.mrb[99].mxu0  ;;  %v9786_v25 = vsel %vm1035_vm2, %v9411_v27, -inf }
0x262e   :  { %9787 = vmax.xlane.f32.xlu0 %v9786_v25  ;;  %v9484_v57 = vpop.f32.mrb[98].mxu1 }
0x262f   :  { %v15213_v28 = vpop.f32.mrb[99].mxu1  ;;  %v9789_v51 = vsel %vm1035_vm2, %v9484_v57, -inf }
0x2630   :  { %v9557_v10 = vpop.f32.mrb[100].mxu0 }
0x2631   :  { %v15218_v4 = vpop.f32.mrb[101].mxu0  ;;  %v9792_v19 = vsel %vm1035_vm2, %v9557_v10, -inf }
0x2632   :  { %v9630_v14 = vpop.f32.mrb[100].mxu1  ;;  %9790 = vmax.xlane.f32.xlu0 %v9789_v51 }
0x2633   :  { %v9795_v49 = vsel %vm1035_vm2, %v9630_v14, -inf  ;;  %v15223_v20 = vpop.f32.mrb[101].mxu1 }
0x2634   :  { %9796 = vmax.xlane.f32.xlu1 %v9795_v49  ;;  %v9703_v11 = vpop.f32.mrb[102].mxu0 }
0x2635   :  { %v15228_v39 = vpop.f32.mrb[103].mxu0  ;;  %v9798_v1 = vsel %vm1035_vm2, %v9703_v11, -inf }
0x2636   :  { %v9776_v45 = vpop.f32.mrb[102].mxu1  ;;  %9793 = vmax.xlane.f32.xlu0 %v9792_v19 }
0x2637   :  { %v9801_v61 = vsel %vm1035_vm2, %v9776_v45, -inf  ;;  %v15233_v53 = vpop.f32.mrb[103].mxu1 }
0x2638   :  { %9802 = vmax.xlane.f32.xlu1 %v9801_v61 }
0x263a   :  { %9799 = vmax.xlane.f32.xlu0 %v9798_v1 }
0x26b7   :  { %v9782_v63 = vpop.xlane.xlu0 %9781 }
0x26b8   :  { %v9804_v40 = vsub.f32 %v9265_v41, %v9782_v63 }
0x26b9   :  { %v9785_v32 = vpop.xlane.xlu1 %9784 }
0x26ba   :  { %v9812_v23 = vmul.f32 1.442695, %v9804_v40  ;;  %v9805_v43 = vsub.f32 %v9338_v52, %v9785_v32 }
0x26bb   :  { %v9788_v2 = vpop.xlane.xlu0 %9787 }
0x26bc   :  { %15802 = vpow2.f32 %v9812_v23  ;;  %v9814_v42 = vmul.f32 1.442695, %v9805_v43  ;;  %v9806_v7 = vsub.f32 %v9411_v27, %v9788_v2 }
0x26be   :  { %15804 = vpow2.f32 %v9814_v42  ;;  %v9816_v55 = vmul.f32 1.442695, %v9806_v7 }
0x26bf   :  { %v9791_v21 = vpop.xlane.xlu0 %9790 }
0x26c0   :  { %15806 = vpow2.f32 %v9816_v55  ;;  %v9807_v6 = vsub.f32 %v9484_v57, %v9791_v21 }
0x26c1   :  { %v9797_v56 = vpop.xlane.xlu1 %9796 }
0x26c2   :  { %v9818_v5 = vmul.f32 1.442695, %v9807_v6  ;;  %v9809_v34 = vsub.f32 %v9630_v14, %v9797_v56 }
0x26c3   :  { %v9794_v3 = vpop.xlane.xlu0 %9793 }
0x26c4   :  { %15808 = vpow2.f32 %v9818_v5  ;;  %v9822_v29 = vmul.f32 1.442695, %v9809_v34  ;;  %v9808_v15 = vsub.f32 %v9557_v10, %v9794_v3 }
0x26c5   :  { %v9803_v50 = vpop.xlane.xlu1 %9802 }
0x26c6   :  { %v15803_v35 = vpop.eup %15802  ;;  %15810 = vpow2.f32 %v9822_v29  ;;  %v9820_v26 = vmul.f32 1.442695, %v9808_v15  ;;  %v9811_v22 = vsub.f32 %v9776_v45, %v9803_v50 }
0x26c7   :  { %v9800_v59 = vpop.xlane.xlu0 %9799  ;;  %v9828_v37 = vsel %vm1035_vm2, %v15803_v35, 0.0 }
0x26c8   :  { %v15805_v16 = vpop.eup %15804  ;;  %15812 = vpow2.f32 %v9820_v26  ;;  %v9826_v13 = vmul.f32 1.442695, %v9811_v22  ;;  %v9810_v31 = vsub.f32 %v9703_v11, %v9800_v59  ;;  %9829 = vadd.xlane.f32.xlu0 %v9828_v37 }
0x26c9   :  { %v9831_v41 = vsel %vm1035_vm2, %v15805_v16, 0.0 }
0x26ca   :  { %v15807_v30 = vpop.eup %15806  ;;  %15814 = vpow2.f32 %v9826_v13  ;;  %v9824_v38 = vmul.f32 1.442695, %v9810_v31  ;;  %9832 = vadd.xlane.f32.xlu1 %v9831_v41 }
0x26cb   :  { %v9834_v52 = vsel %vm1035_vm2, %v15807_v30, 0.0 }
0x26cc   :  { %15816 = vpow2.f32 %v9824_v38  ;;  %9835 = vadd.xlane.f32.xlu0 %v9834_v52 }
0x26ce   :  { %v15809_v54 = vpop.eup %15808 }
0x26cf   :  { %v9837_v36 = vsel %vm1035_vm2, %v15809_v54, 0.0 }
0x26d0   :  { %v15811_v27 = vpop.eup %15810  ;;  %9838 = vadd.xlane.f32.xlu1 %v9837_v36 }
0x26d1   :  { %v9843_v25 = vsel %vm1035_vm2, %v15811_v27, 0.0 }
0x26d2   :  { %v15813_v33 = vpop.eup %15812 }
0x26d3   :  { %v9840_v57 = vsel %vm1035_vm2, %v15813_v33, 0.0 }
0x26d4   :  { %v15815_v28 = vpop.eup %15814  ;;  %9844 = vadd.xlane.f32.xlu1 %v9843_v25  ;;  %9841 = vadd.xlane.f32.xlu0 %v9840_v57  ;;  %v17750_v57 = vld [vmem:[%s18233_s5] sm:$0xff] }
0x26d5   :  { %v9849_v10 = vsel %vm1035_vm2, %v15815_v28, 0.0 }
0x26d6   :  { %v15817_v51 = vpop.eup %15816 }
0x26d7   :  { %v9846_v4 = vsel %vm1035_vm2, %v15817_v51, 0.0 }
0x26d8   :  { %9850 = vadd.xlane.f32.xlu1 %v9849_v10  ;;  %9847 = vadd.xlane.f32.xlu0 %v9846_v4 }
0x26e9   :  { %10640 = vrot.lane.b32.xlu1 %v17590_v62, %s16197_s27 }
0x26ee   :  { %10630 = vrot.lane.b32.xlu0 %v17590_v62, %s16198_s6 }
0x2755   :  { %v9830_v14 = vpop.xlane.xlu0 %9829 }
0x2756   :  { %15818 = vrcp.f32 %v9830_v14 }
0x2757   :  { %v9833_v49 = vpop.xlane.xlu1 %9832 }
0x2758   :  { %15820 = vrcp.f32 %v9833_v49 }
0x2759   :  { %v9836_v20 = vpop.xlane.xlu0 %9835 }
0x275a   :  { %15822 = vrcp.f32 %v9836_v20 }
0x275d   :  { %v9839_v19 = vpop.xlane.xlu1 %9838 }
0x275e   :  { %15824 = vrcp.f32 %v9839_v19 }
0x2760   :  { %v15819_v11 = vpop.eup %15818 }
0x2761   :  { %v9860_v39 = vmul.f32 %v15819_v11, %v15803_v35  ;;  %v9845_v45 = vpop.xlane.xlu1 %9844  ;;  %v9842_v61 = vpop.xlane.xlu0 %9841 }
0x2762   :  { %v15821_v53 = vpop.eup %15820  ;;  %15826 = vrcp.f32 %v9845_v45 }
0x2763   :  { %v9861_v1 = vmul.f32 %v15821_v53, %v15805_v16  ;;  %15828 = vrcp.f32 %v9842_v61  ;;  %15237 = vmatmul.mubr.msk.f32.vlgmr.msra.gmra.mrb[104].mxu0 %vm110_vm1, %v9860_v39 }
0x2764   :  { %v15823_v63 = vpop.eup %15822  ;;  %15245 = vmatpush3.msra.mxu0 %v17494_v24  ;;  %15246 = vmatprep.mubr.msk.f32.mxu0 %vm16195_vm0, %v16194_v0 }
0x2765   :  { %v9862_v62 = vmul.f32 %v15823_v63, %v15807_v30  ;;  %15242 = vmatmul.mubr.msk.f32.vlgmr.msra.gmra.mrb[104].mxu1 %vm110_vm1, %v9861_v1  ;;  %v9851_v40 = vpop.xlane.xlu1 %9850  ;;  %v9848_v32 = vpop.xlane.xlu0 %9847  ;;  %15254 = vmatprep.subr.mxu0 %v16194_v0 }
0x2766   :  { %15830 = vrcp.f32 %v9851_v40  ;;  %15250 = vmatpush3.msra.mxu1 %v17501_v44  ;;  %15251 = vmatprep.mubr.msk.f32.mxu1 %vm16195_vm0, %v16194_v0 }
0x2767   :  { %15832 = vrcp.f32 %v9848_v32  ;;  %15247 = vmatmul.mubr.msk.f32.vlgmr.msra.gmra.mrb[106].mxu0 %vm110_vm1, %v9862_v62  ;;  %15259 = vmatprep.subr.mxu1 %v16194_v0 }
0x2768   :  { %v15825_v24 = vpop.eup %15824  ;;  %15255 = vmatpush3.msra.mxu0 %v17508_v60  ;;  %15256 = vmatprep.mubr.msk.f32.mxu0 %vm16195_vm0, %v16194_v0 }
0x2769   :  { %v9863_v23 = vmul.f32 %v15825_v24, %v15809_v54  ;;  %15264 = vmatprep.subr.mxu0 %v16194_v0  ;;  %v10631_v53 = vpop.permute.xlu0 %10630  ;;  %v10641_v24 = vpop.permute.xlu1 %10640 }
0x276b   :  { %15252 = vmatmul.mubr.msk.f32.vlgmr.msra.gmra.mrb[106].mxu1 %vm110_vm1, %v9863_v23 }
0x276c   :  { %v15827_v44 = vpop.eup %15826  ;;  %15260 = vmatpush3.msra.mxu1 %v17519_v48  ;;  %15261 = vmatprep.mubr.msk.f32.mxu1 %vm16195_vm0, %v16194_v0 }
0x276d   :  { %v15829_v43 = vpop.eup %15828  ;;  %v9865_v2 = vmul.f32 %v15827_v44, %v15811_v27  ;;  %15269 = vmatprep.subr.mxu1 %v16194_v0 }
0x276e   :  { %v9864_v42 = vmul.f32 %v15829_v43, %v15813_v33 }
0x276f   :  { %15262 = vmatmul.mubr.msk.f32.vlgmr.msra.gmra.mrb[108].mxu1 %vm110_vm1, %v9865_v2 }
0x2770   :  { %v15831_v60 = vpop.eup %15830  ;;  %15257 = vmatmul.mubr.msk.f32.vlgmr.msra.gmra.mrb[108].mxu0 %vm110_vm1, %v9864_v42  ;;  %15270 = vmatpush3.msra.mxu1 %v17534_v47 }
0x2771   :  { %v15833_v7 = vpop.eup %15832  ;;  %v9867_v55 = vmul.f32 %v15831_v60, %v15815_v28  ;;  %15265 = vmatpush3.msra.mxu0 %v17516_v46  ;;  %15266 = vmatprep.mubr.msk.f32.mxu0 %vm16195_vm0, %v16194_v0  ;;  %v10453_v28 = vld [vmem:[#allocation6 + $0x28] sm:$0xff] }
0x2772   :  { %v9866_v48 = vmul.f32 %v15833_v7, %v15817_v51  ;;  %15271 = vmatprep.mubr.msk.f32.mxu1 %vm16195_vm0, %v16194_v0  ;;  %15274 = vmatprep.subr.mxu0 %v16194_v0 }
0x2773   :  { %15272 = vmatmul.mubr.msk.f32.vlgmr.msra.gmra.mrb[110].mxu1 %vm110_vm1, %v9867_v55  ;;  %15279 = vmatprep.subr.mxu1 %v16194_v0 }
0x2774   :  { %15267 = vmatmul.mubr.msk.f32.vlgmr.msra.gmra.mrb[110].mxu0 %vm110_vm1, %v9866_v48  ;;  %15280 = vmatpush3.msra.mxu1 %v17547_v12 }
0x2775   :  { %15275 = vmatpush3.msra.mxu0 %v17530_v17  ;;  %15276 = vmatprep.mubr.msk.f32.mxu0 %vm16195_vm0, %v16194_v0 }
0x2776   :  { %15281 = vmatprep.mubr.msk.f32.mxu1 %vm16195_vm0, %v16194_v0  ;;  %15284 = vmatprep.subr.mxu0 %v16194_v0 }
0x2777   :  { %15289 = vmatprep.subr.mxu1 %v16194_v0 }
0x2836   :  { %v9937_v46 = vpop.f32.mrb[104].mxu0 }
0x2837   :  { %v15238_v47 = vpop.f32.mrb[105].mxu0 }
0x2838   :  { %v10010_v21 = vpop.f32.mrb[104].mxu1 }
0x2839   :  { %v10462_v6 = vrot.slane %v10010_v21, 7  ;;  %v15243_v56 = vpop.f32.mrb[105].mxu1 }
0x283a   :  { %v10083_v5 = vpop.f32.mrb[106].mxu0 }
0x283b   :  { %v10463_v12 = vsel %vm1718_vm3, %v10462_v6, %v9937_v46  ;;  %v10464_v34 = vrot.slane %v10083_v5, 6  ;;  %v15248_v17 = vpop.f32.mrb[107].mxu0  ;;  %v10737_v46 = vld [vmem:[#allocation3 + $0x30] sm:$0xff] }
0x283c   :  { %v10746_v47 = vrot.slane %v10737_v46, %v16370_v9  ;;  %v10739_v21 = vcombine.high %v10737_v46, %v10737_v46  ;;  %v17778_v17 = vld [vmem:[%s18237_s9] ss:$0 sm:$0xff] }
0x283d   :  { %v10465_v3 = vsel %vm1721_vm4, %v10464_v34, %v10463_v12 }
0x283e   :  { %v10156_v29 = vpop.f32.mrb[106].mxu1  ;;  %v10754_v6 = vcombine.high %v10746_v47, %v10746_v47  ;;  %v10753_v56 = vrot.slane %v10739_v21, %v16370_v9  ;;  %v17826_v21 = vld [vmem:[#allocation8 + $0x30] sm:$0xff] }
0x283f   :  { %v10466_v15 = vrot.slane %v10156_v29, 5  ;;  %v15253_v50 = vpop.f32.mrb[107].mxu1 }
0x2840   :  { %v10776_v5 = vrot.slane %v10754_v6, %v16370_v9  ;;  %v10755_v29 = vcombine.high %v10753_v56, %v10753_v56  ;;  %v10769_v50 = vrot.slane %v10753_v56, %v16370_v9 }
0x2841   :  { %v10467_v35 = vsel %vm1724_vm5, %v10466_v15, %v10465_v3 }
0x2842   :  { %v10302_v26 = vpop.f32.mrb[108].mxu1 }
0x2843   :  { %v10229_v22 = vpop.f32.mrb[108].mxu0  ;;  %v10470_v59 = vrot.slane %v10302_v26, 3  ;;  %v15263_v37 = vpop.f32.mrb[109].mxu1 }
0x2844   :  { %v10468_v16 = vrot.slane %v10229_v22, 4  ;;  %v15258_v13 = vpop.f32.mrb[109].mxu0  ;;  %v10795_v37 = vrot.slane %v10776_v5, %v16381_v18 }
0x2845   :  { %v10783_v13 = vrot.slane %v10755_v29, %v16370_v9 }
0x2846   :  { %v10469_v31 = vsel %vm1727_vm6, %v10468_v16, %v10467_v35  ;;  %v10448_v41 = vpop.f32.mrb[110].mxu1  ;;  %v10786_v35 = vcombine.high %v10776_v5, %v10776_v5  ;;  %v17830_v5 = vld [vmem:[#allocation8 + $0x38] sm:$0xff] }
0x2847   :  { %v10471_v30 = vsel %vm1730_vm7, %v10470_v59, %v10469_v31  ;;  %v10375_v38 = vpop.f32.mrb[110].mxu0  ;;  %v10474_v52 = vrot.slane %v10448_v41, 1  ;;  %v15273_v54 = vpop.f32.mrb[111].mxu1 }
0x2848   :  { %v10472_v36 = vrot.slane %v10375_v38, 2  ;;  %v15268_v27 = vpop.f32.mrb[111].mxu0  ;;  %v10785_v38 = vcombine.high %v10769_v50, %v10769_v50  ;;  %v10807_v54 = vrot.slane %v10769_v50, %v16381_v18 }
0x284a   :  { %v10473_v33 = vsel %vm1733_vm8, %v10472_v36, %v10471_v30  ;;  %v17796_v36 = vld [vmem:[#allocation8] sm:$0xff] }
0x284b   :  { %v10475_v25 = vsel %vm1736_vm9, %v10474_v52, %v10473_v33  ;;  %v10803_v52 = vrot.slane %v10786_v35, %v16381_v18 }
0x284c   :  { %15277 = vmatmul.mubr.msk.f32.vlgmr.msra.gmra.mrb[112].mxu0 %vm110_vm1, %v10475_v25 }
0x284d   :  { %15285 = vmatpush3.msra.mxu0 %v17750_v57  ;;  %15286 = vmatprep.mubr.msk.f32.mxu0 %vm16195_vm0, %v16194_v0 }
0x284e   :  { %15294 = vmatprep.subr.mxu0 %v16194_v0 }
0x291f   :  { %v10544_v51 = vpop.f32.mrb[112].mxu0 }
0x2920   :  { %v10548_v10 = vadd.f32 %v10544_v51, %v10453_v28  ;;  %v15278_v4 = vpop.f32.mrb[113].mxu0 }
0x2922   :  { %v14349_v14 = vmul.f32 -1.442695, %v10548_v10  ;;  %v17801_v10 = vld [vmem:[#allocation8 + $0x8] sm:$0xff] }
0x2923   :  { %v10829_v4 = vadd.f32 %v17801_v10, %v10795_v37 }
0x2924   :  { %15834 = vpow2.f32 %v14349_v14  ;;  %v17804_v14 = vld [vmem:[#allocation8 + $0x10] sm:$0xff] }
0x292e   :  { %v15835_v49 = vpop.eup %15834 }
0x292f   :  { %v10552_v20 = vadd.f32 1.0, %v15835_v49 }
0x2931   :  { %15836 = vrcp.f32 %v10552_v20 }
0x293b   :  { %v15837_v19 = vpop.eup %15836 }
0x293c   :  { %v10556_v11 = vmul.f32 %v15837_v19, %v10475_v25  ;;  %v10787_v19 = vcombine.high %v10783_v13, %v10783_v13 }
0x293e   :  { %15282 = vmatmul.mubr.msk.f32.vlgmr.msra.gmra.mrb[112].mxu1 %vm110_vm1, %v10556_v11  ;;  %v10811_v11 = vrot.slane %v10783_v13, %v16381_v18 }
0x293f   :  { %15291 = vmatprep.mubr.msk.f32.mxu1 %vm16195_vm0, %v16194_v0 }
0x2a11   :  { %v10626_v39 = vpop.f32.mrb[112].mxu1 }
0x2a12   :  { %v10627_v45 = vadd.f32 %v17571_v58, %v10626_v39  ;;  %v15283_v61 = vpop.f32.mrb[113].mxu1 }
0x2a13   :  { %v17810_v61 = vld [vmem:[#allocation8 + $0x18] sm:$0xff] }
0x2a14   :  { %v10633_v1 = vadd.f32 %v10631_v53, %v10627_v45  ;;  %v10831_v53 = vadd.f32 %v17810_v61, %v10803_v52  ;;  %v17884_v52 = vld [vmem:[%s18232_s4 + $0x4] sm:$0x1] }
0x2a16   :  { %v14351_v63 = vmul.f32 -1.442695, %v10633_v1 }
0x2a18   :  { %15838 = vpow2.f32 %v14351_v63 }
0x2a22   :  { %v15839_v62 = vpop.eup %15838 }
0x2a23   :  { %v10637_v40 = vadd.f32 1.0, %v15839_v62 }
0x2a25   :  { %15840 = vrcp.f32 %v10637_v40  ;;  %v10815_v40 = vrot.slane %v10785_v38, %v16381_v18 }
0x2a27   :  { %v10834_v6 = vadd.f32 %v17826_v21, %v10815_v40 }
0x2a2f   :  { %v15841_v32 = vpop.eup %15840 }
0x2a30   :  { %v10643_v23 = vmul.f32 %v15841_v32, %v10641_v24  ;;  %v10650_v58 = vsub.f32 1.0, %v15841_v32  ;;  %v10656_v60 = vmul.f32 %v15841_v32, %v17577_v8  ;;  %v10762_v8 = vrot.slane %v10746_v47, %v16370_v9  ;;  %v17816_v32 = vld [vmem:[#allocation8 + $0x20] sm:$0xff] }
0x2a31   :  { %v10832_v24 = vadd.f32 %v17816_v32, %v10807_v54 }
0x2a32   :  { %10645 = vrot.lane.b32.xlu1 %v10643_v23, %s16199_s18  ;;  %v10784_v34 = vcombine.high %v10762_v8, %v10762_v8  ;;  %v10791_v26 = vrot.slane %v10762_v8, %v16381_v18 }
0x2a34   :  { %v10799_v16 = vrot.slane %v10784_v34, %v16381_v18  ;;  %v10828_v27 = vadd.f32 %v17796_v36, %v10791_v26 }
0x2a36   :  { %v10830_v49 = vadd.f32 %v17804_v14, %v10799_v16  ;;  %v17851_v16 = vld [vmem:[%s18232_s4 + $0x1] sm:$0x1] }
0x2aa4   :  { %v10646_v44 = vpop.permute.xlu1 %10645 }
0x2aa5   :  { %v10648_v43 = vadd.f32 %v10646_v44, %v10627_v45 }
0x2aa7   :  { %15842 = vtanh.f32 %v10648_v43 }
0x2ab1   :  { %v15843_v2 = vpop.eup %15842 }
0x2ab2   :  { %10652 = vrot.lane.b32.xlu1 %v15843_v2, %s16198_s6 }
0x2b24   :  { %v10653_v42 = vpop.permute.xlu1 %10652 }
0x2b25   :  { %v10655_v7 = vmul.f32 %v10653_v42, %v10650_v58  ;;  %v10819_v42 = vrot.slane %v10787_v19, %v16381_v18 }
0x2b27   :  { %v17763_v55 = vadd.f32 %v10656_v60, %v10655_v7  ;;  %v17822_v60 = vld [vmem:[#allocation8 + $0x28] sm:$0xff] }
0x2b28   :  { %v10833_v7 = vadd.f32 %v17822_v60, %v10811_v11 }
0x2b29   :  { %10659 = vrot.lane.b32.xlu0 %v17763_v55, %s16198_s6 }
0x2b9b   :  { %v10660_v48 = vpop.permute.xlu0 %10659 }
0x2b9c   :  { %10663 = vst.msk [vmem:[#allocation12 + $0x28] sm:$0xff] %vm110_vm1, %v10660_v48  ;;  %15287 = vmatmul.mubr.msk.f32.vlgmr.msra.gmra.mrb[114].mxu0 %vm110_vm1, %v10660_v48 }
0x2b9d   :  { %15296 = vmatprep.mubr.msk.f32.mxu0 %vm16195_vm0, %v16194_v0 }
0x2c6f   :  { %v10732_v12 = vpop.f32.mrb[114].mxu0 }
0x2c70   :  { %v17781_v3 = vadd.f32 %v17778_v17, %v10732_v12  ;;  %v15288_v15 = vpop.f32.mrb[115].mxu0  ;;  %v10835_v12 = vadd.f32 %v17830_v5, %v10819_v42 }
0x2c72   :  { %v10837_v22 = vcombine.high %v17781_v3, %v17781_v3  ;;  %v10844_v59 = vrot.slane %v17781_v3, %v16370_v9 }
0x2c74   :  { %v10851_v31 = vrot.slane %v10837_v22, %v16370_v9  ;;  %v10852_v41 = vcombine.high %v10844_v59, %v10844_v59  ;;  %v10860_v30 = vrot.slane %v10844_v59, %v16370_v9  ;;  %v17840_v59 = vld [vmem:[%s18232_s4] sm:$0x1] }
0x2c76   :  { %v10853_v33 = vcombine.high %v10851_v31, %v10851_v31  ;;  %v10867_v25 = vrot.slane %v10851_v31, %v16370_v9  ;;  %v10874_v28 = vrot.slane %v10852_v41, %v16370_v9  ;;  %v10882_v51 = vcombine.high %v10860_v30, %v10860_v30  ;;  %v17862_v31 = vld [vmem:[%s18232_s4 + $0x2] sm:$0x1] }
0x2c77   :  { %v10889_v20 = vrot.slane %v10860_v30, %v16381_v18  ;;  %v17873_v30 = vld [vmem:[%s18232_s4 + $0x3] sm:$0x1] }
0x2c78   :  { %v10884_v39 = vcombine.high %v10874_v28, %v10874_v28  ;;  %v10893_v45 = vrot.slane %v10874_v28, %v16381_v18  ;;  %v10881_v1 = vrot.slane %v10853_v33, %v16370_v9  ;;  %v10897_v63 = vrot.slane %v10882_v51, %v16381_v18  ;;  %v17906_v33 = vld [vmem:[%s18232_s4 + $0x6] sm:$0x1]  ;;  %v17919_v28 = vld [vmem:[%s18232_s4 + $0x7] sm:$0x1]  ;;  %v17924_v51 = vld [vmem:[#allocation9 + $0x8] sm:$0xff] }
0x2c79   :  { %v10926_v62 = vadd.f32 %v10889_v20, %v10828_v27  ;;  %v10883_v23 = vcombine.high %v10867_v25, %v10867_v25  ;;  %v10905_v43 = vrot.slane %v10867_v25, %v16381_v18  ;;  %v17895_v27 = vld [vmem:[%s18232_s4 + $0x5] sm:$0x1]  ;;  %v17911_v25 = vld [vmem:[#allocation9] sm:$0xff] }
0x2c7a   :  { %v10901_v44 = vrot.slane %v10884_v39, %v16381_v18  ;;  %v10927_v2 = vadd.f32 %v10893_v45, %v10829_v4  ;;  %v10928_v58 = vadd.f32 %v10897_v63, %v10830_v49  ;;  %v10885_v48 = vcombine.high %v10881_v1, %v10881_v1 }
0x2c7b   :  { %15844 = vtanh.f32 %v10926_v62  ;;  %v10909_v46 = vrot.slane %v10881_v1, %v16381_v18  ;;  %v10913_v8 = vrot.slane %v10883_v23, %v16381_v18  ;;  %v10930_v56 = vadd.f32 %v10905_v43, %v10832_v24 }
0x2c7c   :  { %v10929_v47 = vadd.f32 %v10901_v44, %v10831_v53  ;;  %15846 = vtanh.f32 %v10927_v2  ;;  %v10917_v34 = vrot.slane %v10885_v48, %v16381_v18 }
0x2c7d   :  { %15848 = vtanh.f32 %v10928_v58  ;;  %v10931_v29 = vadd.f32 %v10909_v46, %v10833_v7  ;;  %v10932_v15 = vadd.f32 %v10913_v8, %v10834_v6 }
0x2c7e   :  { %15850 = vtanh.f32 %v10929_v47  ;;  %v10933_v35 = vadd.f32 %v10917_v34, %v10835_v12 }
0x2c7f   :  { %15852 = vtanh.f32 %v10930_v56 }
0x2c80   :  { %15854 = vtanh.f32 %v10931_v29 }
0x2c81   :  { %15856 = vtanh.f32 %v10932_v15 }
0x2c82   :  { %15858 = vtanh.f32 %v10933_v35 }
0x2c85   :  { %v15845_v50 = vpop.eup %15844 }
0x2c86   :  { %15290 = vmatpush3.xpose.msk.msra.mxu1 %vm110_vm1, %v15845_v50  ;;  %v15847_v26 = vpop.eup %15846 }
0x2c87   :  { %15299 = vmatprep.subr.mxu1 %v16194_v0  ;;  %15295 = vmatpush3.xpose.msk.msra.mxu0 %vm110_vm1, %v15847_v26  ;;  %v15849_v22 = vpop.eup %15848 }
0x2c88   :  { %15304 = vmatprep.subr.mxu0 %v16194_v0  ;;  %v15851_v37 = vpop.eup %15850 }
0x2c89   :  { %15292 = vmatmul.mubr.msk.f32.vlgmr.msra.gmra.mrb[114].mxu1 %vm110_vm1, %v17840_v59  ;;  %v15853_v13 = vpop.eup %15852 }
0x2c8a   :  { %15300 = vmatpush3.xpose.msk.msra.mxu1 %vm110_vm1, %v15849_v22  ;;  %15301 = vmatprep.mubr.msk.f32.mxu1 %vm16195_vm0, %v16194_v0  ;;  %v15855_v41 = vpop.eup %15854 }
0x2c8b   :  { %15297 = vmatmul.mubr.msk.f32.vlgmr.msra.gmra.mrb[116].mxu0 %vm110_vm1, %v17851_v16  ;;  %15309 = vmatprep.subr.mxu1 %v16194_v0  ;;  %v15857_v38 = vpop.eup %15856 }
0x2c8c   :  { %15305 = vmatpush3.xpose.msk.msra.mxu0 %vm110_vm1, %v15851_v37  ;;  %15306 = vmatprep.mubr.msk.f32.mxu0 %vm16195_vm0, %v16194_v0  ;;  %v15859_v54 = vpop.eup %15858 }
0x2c8d   :  { %15302 = vmatmul.mubr.msk.f32.vlgmr.msra.gmra.mrb[116].mxu1 %vm110_vm1, %v17862_v31  ;;  %15314 = vmatprep.subr.mxu0 %v16194_v0 }
0x2c8e   :  { %15310 = vmatpush3.xpose.msk.msra.mxu1 %vm110_vm1, %v15853_v13  ;;  %15311 = vmatprep.mubr.msk.f32.mxu1 %vm16195_vm0, %v16194_v0 }
0x2c8f   :  { %15307 = vmatmul.mubr.msk.f32.vlgmr.msra.gmra.mrb[118].mxu0 %vm110_vm1, %v17873_v30  ;;  %15319 = vmatprep.subr.mxu1 %v16194_v0 }
0x2c90   :  { %15315 = vmatpush3.xpose.msk.msra.mxu0 %vm110_vm1, %v15855_v41  ;;  %15316 = vmatprep.mubr.msk.f32.mxu0 %vm16195_vm0, %v16194_v0 }
0x2c91   :  { %15312 = vmatmul.mubr.msk.f32.vlgmr.msra.gmra.mrb[118].mxu1 %vm110_vm1, %v17884_v52  ;;  %15324 = vmatprep.subr.mxu0 %v16194_v0 }
0x2c92   :  { %15320 = vmatpush3.xpose.msk.msra.mxu1 %vm110_vm1, %v15857_v38  ;;  %15321 = vmatprep.mubr.msk.f32.mxu1 %vm16195_vm0, %v16194_v0 }
0x2c93   :  { %15317 = vmatmul.mubr.msk.f32.vlgmr.msra.gmra.mrb[120].mxu0 %vm110_vm1, %v17895_v27  ;;  %15329 = vmatprep.subr.mxu1 %v16194_v0 }
0x2c94   :  { %15325 = vmatpush3.xpose.msk.msra.mxu0 %vm110_vm1, %v15859_v54  ;;  %15326 = vmatprep.mubr.msk.f32.mxu0 %vm16195_vm0, %v16194_v0 }
0x2c95   :  { %15322 = vmatmul.mubr.msk.f32.vlgmr.msra.gmra.mrb[120].mxu1 %vm110_vm1, %v17906_v33  ;;  %15334 = vmatprep.subr.mxu0 %v16194_v0 }
0x2c96   :  { %15330 = vmatpush3.msra.mxu1 %v17911_v25  ;;  %15331 = vmatprep.mubr.msk.f32.mxu1 %vm16195_vm0, %v16194_v0 }
0x2c97   :  { %15327 = vmatmul.mubr.msk.f32.vlgmr.msra.gmra.mrb[122].mxu0 %vm110_vm1, %v17919_v28  ;;  %15339 = vmatprep.subr.mxu1 %v16194_v0 }
0x2c98   :  { %15335 = vmatpush3.msra.mxu0 %v17924_v51  ;;  %15336 = vmatprep.mubr.msk.f32.mxu0 %vm16195_vm0, %v16194_v0 }
0x2c99   :  { %15344 = vmatprep.subr.mxu0 %v16194_v0 }
0x2d5c   :  { %v11011_v4 = vpop.f32.mrb[114].mxu1 }
0x2d5d   :  { %v11526_v49 = vsel %vm1035_vm2, %v11011_v4, -inf  ;;  %v15293_v20 = vpop.f32.mrb[115].mxu1 }
0x2d5e   :  { %11527 = vmax.xlane.f32.xlu1 %v11526_v49  ;;  %v11084_v19 = vpop.f32.mrb[116].mxu0 }
0x2d5f   :  { %v15298_v11 = vpop.f32.mrb[117].mxu0  ;;  %v11529_v39 = vsel %vm1035_vm2, %v11084_v19, -inf }
0x2d60   :  { %11530 = vmax.xlane.f32.xlu0 %v11529_v39  ;;  %v11157_v45 = vpop.f32.mrb[116].mxu1 }
0x2d61   :  { %v15303_v53 = vpop.f32.mrb[117].mxu1  ;;  %v11532_v1 = vsel %vm1035_vm2, %v11157_v45, -inf }
0x2d62   :  { %v11230_v63 = vpop.f32.mrb[118].mxu0 }
0x2d63   :  { %v15308_v62 = vpop.f32.mrb[119].mxu0  ;;  %v11535_v44 = vsel %vm1035_vm2, %v11230_v63, -inf }
0x2d64   :  { %v11303_v40 = vpop.f32.mrb[118].mxu1  ;;  %11533 = vmax.xlane.f32.xlu0 %v11532_v1 }
0x2d65   :  { %v11538_v24 = vsel %vm1035_vm2, %v11303_v40, -inf  ;;  %v15313_v23 = vpop.f32.mrb[119].mxu1 }
0x2d66   :  { %11539 = vmax.xlane.f32.xlu1 %v11538_v24  ;;  %v11376_v43 = vpop.f32.mrb[120].mxu0 }
0x2d67   :  { %v15318_v2 = vpop.f32.mrb[121].mxu0  ;;  %v11541_v7 = vsel %vm1035_vm2, %v11376_v43, -inf }
0x2d68   :  { %v11449_v58 = vpop.f32.mrb[120].mxu1  ;;  %11536 = vmax.xlane.f32.xlu0 %v11535_v44 }
0x2d69   :  { %v11544_v42 = vsel %vm1035_vm2, %v11449_v58, -inf  ;;  %v15323_v48 = vpop.f32.mrb[121].mxu1 }
0x2d6a   :  { %11545 = vmax.xlane.f32.xlu1 %v11544_v42  ;;  %v11522_v46 = vpop.f32.mrb[122].mxu0 }
0x2d6b   :  { %v15328_v47 = vpop.f32.mrb[123].mxu0  ;;  %v11547_v6 = vsel %vm1035_vm2, %v11522_v46, -inf }
0x2d6c   :  { %11542 = vmax.xlane.f32.xlu0 %v11541_v7 }
0x2d70   :  { %11548 = vmax.xlane.f32.xlu0 %v11547_v6 }
0x2deb   :  { %v11528_v8 = vpop.xlane.xlu1 %11527 }
0x2dec   :  { %v11550_v56 = vsub.f32 %v11011_v4, %v11528_v8 }
0x2ded   :  { %v11531_v12 = vpop.xlane.xlu0 %11530 }
0x2dee   :  { %v11558_v34 = vmul.f32 1.442695, %v11550_v56  ;;  %v11551_v29 = vsub.f32 %v11084_v19, %v11531_v12 }
0x2df0   :  { %15860 = vpow2.f32 %v11558_v34  ;;  %v11560_v15 = vmul.f32 1.442695, %v11551_v29 }
0x2df1   :  { %v11534_v50 = vpop.xlane.xlu0 %11533 }
0x2df2   :  { %15862 = vpow2.f32 %v11560_v15  ;;  %v11552_v35 = vsub.f32 %v11157_v45, %v11534_v50 }
0x2df3   :  { %v11540_v26 = vpop.xlane.xlu1 %11539 }
0x2df4   :  { %v11562_v22 = vmul.f32 1.442695, %v11552_v35  ;;  %v11554_v37 = vsub.f32 %v11303_v40, %v11540_v26 }
0x2df5   :  { %v11537_v13 = vpop.xlane.xlu0 %11536 }
0x2df6   :  { %15864 = vpow2.f32 %v11562_v22  ;;  %v11566_v41 = vmul.f32 1.442695, %v11554_v37  ;;  %v11553_v38 = vsub.f32 %v11230_v63, %v11537_v13 }
0x2df7   :  { %v11546_v54 = vpop.xlane.xlu1 %11545 }
0x2df8   :  { %15866 = vpow2.f32 %v11566_v41  ;;  %v11564_v49 = vmul.f32 1.442695, %v11553_v38  ;;  %v11556_v20 = vsub.f32 %v11449_v58, %v11546_v54  ;;  %v17961_v38 = vld [vmem:[#allocation9 + $0x18] sm:$0xff] }
0x2df9   :  { %v11543_v4 = vpop.xlane.xlu0 %11542 }
0x2dfa   :  { %v15861_v11 = vpop.eup %15860  ;;  %15868 = vpow2.f32 %v11564_v49  ;;  %v11570_v19 = vmul.f32 1.442695, %v11556_v20  ;;  %v11555_v39 = vsub.f32 %v11376_v43, %v11543_v4  ;;  %v17968_v4 = vld [vmem:[#allocation9 + $0x20] sm:$0xff] }
0x2dfb   :  { %v11574_v53 = vsel %vm1035_vm2, %v15861_v11, 0.0 }
0x2dfc   :  { %v15863_v1 = vpop.eup %15862  ;;  %15870 = vpow2.f32 %v11570_v19  ;;  %v11568_v45 = vmul.f32 1.442695, %v11555_v39  ;;  %11575 = vadd.xlane.f32.xlu1 %v11574_v53 }
0x2dfd   :  { %v11549_v62 = vpop.xlane.xlu0 %11548  ;;  %v11577_v40 = vsel %vm1035_vm2, %v15863_v1, 0.0 }
0x2dfe   :  { %15872 = vpow2.f32 %v11568_v45  ;;  %v11557_v63 = vsub.f32 %v11522_v46, %v11549_v62  ;;  %11578 = vadd.xlane.f32.xlu0 %v11577_v40  ;;  %v17979_v40 = vld [vmem:[#allocation9 + $0x28] sm:$0xff] }
0x2e00   :  { %v15865_v24 = vpop.eup %15864  ;;  %v11572_v23 = vmul.f32 1.442695, %v11557_v63 }
0x2e01   :  { %v11580_v44 = vsel %vm1035_vm2, %v15865_v24, 0.0 }
0x2e02   :  { %v15867_v2 = vpop.eup %15866  ;;  %15874 = vpow2.f32 %v11572_v23  ;;  %11581 = vadd.xlane.f32.xlu1 %v11580_v44  ;;  %v17990_v23 = vld [vmem:[#allocation11] sm:$0xff] }
0x2e03   :  { %v11586_v58 = vsel %vm1035_vm2, %v15867_v2, 0.0 }
0x2e04   :  { %v15869_v43 = vpop.eup %15868 }
0x2e05   :  { %v11583_v42 = vsel %vm1035_vm2, %v15869_v43, 0.0 }
0x2e06   :  { %v15871_v7 = vpop.eup %15870  ;;  %11587 = vadd.xlane.f32.xlu1 %v11586_v58  ;;  %11584 = vadd.xlane.f32.xlu0 %v11583_v42 }
0x2e07   :  { %v11592_v47 = vsel %vm1035_vm2, %v15871_v7, 0.0 }
0x2e08   :  { %v15873_v48 = vpop.eup %15872 }
0x2e09   :  { %v11589_v46 = vsel %vm1035_vm2, %v15873_v48, 0.0 }
0x2e0a   :  { %11593 = vadd.xlane.f32.xlu1 %v11592_v47  ;;  %11590 = vadd.xlane.f32.xlu0 %v11589_v46 }
0x2e0c   :  { %v17945_v6 = vpop.eup %15874 }
0x2e0d   :  { %v11595_v8 = vsel %vm1035_vm2, %v17945_v6, 0.0 }
0x2e0e   :  { %11596 = vadd.xlane.f32.xlu0 %v11595_v8 }
0x2e1b   :  { %12376 = vrot.lane.b32.xlu1 %v17781_v3, %s16198_s6 }
0x2e24   :  { %12386 = vrot.lane.b32.xlu0 %v17781_v3, %s16197_s27  ;;  %v17954_v3 = vld [vmem:[#allocation9 + $0x10] sm:$0xff] }
0x2e89   :  { %v11576_v56 = vpop.xlane.xlu1 %11575 }
0x2e8a   :  { %15876 = vrcp.f32 %v11576_v56 }
0x2e8b   :  { %v11579_v12 = vpop.xlane.xlu0 %11578 }
0x2e8c   :  { %15878 = vrcp.f32 %v11579_v12 }
0x2e8f   :  { %v11582_v34 = vpop.xlane.xlu1 %11581 }
0x2e90   :  { %15880 = vrcp.f32 %v11582_v34 }
0x2e93   :  { %v11588_v29 = vpop.xlane.xlu1 %11587  ;;  %v11585_v15 = vpop.xlane.xlu0 %11584 }
0x2e94   :  { %v15877_v50 = vpop.eup %15876  ;;  %15882 = vrcp.f32 %v11588_v29 }
0x2e95   :  { %v11606_v35 = vmul.f32 %v15877_v50, %v15861_v11  ;;  %15884 = vrcp.f32 %v11585_v15 }
0x2e96   :  { %v15879_v26 = vpop.eup %15878 }
0x2e97   :  { %v11607_v22 = vmul.f32 %v15879_v26, %v15863_v1  ;;  %15332 = vmatmul.mubr.msk.f32.vlgmr.msra.gmra.mrb[122].mxu1 %vm110_vm1, %v11606_v35  ;;  %v11594_v37 = vpop.xlane.xlu1 %11593  ;;  %v11591_v13 = vpop.xlane.xlu0 %11590  ;;  %v17976_v1 = vld [vmem:[#allocation9 + $0x30] sm:$0xff] }
0x2e98   :  { %15886 = vrcp.f32 %v11594_v37  ;;  %15340 = vmatpush3.msra.mxu1 %v17954_v3  ;;  %15341 = vmatprep.mubr.msk.f32.mxu1 %vm16195_vm0, %v16194_v0 }
0x2e99   :  { %15888 = vrcp.f32 %v11591_v13  ;;  %15337 = vmatmul.mubr.msk.f32.vlgmr.msra.gmra.mrb[124].mxu0 %vm110_vm1, %v11607_v22  ;;  %15349 = vmatprep.subr.mxu1 %v16194_v0 }
0x2e9a   :  { %v15881_v41 = vpop.eup %15880  ;;  %15345 = vmatpush3.msra.mxu0 %v17961_v38  ;;  %15346 = vmatprep.mubr.msk.f32.mxu0 %vm16195_vm0, %v16194_v0 }
0x2e9b   :  { %v11608_v54 = vmul.f32 %v15881_v41, %v15865_v24  ;;  %v11597_v49 = vpop.xlane.xlu0 %11596  ;;  %15354 = vmatprep.subr.mxu0 %v16194_v0 }
0x2e9c   :  { %15890 = vrcp.f32 %v11597_v49 }
0x2e9d   :  { %15342 = vmatmul.mubr.msk.f32.vlgmr.msra.gmra.mrb[124].mxu1 %vm110_vm1, %v11608_v54 }
0x2e9e   :  { %v15883_v20 = vpop.eup %15882  ;;  %15350 = vmatpush3.msra.mxu1 %v17968_v4  ;;  %15351 = vmatprep.mubr.msk.f32.mxu1 %vm16195_vm0, %v16194_v0 }
0x2e9f   :  { %v15885_v11 = vpop.eup %15884  ;;  %v11610_v19 = vmul.f32 %v15883_v20, %v15867_v2  ;;  %15359 = vmatprep.subr.mxu1 %v16194_v0  ;;  %v17994_v2 = vld [vmem:[#allocation9 + $0x38] sm:$0xff] }
0x2ea0   :  { %v11609_v39 = vmul.f32 %v15885_v11, %v15869_v43  ;;  %v18007_v43 = vld [vmem:[%s18235_s7] sm:$0xff] }
0x2ea1   :  { %15352 = vmatmul.mubr.msk.f32.vlgmr.msra.gmra.mrb[126].mxu1 %vm110_vm1, %v11610_v19 }
0x2ea2   :  { %v15887_v53 = vpop.eup %15886  ;;  %15347 = vmatmul.mubr.msk.f32.vlgmr.msra.gmra.mrb[126].mxu0 %vm110_vm1, %v11609_v39  ;;  %15360 = vmatpush3.msra.mxu1 %v17976_v1 }
0x2ea3   :  { %v15889_v45 = vpop.eup %15888  ;;  %v11612_v62 = vmul.f32 %v15887_v53, %v15871_v7  ;;  %15355 = vmatpush3.msra.mxu0 %v17979_v40  ;;  %15356 = vmatprep.mubr.msk.f32.mxu0 %vm16195_vm0, %v16194_v0 }
0x2ea4   :  { %v11611_v63 = vmul.f32 %v15889_v45, %v15873_v48  ;;  %15361 = vmatprep.mubr.msk.f32.mxu1 %vm16195_vm0, %v16194_v0  ;;  %15364 = vmatprep.subr.mxu0 %v16194_v0 }
0x2ea5   :  { %15362 = vmatmul.mubr.msk.f32.vlgmr.msra.gmra.mrb[128].mxu1 %vm110_vm1, %v11612_v62  ;;  %15369 = vmatprep.subr.mxu1 %v16194_v0 }
0x2ea6   :  { %v15891_v24 = vpop.eup %15890  ;;  %15357 = vmatmul.mubr.msk.f32.vlgmr.msra.gmra.mrb[128].mxu0 %vm110_vm1, %v11611_v63  ;;  %15370 = vmatpush3.msra.mxu1 %v17990_v23 }
0x2ea7   :  { %v11613_v44 = vmul.f32 %v15891_v24, %v17945_v6  ;;  %15365 = vmatpush3.msra.mxu0 %v17994_v2  ;;  %15366 = vmatprep.mubr.msk.f32.mxu0 %vm16195_vm0, %v16194_v0  ;;  %v12199_v24 = vld [vmem:[#allocation6 + $0x30] sm:$0xff] }
0x2ea8   :  { %15371 = vmatprep.mubr.msk.f32.mxu1 %vm16195_vm0, %v16194_v0  ;;  %15374 = vmatprep.subr.mxu0 %v16194_v0 }
0x2ea9   :  { %15379 = vmatprep.subr.mxu1 %v16194_v0 }
0x2eaa   :  { %15367 = vmatmul.mubr.msk.f32.vlgmr.msra.gmra.mrb[130].mxu0 %vm110_vm1, %v11613_v44 }
0x2eab   :  { %15375 = vmatpush3.msra.mxu0 %v18007_v43  ;;  %15376 = vmatprep.mubr.msk.f32.mxu0 %vm16195_vm0, %v16194_v0 }
0x2eac   :  { %15384 = vmatprep.subr.mxu0 %v16194_v0 }
0x2f6a   :  { %v11683_v58 = vpop.f32.mrb[122].mxu1 }
0x2f6b   :  { %v15333_v42 = vpop.f32.mrb[123].mxu1 }
0x2f6c   :  { %v11756_v7 = vpop.f32.mrb[124].mxu0 }
0x2f6d   :  { %v12208_v48 = vrot.slane %v11756_v7, 7  ;;  %v15338_v47 = vpop.f32.mrb[125].mxu0 }
0x2f6f   :  { %v12209_v46 = vsel %vm1718_vm3, %v12208_v48, %v11683_v58 }
0x2f70   :  { %v11829_v6 = vpop.f32.mrb[124].mxu1 }
0x2f71   :  { %v12210_v8 = vrot.slane %v11829_v6, 6  ;;  %v15343_v56 = vpop.f32.mrb[125].mxu1 }
0x2f73   :  { %v12211_v12 = vsel %vm1721_vm4, %v12210_v8, %v12209_v46  ;;  %v18031_v8 = vld [vmem:[%s18236_s8] ss:$0 sm:$0xff]  ;;  %s16200_s8 = smov [#allocation12]  }
0x2f74   :  { %v11975_v34 = vpop.f32.mrb[126].mxu1 }
0x2f75   :  { %v11902_v29 = vpop.f32.mrb[126].mxu0  ;;  %v12214_v15 = vrot.slane %v11975_v34, 4  ;;  %v15353_v50 = vpop.f32.mrb[127].mxu1 }
0x2f76   :  { %v12212_v35 = vrot.slane %v11902_v29, 5  ;;  %v15348_v26 = vpop.f32.mrb[127].mxu0  ;;  %v12377_v34 = vpop.permute.xlu1 %12376 }
0x2f78   :  { %v12213_v22 = vsel %vm1724_vm5, %v12212_v35, %v12211_v12  ;;  %v12121_v37 = vpop.f32.mrb[128].mxu1 }
0x2f79   :  { %v12215_v13 = vsel %vm1727_vm6, %v12214_v15, %v12213_v22  ;;  %v12048_v41 = vpop.f32.mrb[128].mxu0  ;;  %v12218_v54 = vrot.slane %v12121_v37, 2  ;;  %v15363_v49 = vpop.f32.mrb[129].mxu1 }
0x2f7a   :  { %v12216_v20 = vrot.slane %v12048_v41, 3  ;;  %v15358_v11 = vpop.f32.mrb[129].mxu0  ;;  %v12387_v22 = vpop.permute.xlu0 %12386 }
0x2f7c   :  { %v12217_v19 = vsel %vm1730_vm7, %v12216_v20, %v12215_v13 }
0x2f7d   :  { %v12219_v39 = vsel %vm1733_vm8, %v12218_v54, %v12217_v19  ;;  %v12194_v53 = vpop.f32.mrb[130].mxu0 }
0x2f7e   :  { %v12220_v45 = vrot.slane %v12194_v53, 1  ;;  %v15368_v62 = vpop.f32.mrb[131].mxu0 }
0x2f80   :  { %v12221_v63 = vsel %vm1736_vm9, %v12220_v45, %v12219_v39  ;;  %v12483_v45 = vld [vmem:[#allocation3 + $0x38] sm:$0xff] }
0x2f81   :  { %15372 = vmatmul.mubr.msk.f32.vlgmr.msra.gmra.mrb[130].mxu1 %vm110_vm1, %v12221_v63  ;;  %v12492_v62 = vrot.slane %v12483_v45, %v16370_v9 }
0x2f82   :  { %15380 = vmatpush3.msra.mxu1 %v17750_v57  ;;  %15381 = vmatprep.mubr.msk.f32.mxu1 %vm16195_vm0, %v16194_v0 }
0x2f83   :  { %15389 = vmatprep.subr.mxu1 %v16194_v0 }
0x3054   :  { %v12290_v44 = vpop.f32.mrb[130].mxu1 }
0x3055   :  { %v12294_v58 = vadd.f32 %v12290_v44, %v12199_v24  ;;  %v15373_v42 = vpop.f32.mrb[131].mxu1  ;;  %v12500_v24 = vcombine.high %v12492_v62, %v12492_v62 }
0x3057   :  { %v14378_v7 = vmul.f32 -1.442695, %v12294_v58  ;;  %v12522_v58 = vrot.slane %v12500_v24, %v16370_v9 }
0x3059   :  { %15892 = vpow2.f32 %v14378_v7 }
0x3063   :  { %v15893_v48 = vpop.eup %15892 }
0x3064   :  { %v12298_v47 = vadd.f32 1.0, %v15893_v48 }
0x3066   :  { %15894 = vrcp.f32 %v12298_v47 }
0x3070   :  { %v15895_v46 = vpop.eup %15894 }
0x3071   :  { %v12302_v6 = vmul.f32 %v15895_v46, %v12221_v63  ;;  %v12485_v63 = vcombine.high %v12483_v45, %v12483_v45 }
0x3073   :  { %15377 = vmatmul.mubr.msk.f32.vlgmr.msra.gmra.mrb[132].mxu0 %vm110_vm1, %v12302_v6  ;;  %v12499_v44 = vrot.slane %v12485_v63, %v16370_v9 }
0x3074   :  { %15386 = vmatprep.mubr.msk.f32.mxu0 %vm16195_vm0, %v16194_v0 }
0x3075   :  { %v12501_v47 = vcombine.high %v12499_v44, %v12499_v44  ;;  %v12515_v6 = vrot.slane %v12499_v44, %v16370_v9 }
0x3146   :  { %v12372_v57 = vpop.f32.mrb[132].mxu0 }
0x3147   :  { %v12373_v56 = vadd.f32 %v18031_v8, %v12372_v57  ;;  %v15378_v12 = vpop.f32.mrb[133].mxu0  ;;  %v12532_v57 = vcombine.high %v12522_v58, %v12522_v58 }
0x3149   :  { %v12379_v29 = vadd.f32 %v12377_v34, %v12373_v56 }
0x314b   :  { %v14380_v15 = vmul.f32 -1.442695, %v12379_v29  ;;  %v12541_v29 = vrot.slane %v12522_v58, %v16381_v18 }
0x314d   :  { %15896 = vpow2.f32 %v14380_v15 }
0x3157   :  { %v15897_v50 = vpop.eup %15896 }
0x3158   :  { %v12383_v35 = vadd.f32 1.0, %v15897_v50 }
0x315a   :  { %15898 = vrcp.f32 %v12383_v35 }
0x3164   :  { %v15899_v26 = vpop.eup %15898 }
0x3165   :  { %v12389_v37 = vmul.f32 %v15899_v26, %v12387_v22  ;;  %v12396_v49 = vsub.f32 1.0, %v15899_v26  ;;  %v12402_v11 = vmul.f32 %v15899_v26, %v17763_v55  ;;  %v12508_v55 = vrot.slane %v12492_v62, %v16370_v9 }
0x3166   :  { %v12531_v22 = vcombine.high %v12515_v6, %v12515_v6 }
0x3167   :  { %12391 = vrot.lane.b32.xlu1 %v12389_v37, %s16199_s18  ;;  %v12530_v7 = vcombine.high %v12508_v55, %v12508_v55  ;;  %v12549_v37 = vrot.slane %v12532_v57, %v16381_v18 }
0x3169   :  { %v12545_v15 = vrot.slane %v12530_v7, %v16381_v18  ;;  %v12561_v7 = vrot.slane %v12531_v22, %v16381_v18 }
0x31d9   :  { %v12392_v13 = vpop.permute.xlu1 %12391 }
0x31da   :  { %v12394_v41 = vadd.f32 %v12392_v13, %v12373_v56  ;;  %v12537_v56 = vrot.slane %v12508_v55, %v16381_v18  ;;  %v12553_v13 = vrot.slane %v12515_v6, %v16381_v18 }
0x31dc   :  { %15900 = vtanh.f32 %v12394_v41  ;;  %v12574_v41 = vadd.f32 %v17796_v36, %v12537_v56  ;;  %v12577_v36 = vadd.f32 %v17810_v61, %v12549_v37 }
0x31e6   :  { %v15901_v54 = vpop.eup %15900 }
0x31e7   :  { %12398 = vrot.lane.b32.xlu1 %v15901_v54, %s16198_s6 }
0x3259   :  { %v12399_v20 = vpop.permute.xlu1 %12398 }
0x325a   :  { %v12401_v19 = vmul.f32 %v12399_v20, %v12396_v49 }
0x325c   :  { %v18037_v39 = vadd.f32 %v12402_v11, %v12401_v19  ;;  %v12575_v19 = vadd.f32 %v17801_v10, %v12541_v29  ;;  %v12578_v10 = vadd.f32 %v17816_v32, %v12553_v13  ;;  %v12580_v29 = vadd.f32 %v17826_v21, %v12561_v7 }
0x325e   :  { %12405 = vrot.lane.b32.xlu1 %v18037_v39, %s16198_s6 }
0x32d0   :  { %v12406_v53 = vpop.permute.xlu1 %12405 }
0x32d1   :  { %12409 = vst.msk [vmem:[#allocation12 + $0x30] sm:$0xff] %vm110_vm1, %v12406_v53  ;;  %15382 = vmatmul.mubr.msk.f32.vlgmr.msra.gmra.mrb[132].mxu1 %vm110_vm1, %v12406_v53  ;;  %v12576_v53 = vadd.f32 %v17804_v14, %v12545_v15 }
0x32d2   :  { %15391 = vmatprep.mubr.msk.f32.mxu1 %vm16195_vm0, %v16194_v0 }
0x33a4   :  { %v12478_v42 = vpop.f32.mrb[132].mxu1 }
0x33a5   :  { %v18050_v48 = vadd.f32 %v17778_v17, %v12478_v42  ;;  %v15383_v46 = vpop.f32.mrb[133].mxu1  ;;  %v12529_v17 = vrot.slane %v12501_v47, %v16370_v9 }
0x33a7   :  { %v12583_v12 = vcombine.high %v18050_v48, %v18050_v48  ;;  %v12590_v34 = vrot.slane %v18050_v48, %v16370_v9  ;;  %v12533_v62 = vcombine.high %v12529_v17, %v12529_v17  ;;  %v12557_v63 = vrot.slane %v12529_v17, %v16381_v18 }
0x33a9   :  { %v12597_v50 = vrot.slane %v12583_v12, %v16370_v9  ;;  %v12598_v35 = vcombine.high %v12590_v34, %v12590_v34  ;;  %v12606_v26 = vrot.slane %v12590_v34, %v16370_v9  ;;  %v12565_v56 = vrot.slane %v12533_v62, %v16381_v18 }
0x33aa   :  { %v12579_v61 = vadd.f32 %v17822_v60, %v12557_v63 }
0x33ab   :  { %v12599_v54 = vcombine.high %v12597_v50, %v12597_v50  ;;  %v12613_v49 = vrot.slane %v12597_v50, %v16370_v9  ;;  %v12620_v20 = vrot.slane %v12598_v35, %v16370_v9  ;;  %v12628_v11 = vcombine.high %v12606_v26, %v12606_v26 }
0x33ac   :  { %v12635_v45 = vrot.slane %v12606_v26, %v16381_v18  ;;  %v12581_v17 = vadd.f32 %v17830_v5, %v12565_v56 }
0x33ad   :  { %v12630_v24 = vcombine.high %v12620_v20, %v12620_v20  ;;  %v12639_v55 = vrot.slane %v12620_v20, %v16381_v18  ;;  %v12627_v44 = vrot.slane %v12599_v54, %v16370_v9  ;;  %v12643_v58 = vrot.slane %v12628_v11, %v16381_v18 }
0x33ae   :  { %v12672_v42 = vadd.f32 %v12635_v45, %v12574_v41  ;;  %v12629_v14 = vcombine.high %v12613_v49, %v12613_v49  ;;  %v12651_v46 = vrot.slane %v12613_v49, %v16381_v18 }
0x33af   :  { %v12647_v47 = vrot.slane %v12630_v24, %v16381_v18  ;;  %v12673_v6 = vadd.f32 %v12639_v55, %v12575_v19  ;;  %v12674_v57 = vadd.f32 %v12643_v58, %v12576_v53  ;;  %v12631_v9 = vcombine.high %v12627_v44, %v12627_v44 }
0x33b0   :  { %15902 = vtanh.f32 %v12672_v42  ;;  %v12655_v12 = vrot.slane %v12627_v44, %v16381_v18  ;;  %v12659_v32 = vrot.slane %v12629_v14, %v16381_v18  ;;  %v12676_v15 = vadd.f32 %v12651_v46, %v12578_v10 }
0x33b1   :  { %v12675_v34 = vadd.f32 %v12647_v47, %v12577_v36  ;;  %15904 = vtanh.f32 %v12673_v6  ;;  %v12663_v50 = vrot.slane %v12631_v9, %v16381_v18 }
0x33b2   :  { %15906 = vtanh.f32 %v12674_v57  ;;  %v12677_v35 = vadd.f32 %v12655_v12, %v12579_v61  ;;  %v12678_v26 = vadd.f32 %v12659_v32, %v12580_v29 }
0x33b3   :  { %15908 = vtanh.f32 %v12675_v34  ;;  %v12679_v22 = vadd.f32 %v12663_v50, %v12581_v17 }
0x33b4   :  { %15910 = vtanh.f32 %v12676_v15 }
0x33b5   :  { %15912 = vtanh.f32 %v12677_v35 }
0x33b6   :  { %15914 = vtanh.f32 %v12678_v26 }
0x33b7   :  { %15916 = vtanh.f32 %v12679_v22 }
0x33ba   :  { %v15903_v60 = vpop.eup %15902 }
0x33bb   :  { %15385 = vmatpush3.xpose.msk.msra.mxu0 %vm110_vm1, %v15903_v60  ;;  %v15905_v37 = vpop.eup %15904 }
0x33bc   :  { %15394 = vmatprep.subr.mxu0 %v16194_v0  ;;  %15390 = vmatpush3.xpose.msk.msra.mxu1 %vm110_vm1, %v15905_v37  ;;  %v15907_v21 = vpop.eup %15906 }
0x33bd   :  { %15399 = vmatprep.subr.mxu1 %v16194_v0  ;;  %v15909_v18 = vpop.eup %15908 }
0x33be   :  { %15387 = vmatmul.mubr.msk.f32.vlgmr.msra.gmra.mrb[134].mxu0 %vm110_vm1, %v17840_v59  ;;  %v15911_v5 = vpop.eup %15910 }
0x33bf   :  { %15395 = vmatpush3.xpose.msk.msra.mxu0 %vm110_vm1, %v15907_v21  ;;  %15396 = vmatprep.mubr.msk.f32.mxu0 %vm16195_vm0, %v16194_v0  ;;  %v15913_v59 = vpop.eup %15912 }
0x33c0   :  { %15392 = vmatmul.mubr.msk.f32.vlgmr.msra.gmra.mrb[134].mxu1 %vm110_vm1, %v17851_v16  ;;  %15404 = vmatprep.subr.mxu0 %v16194_v0  ;;  %v15915_v16 = vpop.eup %15914 }
0x33c1   :  { %15400 = vmatpush3.xpose.msk.msra.mxu1 %vm110_vm1, %v15909_v18  ;;  %15401 = vmatprep.mubr.msk.f32.mxu1 %vm16195_vm0, %v16194_v0 }
0x33c2   :  { %15397 = vmatmul.mubr.msk.f32.vlgmr.msra.gmra.mrb[136].mxu0 %vm110_vm1, %v17862_v31  ;;  %15409 = vmatprep.subr.mxu1 %v16194_v0  ;;  %v15917_v31 = vpop.eup %15916 }
0x33c3   :  { %15405 = vmatpush3.xpose.msk.msra.mxu0 %vm110_vm1, %v15911_v5  ;;  %15406 = vmatprep.mubr.msk.f32.mxu0 %vm16195_vm0, %v16194_v0 }
0x33c4   :  { %15402 = vmatmul.mubr.msk.f32.vlgmr.msra.gmra.mrb[136].mxu1 %vm110_vm1, %v17873_v30  ;;  %15414 = vmatprep.subr.mxu0 %v16194_v0 }
0x33c5   :  { %15410 = vmatpush3.xpose.msk.msra.mxu1 %vm110_vm1, %v15913_v59  ;;  %15411 = vmatprep.mubr.msk.f32.mxu1 %vm16195_vm0, %v16194_v0 }
0x33c6   :  { %15407 = vmatmul.mubr.msk.f32.vlgmr.msra.gmra.mrb[138].mxu0 %vm110_vm1, %v17884_v52  ;;  %15419 = vmatprep.subr.mxu1 %v16194_v0 }
0x33c7   :  { %15415 = vmatpush3.xpose.msk.msra.mxu0 %vm110_vm1, %v15915_v16  ;;  %15416 = vmatprep.mubr.msk.f32.mxu0 %vm16195_vm0, %v16194_v0 }
0x33c8   :  { %15412 = vmatmul.mubr.msk.f32.vlgmr.msra.gmra.mrb[138].mxu1 %vm110_vm1, %v17895_v27  ;;  %15424 = vmatprep.subr.mxu0 %v16194_v0 }
0x33c9   :  { %15420 = vmatpush3.xpose.msk.msra.mxu1 %vm110_vm1, %v15917_v31  ;;  %15421 = vmatprep.mubr.msk.f32.mxu1 %vm16195_vm0, %v16194_v0 }
0x33ca   :  { %15417 = vmatmul.mubr.msk.f32.vlgmr.msra.gmra.mrb[140].mxu0 %vm110_vm1, %v17906_v33  ;;  %15429 = vmatprep.subr.mxu1 %v16194_v0 }
0x33cb   :  { %15425 = vmatpush3.msra.mxu0 %v17911_v25  ;;  %15426 = vmatprep.mubr.msk.f32.mxu0 %vm16195_vm0, %v16194_v0 }
0x33cc   :  { %15422 = vmatmul.mubr.msk.f32.vlgmr.msra.gmra.mrb[140].mxu1 %vm110_vm1, %v17919_v28  ;;  %15434 = vmatprep.subr.mxu0 %v16194_v0 }
0x33cd   :  { %15430 = vmatpush3.msra.mxu1 %v17924_v51  ;;  %15431 = vmatprep.mubr.msk.f32.mxu1 %vm16195_vm0, %v16194_v0 }
0x33ce   :  { %15439 = vmatprep.subr.mxu1 %v16194_v0 }
0x3491   :  { %v12757_v30 = vpop.f32.mrb[134].mxu0 }
0x3492   :  { %v15388_v52 = vpop.f32.mrb[135].mxu0  ;;  %v13272_v27 = vsel %vm1035_vm2, %v12757_v30, -inf }
0x3493   :  { %v12830_v33 = vpop.f32.mrb[134].mxu1  ;;  %13273 = vmax.xlane.f32.xlu0 %v13272_v27 }
0x3494   :  { %v13275_v25 = vsel %vm1035_vm2, %v12830_v33, -inf  ;;  %v15393_v13 = vpop.f32.mrb[135].mxu1 }
0x3495   :  { %13276 = vmax.xlane.f32.xlu1 %v13275_v25  ;;  %v12903_v28 = vpop.f32.mrb[136].mxu0 }
0x3496   :  { %v15398_v41 = vpop.f32.mrb[137].mxu0  ;;  %v13278_v54 = vsel %vm1035_vm2, %v12903_v28, -inf }
0x3497   :  { %13279 = vmax.xlane.f32.xlu0 %v13278_v54  ;;  %v12976_v51 = vpop.f32.mrb[136].mxu1 }
0x3498   :  { %v15403_v49 = vpop.f32.mrb[137].mxu1  ;;  %v13281_v20 = vsel %vm1035_vm2, %v12976_v51, -inf }
0x3499   :  { %v13049_v11 = vpop.f32.mrb[138].mxu0 }
0x349a   :  { %v15408_v19 = vpop.f32.mrb[139].mxu0  ;;  %v13284_v63 = vsel %vm1035_vm2, %v13049_v11, -inf }
0x349b   :  { %v13122_v53 = vpop.f32.mrb[138].mxu1  ;;  %13282 = vmax.xlane.f32.xlu0 %v13281_v20 }
0x349c   :  { %v13287_v45 = vsel %vm1035_vm2, %v13122_v53, -inf  ;;  %v15413_v62 = vpop.f32.mrb[139].mxu1 }
0x349d   :  { %13288 = vmax.xlane.f32.xlu1 %v13287_v45  ;;  %v13195_v24 = vpop.f32.mrb[140].mxu0 }
0x349e   :  { %v15418_v55 = vpop.f32.mrb[141].mxu0  ;;  %v13290_v42 = vsel %vm1035_vm2, %v13195_v24, -inf }
0x349f   :  { %v13268_v36 = vpop.f32.mrb[140].mxu1  ;;  %13285 = vmax.xlane.f32.xlu0 %v13284_v63 }
0x34a0   :  { %v13293_v44 = vsel %vm1035_vm2, %v13268_v36, -inf  ;;  %v15423_v58 = vpop.f32.mrb[141].mxu1 }
0x34a1   :  { %13294 = vmax.xlane.f32.xlu1 %v13293_v44 }
0x34a3   :  { %13291 = vmax.xlane.f32.xlu0 %v13290_v42 }
0x3520   :  { %v13274_v7 = vpop.xlane.xlu0 %13273 }
0x3521   :  { %v13296_v10 = vsub.f32 %v12757_v30, %v13274_v7 }
0x3522   :  { %v13277_v14 = vpop.xlane.xlu1 %13276 }
0x3523   :  { %v13304_v47 = vmul.f32 1.442695, %v13296_v10  ;;  %v13297_v46 = vsub.f32 %v12830_v33, %v13277_v14 }
0x3524   :  { %v13280_v6 = vpop.xlane.xlu0 %13279 }
0x3525   :  { %15918 = vpow2.f32 %v13304_v47  ;;  %v13306_v57 = vmul.f32 1.442695, %v13297_v46  ;;  %v13298_v56 = vsub.f32 %v12903_v28, %v13280_v6 }
0x3527   :  { %15920 = vpow2.f32 %v13306_v57  ;;  %v13308_v61 = vmul.f32 1.442695, %v13298_v56 }
0x3528   :  { %v13283_v9 = vpop.xlane.xlu0 %13282 }
0x3529   :  { %15922 = vpow2.f32 %v13308_v61  ;;  %v13299_v12 = vsub.f32 %v12976_v51, %v13283_v9 }
0x352a   :  { %v13289_v34 = vpop.xlane.xlu1 %13288 }
0x352b   :  { %v13310_v29 = vmul.f32 1.442695, %v13299_v12  ;;  %v13301_v32 = vsub.f32 %v13122_v53, %v13289_v34 }
0x352c   :  { %v13286_v15 = vpop.xlane.xlu0 %13285 }
0x352d   :  { %15924 = vpow2.f32 %v13310_v29  ;;  %v13314_v17 = vmul.f32 1.442695, %v13301_v32  ;;  %v13300_v50 = vsub.f32 %v13049_v11, %v13286_v15 }
0x352e   :  { %v13295_v35 = vpop.xlane.xlu1 %13294 }
0x352f   :  { %v15919_v26 = vpop.eup %15918  ;;  %15926 = vpow2.f32 %v13314_v17  ;;  %v13312_v60 = vmul.f32 1.442695, %v13300_v50  ;;  %v13303_v22 = vsub.f32 %v13268_v36, %v13295_v35 }
0x3530   :  { %v13292_v37 = vpop.xlane.xlu0 %13291  ;;  %v13320_v21 = vsel %vm1035_vm2, %v15919_v26, 0.0 }
0x3531   :  { %v15921_v18 = vpop.eup %15920  ;;  %15928 = vpow2.f32 %v13312_v60  ;;  %v13318_v5 = vmul.f32 1.442695, %v13303_v22  ;;  %v13302_v59 = vsub.f32 %v13195_v24, %v13292_v37  ;;  %13321 = vadd.xlane.f32.xlu0 %v13320_v21 }
0x3532   :  { %v13323_v16 = vsel %vm1035_vm2, %v15921_v18, 0.0 }
0x3533   :  { %v15923_v31 = vpop.eup %15922  ;;  %15930 = vpow2.f32 %v13318_v5  ;;  %v13316_v30 = vmul.f32 1.442695, %v13302_v59  ;;  %13324 = vadd.xlane.f32.xlu1 %v13323_v16 }
0x3534   :  { %v13326_v52 = vsel %vm1035_vm2, %v15923_v31, 0.0 }
0x3535   :  { %15932 = vpow2.f32 %v13316_v30  ;;  %13327 = vadd.xlane.f32.xlu0 %v13326_v52 }
0x3537   :  { %v15925_v27 = vpop.eup %15924 }
0x3538   :  { %v13329_v33 = vsel %vm1035_vm2, %v15925_v27, 0.0 }
0x3539   :  { %v15927_v25 = vpop.eup %15926  ;;  %13330 = vadd.xlane.f32.xlu1 %v13329_v33 }
0x353a   :  { %v13335_v28 = vsel %vm1035_vm2, %v15927_v25, 0.0 }
0x353b   :  { %v15929_v13 = vpop.eup %15928 }
0x353c   :  { %v13332_v41 = vsel %vm1035_vm2, %v15929_v13, 0.0 }
0x353d   :  { %v15931_v54 = vpop.eup %15930  ;;  %13336 = vadd.xlane.f32.xlu1 %v13335_v28  ;;  %13333 = vadd.xlane.f32.xlu0 %v13332_v41 }
0x353e   :  { %v13341_v49 = vsel %vm1035_vm2, %v15931_v54, 0.0 }
0x353f   :  { %v15933_v51 = vpop.eup %15932 }
0x3540   :  { %v13338_v20 = vsel %vm1035_vm2, %v15933_v51, 0.0 }
0x3541   :  { %13342 = vadd.xlane.f32.xlu1 %v13341_v49  ;;  %13339 = vadd.xlane.f32.xlu0 %v13338_v20 }
0x3552   :  { %14132 = vrot.lane.b32.xlu1 %v18050_v48, %s16197_s27  ;;  %s14162_s27 = sshll.u32 %s16200_s8, 4  ;;  %s14163_s27 = int_to_ptr.vmem [resolvable:$true] %s14162_s27 }
0x3553   :  { %p16162_p13 = scmp.lt.s32.totalorder %s14163_s27, %s14163_s27 }
0x3557   :  { %14122 = vrot.lane.b32.xlu0 %v18050_v48, %s16198_s6 }
0x35be   :  { %v13322_v11 = vpop.xlane.xlu0 %13321 }
0x35bf   :  { %15934 = vrcp.f32 %v13322_v11 }
0x35c0   :  { %v13325_v19 = vpop.xlane.xlu1 %13324 }
0x35c1   :  { %15936 = vrcp.f32 %v13325_v19 }
0x35c2   :  { %v13328_v53 = vpop.xlane.xlu0 %13327 }
0x35c3   :  { %15938 = vrcp.f32 %v13328_v53 }
0x35c6   :  { %v13331_v45 = vpop.xlane.xlu1 %13330 }
0x35c7   :  { %15940 = vrcp.f32 %v13331_v45 }
0x35c9   :  { %v15935_v62 = vpop.eup %15934 }
0x35ca   :  { %v13352_v63 = vmul.f32 %v15935_v62, %v15919_v26  ;;  %v13337_v24 = vpop.xlane.xlu1 %13336  ;;  %v13334_v55 = vpop.xlane.xlu0 %13333 }
0x35cb   :  { %v15937_v36 = vpop.eup %15936  ;;  %15942 = vrcp.f32 %v13337_v24 }
0x35cc   :  { %v13353_v44 = vmul.f32 %v15937_v36, %v15921_v18  ;;  %15944 = vrcp.f32 %v13334_v55  ;;  %15427 = vmatmul.mubr.msk.f32.vlgmr.msra.gmra.mrb[142].mxu0 %vm110_vm1, %v13352_v63 }
0x35cd   :  { %v15939_v58 = vpop.eup %15938  ;;  %15435 = vmatpush3.msra.mxu0 %v17954_v3  ;;  %15436 = vmatprep.mubr.msk.f32.mxu0 %vm16195_vm0, %v16194_v0 }
0x35ce   :  { %v13354_v48 = vmul.f32 %v15939_v58, %v15923_v31  ;;  %15432 = vmatmul.mubr.msk.f32.vlgmr.msra.gmra.mrb[142].mxu1 %vm110_vm1, %v13353_v44  ;;  %v13343_v42 = vpop.xlane.xlu1 %13342  ;;  %v13340_v7 = vpop.xlane.xlu0 %13339  ;;  %15444 = vmatprep.subr.mxu0 %v16194_v0 }
0x35cf   :  { %15946 = vrcp.f32 %v13343_v42  ;;  %15440 = vmatpush3.msra.mxu1 %v17961_v38  ;;  %15441 = vmatprep.mubr.msk.f32.mxu1 %vm16195_vm0, %v16194_v0 }
0x35d0   :  { %15948 = vrcp.f32 %v13340_v7  ;;  %15437 = vmatmul.mubr.msk.f32.vlgmr.msra.gmra.mrb[144].mxu0 %vm110_vm1, %v13354_v48  ;;  %15449 = vmatprep.subr.mxu1 %v16194_v0 }
0x35d1   :  { %v15941_v3 = vpop.eup %15940  ;;  %15445 = vmatpush3.msra.mxu0 %v17968_v4  ;;  %15446 = vmatprep.mubr.msk.f32.mxu0 %vm16195_vm0, %v16194_v0 }
0x35d2   :  { %v13355_v10 = vmul.f32 %v15941_v3, %v15925_v27  ;;  %15454 = vmatprep.subr.mxu0 %v16194_v0  ;;  %v14123_v62 = vpop.permute.xlu0 %14122  ;;  %v14133_v58 = vpop.permute.xlu1 %14132 }
0x35d4   :  { %15442 = vmatmul.mubr.msk.f32.vlgmr.msra.gmra.mrb[144].mxu1 %vm110_vm1, %v13355_v10 }
0x35d5   :  { %v15943_v38 = vpop.eup %15942  ;;  %15450 = vmatpush3.msra.mxu1 %v17979_v40  ;;  %15451 = vmatprep.mubr.msk.f32.mxu1 %vm16195_vm0, %v16194_v0 }
0x35d6   :  { %v15945_v14 = vpop.eup %15944  ;;  %v13357_v47 = vmul.f32 %v15943_v38, %v15927_v25  ;;  %15459 = vmatprep.subr.mxu1 %v16194_v0  ;;  %v13945_v25 = vld [vmem:[#allocation6 + $0x38] sm:$0xff] }
0x35d7   :  { %v13356_v46 = vmul.f32 %v15945_v14, %v15929_v13 }
0x35d8   :  { %15452 = vmatmul.mubr.msk.f32.vlgmr.msra.gmra.mrb[146].mxu1 %vm110_vm1, %v13357_v47 }
0x35d9   :  { %v15947_v4 = vpop.eup %15946  ;;  %15447 = vmatmul.mubr.msk.f32.vlgmr.msra.gmra.mrb[146].mxu0 %vm110_vm1, %v13356_v46  ;;  %15460 = vmatpush3.msra.mxu1 %v17994_v2 }
0x35da   :  { %v15949_v6 = vpop.eup %15948  ;;  %v13359_v57 = vmul.f32 %v15947_v4, %v15931_v54  ;;  %15455 = vmatpush3.msra.mxu0 %v17976_v1  ;;  %15456 = vmatprep.mubr.msk.f32.mxu0 %vm16195_vm0, %v16194_v0 }
0x35db   :  { %v13358_v40 = vmul.f32 %v15949_v6, %v15933_v51  ;;  %15461 = vmatprep.mubr.msk.f32.mxu1 %vm16195_vm0, %v16194_v0  ;;  %15464 = vmatprep.subr.mxu0 %v16194_v0 }
0x35dc   :  { %15462 = vmatmul.mubr.msk.f32.vlgmr.msra.gmra.mrb[148].mxu1 %vm110_vm1, %v13359_v57  ;;  %15469 = vmatprep.subr.mxu1 %v16194_v0 }
0x35dd   :  { %15457 = vmatmul.mubr.msk.f32.vlgmr.msra.gmra.mrb[148].mxu0 %vm110_vm1, %v13358_v40  ;;  %15470 = vmatpush3.msra.mxu1 %v18007_v43 }
0x35de   :  { %15465 = vmatpush3.msra.mxu0 %v17990_v23  ;;  %15466 = vmatprep.mubr.msk.f32.mxu0 %vm16195_vm0, %v16194_v0 }
0x35df   :  { %15471 = vmatprep.mubr.msk.f32.mxu1 %vm16195_vm0, %v16194_v0 }
0x369f   :  { %v13429_v1 = vpop.f32.mrb[142].mxu0 }
0x36a0   :  { %v15428_v2 = vpop.f32.mrb[143].mxu0 }
0x36a1   :  { %v13502_v56 = vpop.f32.mrb[142].mxu1 }
0x36a2   :  { %v13954_v61 = vrot.slane %v13502_v56, 7  ;;  %v15433_v9 = vpop.f32.mrb[143].mxu1 }
0x36a3   :  { %v13575_v12 = vpop.f32.mrb[144].mxu0 }
0x36a4   :  { %v13955_v34 = vsel %vm1718_vm3, %v13954_v61, %v13429_v1  ;;  %v13956_v29 = vrot.slane %v13575_v12, 6  ;;  %v15438_v32 = vpop.f32.mrb[145].mxu0 }
0x36a6   :  { %v13957_v43 = vsel %vm1721_vm4, %v13956_v29, %v13955_v34 }
0x36a7   :  { %v13648_v15 = vpop.f32.mrb[144].mxu1 }
0x36a8   :  { %v13958_v23 = vrot.slane %v13648_v15, 5  ;;  %v15443_v17 = vpop.f32.mrb[145].mxu1 }
0x36aa   :  { %v13959_v50 = vsel %vm1724_vm5, %v13958_v23, %v13957_v43 }
0x36ab   :  { %v13794_v35 = vpop.f32.mrb[146].mxu1 }
0x36ac   :  { %v13721_v26 = vpop.f32.mrb[146].mxu0  ;;  %v13962_v0 = vrot.slane %v13794_v35, 3  ;;  %v15453_v60 = vpop.f32.mrb[147].mxu1 }
0x36ad   :  { %v13960_v22 = vrot.slane %v13721_v26, 4  ;;  %v15448_v37 = vpop.f32.mrb[147].mxu0 }
0x36af   :  { %v13961_v21 = vsel %vm1727_vm6, %v13960_v22, %v13959_v50  ;;  %v13940_v18 = vpop.f32.mrb[148].mxu1 }
0x36b0   :  { %v13963_v5 = vsel %vm1730_vm7, %v13962_v0, %v13961_v21  ;;  %v13867_v59 = vpop.f32.mrb[148].mxu0  ;;  %v13966_v16 = vrot.slane %v13940_v18, 1  ;;  %v15463_v31 = vpop.f32.mrb[149].mxu1 }
0x36b1   :  { %v13964_v30 = vrot.slane %v13867_v59, 2  ;;  %v15458_v52 = vpop.f32.mrb[149].mxu0 }
0x36b3   :  { %v13965_v27 = vsel %vm1733_vm8, %v13964_v30, %v13963_v5 }
0x36b4   :  { %v13967_v33 = vsel %vm1736_vm9, %v13966_v16, %v13965_v27 }
0x36b5   :  { %15467 = vmatmul.mubr.msk.f32.vlgmr.msra.gmra.mrb[150].mxu0 %vm110_vm1, %v13967_v33 }
0x3788   :  { %v14036_v13 = vpop.f32.mrb[150].mxu0 }
0x3789   :  { %v14040_v28 = vadd.f32 %v14036_v13, %v13945_v25  ;;  %v15468_v41 = vpop.f32.mrb[151].mxu0 }
0x378b   :  { %v14407_v54 = vmul.f32 -1.442695, %v14040_v28 }
0x378d   :  { %15950 = vpow2.f32 %v14407_v54 }
0x3797   :  { %v15951_v51 = vpop.eup %15950 }
0x3798   :  { %v14044_v49 = vadd.f32 1.0, %v15951_v51 }
0x379a   :  { %15952 = vrcp.f32 %v14044_v49 }
0x37a4   :  { %v15953_v20 = vpop.eup %15952 }
0x37a5   :  { %v14048_v11 = vmul.f32 %v15953_v20, %v13967_v33 }
0x37a7   :  { %15472 = vmatmul.mubr.msk.f32.vlgmr.msra.gmra.mrb[150].mxu1 %vm110_vm1, %v14048_v11 }
0x387a   :  { %v14118_v19 = vpop.f32.mrb[150].mxu1 }
0x387b   :  { %v14119_v53 = vadd.f32 %v18031_v8, %v14118_v19  ;;  %v15473_v45 = vpop.f32.mrb[151].mxu1 }
0x387d   :  { %v14125_v63 = vadd.f32 %v14123_v62, %v14119_v53 }
0x387f   :  { %v14409_v24 = vmul.f32 -1.442695, %v14125_v63 }
0x3881   :  { %15954 = vpow2.f32 %v14409_v24 }
0x388b   :  { %v15955_v55 = vpop.eup %15954 }
0x388c   :  { %v14129_v36 = vadd.f32 1.0, %v15955_v55 }
0x388e   :  { %15956 = vrcp.f32 %v14129_v36 }
0x3898   :  { %v15957_v44 = vpop.eup %15956 }
0x3899   :  { %v14135_v48 = vmul.f32 %v15957_v44, %v14133_v58  ;;  %v14142_v8 = vsub.f32 1.0, %v15957_v44  ;;  %v14148_v38 = vmul.f32 %v15957_v44, %v18037_v39 }
0x389b   :  { %14137 = vrot.lane.b32.xlu1 %v14135_v48, %s16199_s18  ;;  %s16157_s18 = scalar_lea.vmem %s14163_s27, 1024 }
0x389c   :  { %p16158_p12 = scmp.ne.s32.totalorder %s14163_s27, %s16157_s18  ;;  %p16163_p0 = scmp.lt.s32.totalorder %s16157_s18, %s16157_s18 }
0x389e   :  { %p16164_p1 = por %p16163_p0, %p16162_p13 }
0x38a0   :  { %p16165_p2 = pnand %p16164_p1, %p16158_p12 }
0x390d   :  { %v14138_v42 = vpop.permute.xlu1 %14137 }
0x390e   :  { %v14140_v7 = vadd.f32 %v14138_v42, %v14119_v53 }
0x3910   :  { %15958 = vtanh.f32 %v14140_v7 }
0x391a   :  { %v15959_v3 = vpop.eup %15958 }
0x391b   :  { %14144 = vrot.lane.b32.xlu1 %v15959_v3, %s16198_s6 }
0x398d   :  { %v14145_v10 = vpop.permute.xlu1 %14144 }
0x398e   :  { %v14147_v14 = vmul.f32 %v14145_v10, %v14142_v8 }
0x3990   :  { %v14149_v47 = vadd.f32 %v14148_v38, %v14147_v14 }
0x3992   :  { %14151 = vrot.lane.b32.xlu0 %v14149_v47, %s16198_s6 }
0x3a04   :  { %v14152_v46 = vpop.permute.xlu0 %14151 }
0x3a05   :  { %14155 = vst.msk [vmem:[#allocation12 + $0x38] sm:$0xff] %vm110_vm1, %v14152_v46  ;;  %14156 = vst.msk [vmem:[#allocation2] sm:$0xff] %vm110_vm1, %v14152_v46 }
0x3a06   :  { %16168 = shalt.err (!%p16165_p2)
}
0x3a07   :  { %s16169_s5 = scalar_lea.hbm %s18239_s11, 1024 }
0x3a08   :  { %p16170_p3 = scmp.ne.s32.totalorder %s18239_s11, %s16169_s5  ;;  %p16173_p4 = scmp.lt.u32.totalorder %s16169_s5, %s18239_s11 }
0x3a0a   :  { %p16175_p5 = pnand %p16173_p4, %p16170_p3 }
0x3a0c   :  { %16178 = shalt.err (!%p16175_p5)
}
0x3a0d   :  { %14168 = dma.vmem_to_hbm [thread:$0]  %s14163_s27, 1024, %s18239_s11, [#allocation5], %s16189_s29, %s16189_s29, %s16190_s30  }
0x3a0e   :  { %16185 = dma.done.wait [#allocation5], 1024  }
0x3a0f   :  { %16186 = vsyncadd [#allocation5], 4294966272 }
0x3a10   :  { %14172 = vsyncpa [#allocation4], 1 }
0x3a11   :  { %14173 = vsyncpa [#allocation7], 1 }
0x3a12   :  { %14174 = vsyncpa [#allocation10], 1 }
0x3a13   :  { %14175 = vsyncpa [#allocation5], 1 }

</bundles_post_ra>
